<compile_context>
chip_gen: v6e
topology: v6e:2x2x1
jax: 0.10.0
libtpu: 0.0.40
codegen_flags: <defaults>
</compile_context>

<pallas_src>
import math
import functools

import numpy as np
import jax
import jax.numpy as jnp
from jax import lax
from jax.experimental import pallas as pl
from jax.experimental.pallas import tpu as pltpu

_NEG_BIG = -1e30  # finite "minus infinity" for the additive causal bias


def _layernorm(x, gamma, beta, eps=1e-5):
    mu = jnp.mean(x, axis=-1, keepdims=True)
    var = jnp.mean((x - mu) ** 2, axis=-1, keepdims=True)
    return (x - mu) * lax.rsqrt(var + eps) * gamma + beta


def block_kernel(
    xq_ref,                               # (q_block, E)  query tile
    xf_ref,                               # (T, E)        full sequence (for K/V)
    mask_ref,                             # (q_block, T)  additive causal bias
    wq_ref, bq_ref,                       # (E, E), (1, E)
    wkv_ref, bkv_ref,                     # (E, 2E), (1, 2E)
    aw1_ref, ab1_ref, aw2_ref, ab2_ref,   # attention-internal FFN
    g1_ref, be1_ref,                      # ln1
    fw1_ref, fb1_ref, fw2_ref, fb2_ref,   # block FFN
    g2_ref, be2_ref,                      # ln2
    o_ref,                                # (q_block, E)
    att_scratch,                          # VMEM (q_block, E) f32
    *, n_heads, d_head, compute_dtype,
):
    cdt = compute_dtype
    f32 = jnp.float32

    xq = xq_ref[...]                      # f32 (q_block, E) — kept for residual
    E = xq.shape[-1]
    inv_sqrt_d = 1.0 / math.sqrt(d_head)

    # Q projection on the query tile; 1/sqrt(d_head) folded in here.
    q_all = (jnp.dot(xq.astype(cdt), wq_ref[...],
                     preferred_element_type=f32) + bq_ref[...]) * inv_sqrt_d
    # K/V projection on the full sequence.
    kv_all = jnp.dot(xf_ref[...].astype(cdt), wkv_ref[...],
                     preferred_element_type=f32) + bkv_ref[...]

    bias = mask_ref[...]                  # (q_block, T): 0 or -1e30

    # ---- per-head causal attention, results written into VMEM scratch ----
    for h in range(n_heads):
        lo = h * d_head
        hi = lo + d_head
        q = q_all[:, lo:hi].astype(cdt)           # (q_block, d_head)
        k = kv_all[:, lo:hi].astype(cdt)          # (T, d_head)
        v = kv_all[:, E + lo:E + hi].astype(cdt)  # (T, d_head)

        # scores: contract d_head directly (no explicit k.T)
        s = lax.dot_general(q, k, (((1,), (1,)), ((), ())),
                            preferred_element_type=f32)      # (q_block, T)
        s = s + bias
        m = jnp.max(s, axis=-1, keepdims=True)
        e = jnp.exp(s - m)
        l = jnp.sum(e, axis=-1, keepdims=True)
        p = e * pl.reciprocal(l, approx=True)
        att_scratch[:, lo:hi] = jnp.dot(p.astype(cdt), v,
                                        preferred_element_type=f32)

    att = att_scratch[...]                # (q_block, E) f32

    # ---- attention-internal FFN ----
    h1 = jnp.maximum(jnp.dot(att.astype(cdt), aw1_ref[...],
                             preferred_element_type=f32) + ab1_ref[...], 0.0)
    att = jnp.dot(h1.astype(cdt), aw2_ref[...],
                  preferred_element_type=f32) + ab2_ref[...]
    # TODO(synk): dropout(p) on `att` treated as identity.

    # ---- residual + LN1 ----
    out1 = _layernorm(att + xq, g1_ref[...], be1_ref[...])

    # ---- block FFN ----
    h2 = jnp.maximum(jnp.dot(out1.astype(cdt), fw1_ref[...],
                             preferred_element_type=f32) + fb1_ref[...], 0.0)
    out2 = jnp.dot(h2.astype(cdt), fw2_ref[...],
                   preferred_element_type=f32) + fb2_ref[...]
    # TODO(synk): dropout(p) on `out2` treated as identity.

    # ---- residual + LN2 ----
    o_ref[...] = _layernorm(out1 + out2, g2_ref[...], be2_ref[...]).astype(o_ref.dtype)


def block_forward(x, params, n_heads, *, compute_dtype=jnp.float32, q_block=None):
    B, T, E = x.shape
    assert E % n_heads == 0
    d_head = E // n_heads

    if q_block is None:
        q_block = 128 if (T > 128 and T % 128 == 0) else T
    assert T % q_block == 0
    n_qt = T // q_block

    cdt = compute_dtype
    f32 = jnp.float32

    # ---------- host-side (one-time) weight prep ----------
    # Permute Wqkv output columns from per-head [q|k|v] blocks to
    # [all-Q | all-K | all-V] so kernel head slices are d_head-aligned.
    perm = np.empty((3 * E,), np.int32)
    for h in range(n_heads):
        for d in range(d_head):
            perm[h * d_head + d] = h * 3 * d_head + d                       # Q
            perm[E + h * d_head + d] = h * 3 * d_head + d_head + d          # K
            perm[2 * E + h * d_head + d] = h * 3 * d_head + 2 * d_head + d  # V

    wqkv = params["Wqkv"].T[:, perm]                    # (E, 3E), permuted
    bqkv = params["bqkv"][perm]
    wq = wqkv[:, :E].astype(cdt)
    bq = bqkv[:E][None, :].astype(f32)
    wkv = wqkv[:, E:].astype(cdt)
    bkv = bqkv[E:][None, :].astype(f32)

    weight_arrays = [
        wq, bq, wkv, bkv,
        params["aW1"].T.astype(cdt), params["ab1"][None, :].astype(f32),
        params["aW2"].T.astype(cdt), params["ab2"][None, :].astype(f32),
        params["g1"][None, :].astype(f32), params["be1"][None, :].astype(f32),
        params["fW1"].T.astype(cdt), params["fb1"][None, :].astype(f32),
        params["fW2"].T.astype(cdt), params["fb2"][None, :].astype(f32),
        params["g2"][None, :].astype(f32), params["be2"][None, :].astype(f32),
    ]

    # Causal mask as additive bias, built once on the host.
    row = np.arange(T)[:, None]
    col = np.arange(T)[None, :]
    mask_bias = jnp.asarray(np.where(row >= col, 0.0, _NEG_BIG).astype(np.float32))

    # ---------- explicit VMEM budget ----------
    bytes_in = sum(int(a.size) * a.dtype.itemsize for a in weight_arrays)
    bytes_in += int(x.size) * x.dtype.itemsize + int(mask_bias.size) * 4
    bytes_act = 4 * (q_block * 3 * E + 2 * T * E + 2 * q_block * T + 4 * q_block * E)
    vmem_limit = int(min(max(4 * (bytes_in + bytes_act), 32 * 1024 * 1024),
                         64 * 1024 * 1024))   # keep within v7x's 64 MiB physical

    kernel = functools.partial(block_kernel, n_heads=n_heads,
                               d_head=d_head, compute_dtype=cdt)

    def _call(single_buffer_weights):
        def wspec(arr):
            idx = (0,) * arr.ndim
            if single_buffer_weights:
                # constant index_map across the whole grid -> 1 buffer is enough
                return pl.BlockSpec(arr.shape, lambda b, qi: idx,
                                    pipeline_mode=pl.Buffered(1))
            return pl.BlockSpec(arr.shape, lambda b, qi: idx)

        in_specs = (
            [pl.BlockSpec((None, q_block, E), lambda b, qi: (b, qi, 0)),  # query tile
             pl.BlockSpec((None, T, E), lambda b, qi: (b, 0, 0)),         # full seq (K/V)
             pl.BlockSpec((q_block, T), lambda b, qi: (qi, 0))]           # causal bias
            + [wspec(a) for a in weight_arrays])

        return pl.pallas_call(
            kernel,
            out_shape=jax.ShapeDtypeStruct((B, T, E), jnp.float32),
            grid=(B, n_qt),
            in_specs=in_specs,
            out_specs=pl.BlockSpec((None, q_block, E), lambda b, qi: (b, qi, 0)),
            scratch_shapes=[pltpu.VMEM((q_block, E), jnp.float32)],
            compiler_params=pltpu.CompilerParams(
                dimension_semantics=("parallel", "parallel"),
                vmem_limit_bytes=vmem_limit),
        )(x, x, mask_bias, *weight_arrays)

    try:
        return _call(True)
    except Exception:
        # pipeline_mode=pl.Buffered(1) not supported by this JAX build:
        # fall back to default double-buffered weight blocks.
        return _call(False)


# ---------------- pure-JAX reference (mirrors the torch code) ----------------
def ref_forward(x, params, n_heads):
    B, T, E = x.shape
    dh = E // n_heads
    qkv = x @ params["Wqkv"].T + params["bqkv"]                       # (B,T,3E)
    qkv = qkv.reshape(B, T, n_heads, 3 * dh).transpose(0, 2, 1, 3)    # (B,H,T,3dh)
    q, k, v = jnp.split(qkv, 3, axis=-1)
    s = jnp.einsum("bhtd,bhsd->bhts", q, k)
    mask = jnp.tril(jnp.ones((T, T), bool))
    s = jnp.where(mask, s, -jnp.inf) / math.sqrt(dh)
    p = jax.nn.softmax(s, axis=-1)
    o = jnp.einsum("bhts,bhsd->bhtd", p, v).transpose(0, 2, 1, 3).reshape(B, T, E)
    o = jnp.maximum(o @ params["aW1"].T + params["ab1"], 0.0) @ params["aW2"].T + params["ab2"]

    def ln(z, g, b):
        mu = jnp.mean(z, -1, keepdims=True)
        var = jnp.mean((z - mu) ** 2, -1, keepdims=True)
        return (z - mu) / jnp.sqrt(var + 1e-5) * g + b

    out1 = ln(o + x, params["g1"], params["be1"])
    out2 = jnp.maximum(out1 @ params["fW1"].T + params["fb1"], 0.0) @ params["fW2"].T + params["fb2"]
    return ln(out1 + out2, params["g2"], params["be2"])


def init_params(key, E):
    def linear(k, fan_in, fan_out):
        k1, k2 = jax.random.split(k)
        bound = 1.0 / math.sqrt(fan_in)
        W = jax.random.uniform(k1, (fan_out, fan_in), jnp.float32, -bound, bound)
        b = jax.random.uniform(k2, (fan_out,), jnp.float32, -bound, bound)
        return W, b

    keys = jax.random.split(key, 5)
    Wqkv, bqkv = linear(keys[0], E, 3 * E)
    aW1, ab1 = linear(keys[1], E, E)
    aW2, ab2 = linear(keys[2], E, E)
    fW1, fb1 = linear(keys[3], E, E)
    fW2, fb2 = linear(keys[4], E, E)
    ones = jnp.ones((E,), jnp.float32)
    zeros = jnp.zeros((E,), jnp.float32)
    return dict(Wqkv=Wqkv, bqkv=bqkv, aW1=aW1, ab1=ab1, aW2=aW2, ab2=ab2,
                g1=ones, be1=zeros, fW1=fW1, fb1=fb1, fW2=fW2, fb2=fb2,
                g2=ones, be2=zeros)


if __name__ == "__main__":
    B, T, E, H = 2, 16, 32, 4
    key = jax.random.PRNGKey(0)
    kx, kp = jax.random.split(key)
    x = jax.random.normal(kx, (B, T, E), jnp.float32)
    params = init_params(kp, E)

    # f32 compute path, query-tiled grid (B=2) x (T/q_block=2)
    out = block_forward(x, params, n_heads=H, q_block=8)
    out = jax.block_until_ready(out)

    ref = ref_forward(x, params, n_heads=H)
    assert out.shape == (B, T, E)
    # tolerance accounts for the approx EUP reciprocal in the softmax
    assert jnp.allclose(out, ref, rtol=1e-2, atol=1e-2), "f32 kernel mismatch vs reference"

    # bf16-MXU perf path: just verify it compiles/runs and stays finite.
    out_bf16 = block_forward(x, params, n_heads=H, q_block=8,
                             compute_dtype=jnp.bfloat16)
    out_bf16 = jax.block_until_ready(out_bf16)
    assert out_bf16.shape == (B, T, E)
    assert bool(jnp.isfinite(out_bf16).all())

    print("KERNEL_OK")
</pallas_src>

<mosaic_0001>
module attributes {stable_mosaic.version = 11 : i64} {
  func.func @block_kernel(%arg0: i32, %arg1: i32, %arg2: memref<1x8x32xf32, #tpu.memory_space<vmem>>, %arg3: memref<1x16x32xf32, #tpu.memory_space<vmem>>, %arg4: memref<8x16xf32, #tpu.memory_space<vmem>>, %arg5: memref<32x32xf32, #tpu.memory_space<vmem>>, %arg6: memref<1x32xf32, #tpu.memory_space<vmem>>, %arg7: memref<32x64xf32, #tpu.memory_space<vmem>>, %arg8: memref<1x64xf32, #tpu.memory_space<vmem>>, %arg9: memref<32x32xf32, #tpu.memory_space<vmem>>, %arg10: memref<1x32xf32, #tpu.memory_space<vmem>>, %arg11: memref<32x32xf32, #tpu.memory_space<vmem>>, %arg12: memref<1x32xf32, #tpu.memory_space<vmem>>, %arg13: memref<1x32xf32, #tpu.memory_space<vmem>>, %arg14: memref<1x32xf32, #tpu.memory_space<vmem>>, %arg15: memref<32x32xf32, #tpu.memory_space<vmem>>, %arg16: memref<1x32xf32, #tpu.memory_space<vmem>>, %arg17: memref<32x32xf32, #tpu.memory_space<vmem>>, %arg18: memref<1x32xf32, #tpu.memory_space<vmem>>, %arg19: memref<1x32xf32, #tpu.memory_space<vmem>>, %arg20: memref<1x32xf32, #tpu.memory_space<vmem>>, %arg21: memref<1x8x32xf32, #tpu.memory_space<vmem>>, %arg22: memref<8x32xf32, #tpu.memory_space<vmem>>) attributes {dimension_semantics = [#tpu.dimension_semantics<parallel>, #tpu.dimension_semantics<parallel>], iteration_bounds = array<i64: 2, 2>, scalar_prefetch = 0 : i64, scratch_operands = 1 : i64, tpu.core_type = #tpu.core_type<tc>, window_params = [{transform_indices = @transform_0, window_bounds = array<i64: 1, 8, 32>}, {transform_indices = @transform_1, window_bounds = array<i64: 1, 16, 32>}, {transform_indices = @transform_2, window_bounds = array<i64: 8, 16>}, {pipeline_mode = #tpu.pipeline_mode<synchronous>, transform_indices = @transform_3, window_bounds = array<i64: 32, 32>}, {pipeline_mode = #tpu.pipeline_mode<synchronous>, transform_indices = @transform_4, window_bounds = array<i64: 1, 32>}, {pipeline_mode = #tpu.pipeline_mode<synchronous>, transform_indices = @transform_5, window_bounds = array<i64: 32, 64>}, {pipeline_mode = #tpu.pipeline_mode<synchronous>, transform_indices = @transform_6, window_bounds = array<i64: 1, 64>}, {pipeline_mode = #tpu.pipeline_mode<synchronous>, transform_indices = @transform_7, window_bounds = array<i64: 32, 32>}, {pipeline_mode = #tpu.pipeline_mode<synchronous>, transform_indices = @transform_8, window_bounds = array<i64: 1, 32>}, {pipeline_mode = #tpu.pipeline_mode<synchronous>, transform_indices = @transform_9, window_bounds = array<i64: 32, 32>}, {pipeline_mode = #tpu.pipeline_mode<synchronous>, transform_indices = @transform_10, window_bounds = array<i64: 1, 32>}, {pipeline_mode = #tpu.pipeline_mode<synchronous>, transform_indices = @transform_11, window_bounds = array<i64: 1, 32>}, {pipeline_mode = #tpu.pipeline_mode<synchronous>, transform_indices = @transform_12, window_bounds = array<i64: 1, 32>}, {pipeline_mode = #tpu.pipeline_mode<synchronous>, transform_indices = @transform_13, window_bounds = array<i64: 32, 32>}, {pipeline_mode = #tpu.pipeline_mode<synchronous>, transform_indices = @transform_14, window_bounds = array<i64: 1, 32>}, {pipeline_mode = #tpu.pipeline_mode<synchronous>, transform_indices = @transform_15, window_bounds = array<i64: 32, 32>}, {pipeline_mode = #tpu.pipeline_mode<synchronous>, transform_indices = @transform_16, window_bounds = array<i64: 1, 32>}, {pipeline_mode = #tpu.pipeline_mode<synchronous>, transform_indices = @transform_17, window_bounds = array<i64: 1, 32>}, {pipeline_mode = #tpu.pipeline_mode<synchronous>, transform_indices = @transform_18, window_bounds = array<i64: 1, 32>}, {transform_indices = @transform_19, window_bounds = array<i64: 1, 8, 32>}]} {
    %c0 = arith.constant 0 : index
    %c0_0 = arith.constant 0 : index
    %c0_1 = arith.constant 0 : index
    %0 = vector.load %arg2[%c0, %c0_0, %c0_1] : memref<1x8x32xf32, #tpu.memory_space<vmem>>, vector<1x8x32xf32>
    %1 = vector.shape_cast %0 : vector<1x8x32xf32> to vector<8x32xf32>
    %c0_2 = arith.constant 0 : index
    %c0_3 = arith.constant 0 : index
    %2 = vector.load %arg5[%c0_2, %c0_3] : memref<32x32xf32, #tpu.memory_space<vmem>>, vector<32x32xf32>
    %cst = arith.constant dense<0.000000e+00> : vector<8x32xf32>
    %3 = tpu.matmul %1, %2, %cst {dimension_numbers = #tpu.dot_dimension_numbers<[1], [0], [0], [1], [0, 0, 1, 1], [], []>} : vector<8x32xf32>, vector<32x32xf32>, vector<8x32xf32> -> vector<8x32xf32>
    %c0_4 = arith.constant 0 : index
    %c0_5 = arith.constant 0 : index
    %4 = vector.load %arg6[%c0_4, %c0_5] : memref<1x32xf32, #tpu.memory_space<vmem>>, vector<1x32xf32>
    %5 = vector.broadcast %4 : vector<1x32xf32> to vector<8x32xf32>
    %6 = arith.addf %3, %5 : vector<8x32xf32>
    %cst_6 = arith.constant 0.353553385 : f32
    %7 = vector.broadcast %cst_6 : f32 to vector<8x32xf32>
    %8 = arith.mulf %6, %7 : vector<8x32xf32>
    %c0_7 = arith.constant 0 : index
    %c0_8 = arith.constant 0 : index
    %c0_9 = arith.constant 0 : index
    %9 = vector.load %arg3[%c0_7, %c0_8, %c0_9] : memref<1x16x32xf32, #tpu.memory_space<vmem>>, vector<1x16x32xf32>
    %10 = vector.shape_cast %9 : vector<1x16x32xf32> to vector<16x32xf32>
    %c0_10 = arith.constant 0 : index
    %c0_11 = arith.constant 0 : index
    %11 = vector.load %arg7[%c0_10, %c0_11] : memref<32x64xf32, #tpu.memory_space<vmem>>, vector<32x64xf32>
    %cst_12 = arith.constant dense<0.000000e+00> : vector<16x64xf32>
    %12 = tpu.matmul %10, %11, %cst_12 {dimension_numbers = #tpu.dot_dimension_numbers<[1], [0], [0], [1], [0, 0, 1, 1], [], []>} : vector<16x32xf32>, vector<32x64xf32>, vector<16x64xf32> -> vector<16x64xf32>
    %c0_13 = arith.constant 0 : index
    %c0_14 = arith.constant 0 : index
    %13 = vector.load %arg8[%c0_13, %c0_14] : memref<1x64xf32, #tpu.memory_space<vmem>>, vector<1x64xf32>
    %14 = vector.broadcast %13 : vector<1x64xf32> to vector<16x64xf32>
    %15 = arith.addf %12, %14 : vector<16x64xf32>
    %c0_15 = arith.constant 0 : index
    %c0_16 = arith.constant 0 : index
    %16 = vector.load %arg4[%c0_15, %c0_16] : memref<8x16xf32, #tpu.memory_space<vmem>>, vector<8x16xf32>
    %17 = vector.extract_strided_slice %8 {offsets = [0, 0], sizes = [8, 8], strides = [1, 1]} : vector<8x32xf32> to vector<8x8xf32>
    %18 = vector.extract_strided_slice %15 {offsets = [0, 0], sizes = [16, 8], strides = [1, 1]} : vector<16x64xf32> to vector<16x8xf32>
    %19 = vector.extract_strided_slice %15 {offsets = [0, 32], sizes = [16, 8], strides = [1, 1]} : vector<16x64xf32> to vector<16x8xf32>
    %cst_17 = arith.constant dense<0.000000e+00> : vector<8x16xf32>
    %20 = tpu.matmul %17, %18, %cst_17 {dimension_numbers = #tpu.dot_dimension_numbers<[1], [1], [0], [0], [0, 0, 1, 0], [], []>} : vector<8x8xf32>, vector<16x8xf32>, vector<8x16xf32> -> vector<8x16xf32>
    %21 = arith.addf %20, %16 : vector<8x16xf32>
    %cst_18 = arith.constant dense<0xFF800000> : vector<8xf32>
    %22 = vector.multi_reduction <maximumf>, %21, %cst_18 [1] : vector<8x16xf32> to vector<8xf32>
    %23 = vector.shape_cast %22 : vector<8xf32> to vector<8x1xf32>
    %24 = vector.broadcast %23 : vector<8x1xf32> to vector<8x16xf32>
    %25 = arith.subf %21, %24 : vector<8x16xf32>
    %26 = math.exp %25 : vector<8x16xf32>
    %cst_19 = arith.constant dense<0.000000e+00> : vector<8xf32>
    %27 = vector.multi_reduction <add>, %26, %cst_19 [1] : vector<8x16xf32> to vector<8xf32>
    %28 = vector.shape_cast %27 : vector<8xf32> to vector<8x1xf32>
    %29 = tpu.reciprocal %28 {approx = true} : vector<8x1xf32> -> vector<8x1xf32>
    %30 = vector.broadcast %29 : vector<8x1xf32> to vector<8x16xf32>
    %31 = arith.mulf %26, %30 : vector<8x16xf32>
    %cst_20 = arith.constant dense<0.000000e+00> : vector<8x8xf32>
    %32 = tpu.matmul %31, %19, %cst_20 {dimension_numbers = #tpu.dot_dimension_numbers<[1], [0], [0], [1], [0, 0, 1, 1], [], []>} : vector<8x16xf32>, vector<16x8xf32>, vector<8x8xf32> -> vector<8x8xf32>
    %c0_21 = arith.constant 0 : index
    %c0_22 = arith.constant 0 : index
    %33 = vector.load %arg22[%c0_21, %c0_22] : memref<8x32xf32, #tpu.memory_space<vmem>>, vector<8x8xf32>
    tpu.vector_store %arg22[%c0_21, %c0_22], %32 {strides = array<i32>} : memref<8x32xf32, #tpu.memory_space<vmem>>, vector<8x8xf32>,
    %34 = vector.extract_strided_slice %8 {offsets = [0, 8], sizes = [8, 8], strides = [1, 1]} : vector<8x32xf32> to vector<8x8xf32>
    %35 = vector.extract_strided_slice %15 {offsets = [0, 8], sizes = [16, 8], strides = [1, 1]} : vector<16x64xf32> to vector<16x8xf32>
    %36 = vector.extract_strided_slice %15 {offsets = [0, 40], sizes = [16, 8], strides = [1, 1]} : vector<16x64xf32> to vector<16x8xf32>
    %cst_23 = arith.constant dense<0.000000e+00> : vector<8x16xf32>
    %37 = tpu.matmul %34, %35, %cst_23 {dimension_numbers = #tpu.dot_dimension_numbers<[1], [1], [0], [0], [0, 0, 1, 0], [], []>} : vector<8x8xf32>, vector<16x8xf32>, vector<8x16xf32> -> vector<8x16xf32>
    %38 = arith.addf %37, %16 : vector<8x16xf32>
    %cst_24 = arith.constant dense<0xFF800000> : vector<8xf32>
    %39 = vector.multi_reduction <maximumf>, %38, %cst_24 [1] : vector<8x16xf32> to vector<8xf32>
    %40 = vector.shape_cast %39 : vector<8xf32> to vector<8x1xf32>
    %41 = vector.broadcast %40 : vector<8x1xf32> to vector<8x16xf32>
    %42 = arith.subf %38, %41 : vector<8x16xf32>
    %43 = math.exp %42 : vector<8x16xf32>
    %cst_25 = arith.constant dense<0.000000e+00> : vector<8xf32>
    %44 = vector.multi_reduction <add>, %43, %cst_25 [1] : vector<8x16xf32> to vector<8xf32>
    %45 = vector.shape_cast %44 : vector<8xf32> to vector<8x1xf32>
    %46 = tpu.reciprocal %45 {approx = true} : vector<8x1xf32> -> vector<8x1xf32>
    %47 = vector.broadcast %46 : vector<8x1xf32> to vector<8x16xf32>
    %48 = arith.mulf %43, %47 : vector<8x16xf32>
    %cst_26 = arith.constant dense<0.000000e+00> : vector<8x8xf32>
    %49 = tpu.matmul %48, %36, %cst_26 {dimension_numbers = #tpu.dot_dimension_numbers<[1], [0], [0], [1], [0, 0, 1, 1], [], []>} : vector<8x16xf32>, vector<16x8xf32>, vector<8x8xf32> -> vector<8x8xf32>
    %c0_27 = arith.constant 0 : index
    %c8 = arith.constant 8 : index
    %50 = vector.load %arg22[%c0_27, %c8] : memref<8x32xf32, #tpu.memory_space<vmem>>, vector<8x8xf32>
    tpu.vector_store %arg22[%c0_27, %c8], %49 {strides = array<i32>} : memref<8x32xf32, #tpu.memory_space<vmem>>, vector<8x8xf32>,
    %51 = vector.extract_strided_slice %8 {offsets = [0, 16], sizes = [8, 8], strides = [1, 1]} : vector<8x32xf32> to vector<8x8xf32>
    %52 = vector.extract_strided_slice %15 {offsets = [0, 16], sizes = [16, 8], strides = [1, 1]} : vector<16x64xf32> to vector<16x8xf32>
    %53 = vector.extract_strided_slice %15 {offsets = [0, 48], sizes = [16, 8], strides = [1, 1]} : vector<16x64xf32> to vector<16x8xf32>
    %cst_28 = arith.constant dense<0.000000e+00> : vector<8x16xf32>
    %54 = tpu.matmul %51, %52, %cst_28 {dimension_numbers = #tpu.dot_dimension_numbers<[1], [1], [0], [0], [0, 0, 1, 0], [], []>} : vector<8x8xf32>, vector<16x8xf32>, vector<8x16xf32> -> vector<8x16xf32>
    %55 = arith.addf %54, %16 : vector<8x16xf32>
    %cst_29 = arith.constant dense<0xFF800000> : vector<8xf32>
    %56 = vector.multi_reduction <maximumf>, %55, %cst_29 [1] : vector<8x16xf32> to vector<8xf32>
    %57 = vector.shape_cast %56 : vector<8xf32> to vector<8x1xf32>
    %58 = vector.broadcast %57 : vector<8x1xf32> to vector<8x16xf32>
    %59 = arith.subf %55, %58 : vector<8x16xf32>
    %60 = math.exp %59 : vector<8x16xf32>
    %cst_30 = arith.constant dense<0.000000e+00> : vector<8xf32>
    %61 = vector.multi_reduction <add>, %60, %cst_30 [1] : vector<8x16xf32> to vector<8xf32>
    %62 = vector.shape_cast %61 : vector<8xf32> to vector<8x1xf32>
    %63 = tpu.reciprocal %62 {approx = true} : vector<8x1xf32> -> vector<8x1xf32>
    %64 = vector.broadcast %63 : vector<8x1xf32> to vector<8x16xf32>
    %65 = arith.mulf %60, %64 : vector<8x16xf32>
    %cst_31 = arith.constant dense<0.000000e+00> : vector<8x8xf32>
    %66 = tpu.matmul %65, %53, %cst_31 {dimension_numbers = #tpu.dot_dimension_numbers<[1], [0], [0], [1], [0, 0, 1, 1], [], []>} : vector<8x16xf32>, vector<16x8xf32>, vector<8x8xf32> -> vector<8x8xf32>
    %c0_32 = arith.constant 0 : index
    %c16 = arith.constant 16 : index
    %67 = vector.load %arg22[%c0_32, %c16] : memref<8x32xf32, #tpu.memory_space<vmem>>, vector<8x8xf32>
    tpu.vector_store %arg22[%c0_32, %c16], %66 {strides = array<i32>} : memref<8x32xf32, #tpu.memory_space<vmem>>, vector<8x8xf32>,
    %68 = vector.extract_strided_slice %8 {offsets = [0, 24], sizes = [8, 8], strides = [1, 1]} : vector<8x32xf32> to vector<8x8xf32>
    %69 = vector.extract_strided_slice %15 {offsets = [0, 24], sizes = [16, 8], strides = [1, 1]} : vector<16x64xf32> to vector<16x8xf32>
    %70 = vector.extract_strided_slice %15 {offsets = [0, 56], sizes = [16, 8], strides = [1, 1]} : vector<16x64xf32> to vector<16x8xf32>
    %cst_33 = arith.constant dense<0.000000e+00> : vector<8x16xf32>
    %71 = tpu.matmul %68, %69, %cst_33 {dimension_numbers = #tpu.dot_dimension_numbers<[1], [1], [0], [0], [0, 0, 1, 0], [], []>} : vector<8x8xf32>, vector<16x8xf32>, vector<8x16xf32> -> vector<8x16xf32>
    %72 = arith.addf %71, %16 : vector<8x16xf32>
    %cst_34 = arith.constant dense<0xFF800000> : vector<8xf32>
    %73 = vector.multi_reduction <maximumf>, %72, %cst_34 [1] : vector<8x16xf32> to vector<8xf32>
    %74 = vector.shape_cast %73 : vector<8xf32> to vector<8x1xf32>
    %75 = vector.broadcast %74 : vector<8x1xf32> to vector<8x16xf32>
    %76 = arith.subf %72, %75 : vector<8x16xf32>
    %77 = math.exp %76 : vector<8x16xf32>
    %cst_35 = arith.constant dense<0.000000e+00> : vector<8xf32>
    %78 = vector.multi_reduction <add>, %77, %cst_35 [1] : vector<8x16xf32> to vector<8xf32>
    %79 = vector.shape_cast %78 : vector<8xf32> to vector<8x1xf32>
    %80 = tpu.reciprocal %79 {approx = true} : vector<8x1xf32> -> vector<8x1xf32>
    %81 = vector.broadcast %80 : vector<8x1xf32> to vector<8x16xf32>
    %82 = arith.mulf %77, %81 : vector<8x16xf32>
    %cst_36 = arith.constant dense<0.000000e+00> : vector<8x8xf32>
    %83 = tpu.matmul %82, %70, %cst_36 {dimension_numbers = #tpu.dot_dimension_numbers<[1], [0], [0], [1], [0, 0, 1, 1], [], []>} : vector<8x16xf32>, vector<16x8xf32>, vector<8x8xf32> -> vector<8x8xf32>
    %c0_37 = arith.constant 0 : index
    %c24 = arith.constant 24 : index
    %84 = vector.load %arg22[%c0_37, %c24] : memref<8x32xf32, #tpu.memory_space<vmem>>, vector<8x8xf32>
    tpu.vector_store %arg22[%c0_37, %c24], %83 {strides = array<i32>} : memref<8x32xf32, #tpu.memory_space<vmem>>, vector<8x8xf32>,
    %c0_38 = arith.constant 0 : index
    %c0_39 = arith.constant 0 : index
    %85 = vector.load %arg22[%c0_38, %c0_39] : memref<8x32xf32, #tpu.memory_space<vmem>>, vector<8x32xf32>
    %c0_40 = arith.constant 0 : index
    %c0_41 = arith.constant 0 : index
    %86 = vector.load %arg9[%c0_40, %c0_41] : memref<32x32xf32, #tpu.memory_space<vmem>>, vector<32x32xf32>
    %cst_42 = arith.constant dense<0.000000e+00> : vector<8x32xf32>
    %87 = tpu.matmul %85, %86, %cst_42 {dimension_numbers = #tpu.dot_dimension_numbers<[1], [0], [0], [1], [0, 0, 1, 1], [], []>} : vector<8x32xf32>, vector<32x32xf32>, vector<8x32xf32> -> vector<8x32xf32>
    %c0_43 = arith.constant 0 : index
    %c0_44 = arith.constant 0 : index
    %88 = vector.load %arg10[%c0_43, %c0_44] : memref<1x32xf32, #tpu.memory_space<vmem>>, vector<1x32xf32>
    %89 = vector.broadcast %88 : vector<1x32xf32> to vector<8x32xf32>
    %90 = arith.addf %87, %89 : vector<8x32xf32>
    %cst_45 = arith.constant 0.000000e+00 : f32
    %91 = vector.broadcast %cst_45 : f32 to vector<8x32xf32>
    %92 = arith.maximumf %90, %91 : vector<8x32xf32>
    %c0_46 = arith.constant 0 : index
    %c0_47 = arith.constant 0 : index
    %93 = vector.load %arg11[%c0_46, %c0_47] : memref<32x32xf32, #tpu.memory_space<vmem>>, vector<32x32xf32>
    %cst_48 = arith.constant dense<0.000000e+00> : vector<8x32xf32>
    %94 = tpu.matmul %92, %93, %cst_48 {dimension_numbers = #tpu.dot_dimension_numbers<[1], [0], [0], [1], [0, 0, 1, 1], [], []>} : vector<8x32xf32>, vector<32x32xf32>, vector<8x32xf32> -> vector<8x32xf32>
    %c0_49 = arith.constant 0 : index
    %c0_50 = arith.constant 0 : index
    %95 = vector.load %arg12[%c0_49, %c0_50] : memref<1x32xf32, #tpu.memory_space<vmem>>, vector<1x32xf32>
    %96 = vector.broadcast %95 : vector<1x32xf32> to vector<8x32xf32>
    %97 = arith.addf %94, %96 : vector<8x32xf32>
    %98 = arith.addf %97, %1 : vector<8x32xf32>
    %c0_51 = arith.constant 0 : index
    %c0_52 = arith.constant 0 : index
    %99 = vector.load %arg13[%c0_51, %c0_52] : memref<1x32xf32, #tpu.memory_space<vmem>>, vector<1x32xf32>
    %c0_53 = arith.constant 0 : index
    %c0_54 = arith.constant 0 : index
    %100 = vector.load %arg14[%c0_53, %c0_54] : memref<1x32xf32, #tpu.memory_space<vmem>>, vector<1x32xf32>
    %cst_55 = arith.constant dense<0.000000e+00> : vector<8xf32>
    %101 = vector.multi_reduction <add>, %98, %cst_55 [1] : vector<8x32xf32> to vector<8xf32>
    %102 = vector.shape_cast %101 : vector<8xf32> to vector<8x1xf32>
    %cst_56 = arith.constant 3.200000e+01 : f32
    %103 = vector.broadcast %cst_56 : f32 to vector<8x1xf32>
    %104 = arith.divf %102, %103 : vector<8x1xf32>
    %105 = vector.broadcast %104 : vector<8x1xf32> to vector<8x32xf32>
    %106 = arith.subf %98, %105 : vector<8x32xf32>
    %107 = arith.mulf %106, %106 : vector<8x32xf32>
    %cst_57 = arith.constant dense<0.000000e+00> : vector<8xf32>
    %108 = vector.multi_reduction <add>, %107, %cst_57 [1] : vector<8x32xf32> to vector<8xf32>
    %109 = vector.shape_cast %108 : vector<8xf32> to vector<8x1xf32>
    %cst_58 = arith.constant 3.200000e+01 : f32
    %110 = vector.broadcast %cst_58 : f32 to vector<8x1xf32>
    %111 = arith.divf %109, %110 : vector<8x1xf32>
    %112 = vector.broadcast %104 : vector<8x1xf32> to vector<8x32xf32>
    %113 = arith.subf %98, %112 : vector<8x32xf32>
    %cst_59 = arith.constant 9.99999974E-6 : f32
    %114 = vector.broadcast %cst_59 : f32 to vector<8x1xf32>
    %115 = arith.addf %111, %114 : vector<8x1xf32>
    %116 = math.rsqrt %115 : vector<8x1xf32>
    %117 = vector.broadcast %116 : vector<8x1xf32> to vector<8x32xf32>
    %118 = arith.mulf %113, %117 : vector<8x32xf32>
    %119 = vector.broadcast %99 : vector<1x32xf32> to vector<8x32xf32>
    %120 = arith.mulf %118, %119 : vector<8x32xf32>
    %121 = vector.broadcast %100 : vector<1x32xf32> to vector<8x32xf32>
    %122 = arith.addf %120, %121 : vector<8x32xf32>
    %c0_60 = arith.constant 0 : index
    %c0_61 = arith.constant 0 : index
    %123 = vector.load %arg15[%c0_60, %c0_61] : memref<32x32xf32, #tpu.memory_space<vmem>>, vector<32x32xf32>
    %cst_62 = arith.constant dense<0.000000e+00> : vector<8x32xf32>
    %124 = tpu.matmul %122, %123, %cst_62 {dimension_numbers = #tpu.dot_dimension_numbers<[1], [0], [0], [1], [0, 0, 1, 1], [], []>} : vector<8x32xf32>, vector<32x32xf32>, vector<8x32xf32> -> vector<8x32xf32>
    %c0_63 = arith.constant 0 : index
    %c0_64 = arith.constant 0 : index
    %125 = vector.load %arg16[%c0_63, %c0_64] : memref<1x32xf32, #tpu.memory_space<vmem>>, vector<1x32xf32>
    %126 = vector.broadcast %125 : vector<1x32xf32> to vector<8x32xf32>
    %127 = arith.addf %124, %126 : vector<8x32xf32>
    %cst_65 = arith.constant 0.000000e+00 : f32
    %128 = vector.broadcast %cst_65 : f32 to vector<8x32xf32>
    %129 = arith.maximumf %127, %128 : vector<8x32xf32>
    %c0_66 = arith.constant 0 : index
    %c0_67 = arith.constant 0 : index
    %130 = vector.load %arg17[%c0_66, %c0_67] : memref<32x32xf32, #tpu.memory_space<vmem>>, vector<32x32xf32>
    %cst_68 = arith.constant dense<0.000000e+00> : vector<8x32xf32>
    %131 = tpu.matmul %129, %130, %cst_68 {dimension_numbers = #tpu.dot_dimension_numbers<[1], [0], [0], [1], [0, 0, 1, 1], [], []>} : vector<8x32xf32>, vector<32x32xf32>, vector<8x32xf32> -> vector<8x32xf32>
    %c0_69 = arith.constant 0 : index
    %c0_70 = arith.constant 0 : index
    %132 = vector.load %arg18[%c0_69, %c0_70] : memref<1x32xf32, #tpu.memory_space<vmem>>, vector<1x32xf32>
    %133 = vector.broadcast %132 : vector<1x32xf32> to vector<8x32xf32>
    %134 = arith.addf %131, %133 : vector<8x32xf32>
    %135 = arith.addf %122, %134 : vector<8x32xf32>
    %c0_71 = arith.constant 0 : index
    %c0_72 = arith.constant 0 : index
    %136 = vector.load %arg19[%c0_71, %c0_72] : memref<1x32xf32, #tpu.memory_space<vmem>>, vector<1x32xf32>
    %c0_73 = arith.constant 0 : index
    %c0_74 = arith.constant 0 : index
    %137 = vector.load %arg20[%c0_73, %c0_74] : memref<1x32xf32, #tpu.memory_space<vmem>>, vector<1x32xf32>
    %cst_75 = arith.constant dense<0.000000e+00> : vector<8xf32>
    %138 = vector.multi_reduction <add>, %135, %cst_75 [1] : vector<8x32xf32> to vector<8xf32>
    %139 = vector.shape_cast %138 : vector<8xf32> to vector<8x1xf32>
    %cst_76 = arith.constant 3.200000e+01 : f32
    %140 = vector.broadcast %cst_76 : f32 to vector<8x1xf32>
    %141 = arith.divf %139, %140 : vector<8x1xf32>
    %142 = vector.broadcast %141 : vector<8x1xf32> to vector<8x32xf32>
    %143 = arith.subf %135, %142 : vector<8x32xf32>
    %144 = arith.mulf %143, %143 : vector<8x32xf32>
    %cst_77 = arith.constant dense<0.000000e+00> : vector<8xf32>
    %145 = vector.multi_reduction <add>, %144, %cst_77 [1] : vector<8x32xf32> to vector<8xf32>
    %146 = vector.shape_cast %145 : vector<8xf32> to vector<8x1xf32>
    %cst_78 = arith.constant 3.200000e+01 : f32
    %147 = vector.broadcast %cst_78 : f32 to vector<8x1xf32>
    %148 = arith.divf %146, %147 : vector<8x1xf32>
    %149 = vector.broadcast %141 : vector<8x1xf32> to vector<8x32xf32>
    %150 = arith.subf %135, %149 : vector<8x32xf32>
    %cst_79 = arith.constant 9.99999974E-6 : f32
    %151 = vector.broadcast %cst_79 : f32 to vector<8x1xf32>
    %152 = arith.addf %148, %151 : vector<8x1xf32>
    %153 = math.rsqrt %152 : vector<8x1xf32>
    %154 = vector.broadcast %153 : vector<8x1xf32> to vector<8x32xf32>
    %155 = arith.mulf %150, %154 : vector<8x32xf32>
    %156 = vector.broadcast %136 : vector<1x32xf32> to vector<8x32xf32>
    %157 = arith.mulf %155, %156 : vector<8x32xf32>
    %158 = vector.broadcast %137 : vector<1x32xf32> to vector<8x32xf32>
    %159 = arith.addf %157, %158 : vector<8x32xf32>
    %c0_80 = arith.constant 0 : index
    %c0_81 = arith.constant 0 : index
    %c0_82 = arith.constant 0 : index
    %160 = vector.load %arg21[%c0_80, %c0_81, %c0_82] : memref<1x8x32xf32, #tpu.memory_space<vmem>>, vector<1x8x32xf32>
    %161 = vector.shape_cast %160 : vector<1x8x32xf32> to vector<8x32xf32>
    %162 = vector.shape_cast %159 : vector<8x32xf32> to vector<1x8x32xf32>
    tpu.vector_store %arg21[%c0_80, %c0_81, %c0_82], %162 {strides = array<i32>} : memref<1x8x32xf32, #tpu.memory_space<vmem>>, vector<1x8x32xf32>,
    return
  }
  func.func @transform_0(%arg0: i32, %arg1: i32) -> (i32, i32, i32) {
    %c0_i32 = arith.constant 0 : i32
    %c0_i32_0 = arith.constant 0 : i32
    return %arg0, %arg1, %c0_i32 : i32, i32, i32
  }
  func.func @transform_1(%arg0: i32, %arg1: i32) -> (i32, i32, i32) {
    %c0_i32 = arith.constant 0 : i32
    %c0_i32_0 = arith.constant 0 : i32
    %c0_i32_1 = arith.constant 0 : i32
    return %arg0, %c0_i32, %c0_i32_0 : i32, i32, i32
  }
  func.func @transform_2(%arg0: i32, %arg1: i32) -> (i32, i32) {
    %c0_i32 = arith.constant 0 : i32
    %c0_i32_0 = arith.constant 0 : i32
    return %arg1, %c0_i32 : i32, i32
  }
  func.func @transform_3(%arg0: i32, %arg1: i32) -> (i32, i32) {
    %c0_i32 = arith.constant 0 : i32
    %c0_i32_0 = arith.constant 0 : i32
    %c0_i32_1 = arith.constant 0 : i32
    return %c0_i32, %c0_i32_0 : i32, i32
  }
  func.func @transform_4(%arg0: i32, %arg1: i32) -> (i32, i32) {
    %c0_i32 = arith.constant 0 : i32
    %c0_i32_0 = arith.constant 0 : i32
    %c0_i32_1 = arith.constant 0 : i32
    return %c0_i32, %c0_i32_0 : i32, i32
  }
  func.func @transform_5(%arg0: i32, %arg1: i32) -> (i32, i32) {
    %c0_i32 = arith.constant 0 : i32
    %c0_i32_0 = arith.constant 0 : i32
    %c0_i32_1 = arith.constant 0 : i32
    return %c0_i32, %c0_i32_0 : i32, i32
  }
  func.func @transform_6(%arg0: i32, %arg1: i32) -> (i32, i32) {
    %c0_i32 = arith.constant 0 : i32
    %c0_i32_0 = arith.constant 0 : i32
    %c0_i32_1 = arith.constant 0 : i32
    return %c0_i32, %c0_i32_0 : i32, i32
  }
  func.func @transform_7(%arg0: i32, %arg1: i32) -> (i32, i32) {
    %c0_i32 = arith.constant 0 : i32
    %c0_i32_0 = arith.constant 0 : i32
    %c0_i32_1 = arith.constant 0 : i32
    return %c0_i32, %c0_i32_0 : i32, i32
  }
  func.func @transform_8(%arg0: i32, %arg1: i32) -> (i32, i32) {
    %c0_i32 = arith.constant 0 : i32
    %c0_i32_0 = arith.constant 0 : i32
    %c0_i32_1 = arith.constant 0 : i32
    return %c0_i32, %c0_i32_0 : i32, i32
  }
  func.func @transform_9(%arg0: i32, %arg1: i32) -> (i32, i32) {
    %c0_i32 = arith.constant 0 : i32
    %c0_i32_0 = arith.constant 0 : i32
    %c0_i32_1 = arith.constant 0 : i32
    return %c0_i32, %c0_i32_0 : i32, i32
  }
  func.func @transform_10(%arg0: i32, %arg1: i32) -> (i32, i32) {
    %c0_i32 = arith.constant 0 : i32
    %c0_i32_0 = arith.constant 0 : i32
    %c0_i32_1 = arith.constant 0 : i32
    return %c0_i32, %c0_i32_0 : i32, i32
  }
  func.func @transform_11(%arg0: i32, %arg1: i32) -> (i32, i32) {
    %c0_i32 = arith.constant 0 : i32
    %c0_i32_0 = arith.constant 0 : i32
    %c0_i32_1 = arith.constant 0 : i32
    return %c0_i32, %c0_i32_0 : i32, i32
  }
  func.func @transform_12(%arg0: i32, %arg1: i32) -> (i32, i32) {
    %c0_i32 = arith.constant 0 : i32
    %c0_i32_0 = arith.constant 0 : i32
    %c0_i32_1 = arith.constant 0 : i32
    return %c0_i32, %c0_i32_0 : i32, i32
  }
  func.func @transform_13(%arg0: i32, %arg1: i32) -> (i32, i32) {
    %c0_i32 = arith.constant 0 : i32
    %c0_i32_0 = arith.constant 0 : i32
    %c0_i32_1 = arith.constant 0 : i32
    return %c0_i32, %c0_i32_0 : i32, i32
  }
  func.func @transform_14(%arg0: i32, %arg1: i32) -> (i32, i32) {
    %c0_i32 = arith.constant 0 : i32
    %c0_i32_0 = arith.constant 0 : i32
    %c0_i32_1 = arith.constant 0 : i32
    return %c0_i32, %c0_i32_0 : i32, i32
  }
  func.func @transform_15(%arg0: i32, %arg1: i32) -> (i32, i32) {
    %c0_i32 = arith.constant 0 : i32
    %c0_i32_0 = arith.constant 0 : i32
    %c0_i32_1 = arith.constant 0 : i32
    return %c0_i32, %c0_i32_0 : i32, i32
  }
  func.func @transform_16(%arg0: i32, %arg1: i32) -> (i32, i32) {
    %c0_i32 = arith.constant 0 : i32
    %c0_i32_0 = arith.constant 0 : i32
    %c0_i32_1 = arith.constant 0 : i32
    return %c0_i32, %c0_i32_0 : i32, i32
  }
  func.func @transform_17(%arg0: i32, %arg1: i32) -> (i32, i32) {
    %c0_i32 = arith.constant 0 : i32
    %c0_i32_0 = arith.constant 0 : i32
    %c0_i32_1 = arith.constant 0 : i32
    return %c0_i32, %c0_i32_0 : i32, i32
  }
  func.func @transform_18(%arg0: i32, %arg1: i32) -> (i32, i32) {
    %c0_i32 = arith.constant 0 : i32
    %c0_i32_0 = arith.constant 0 : i32
    %c0_i32_1 = arith.constant 0 : i32
    return %c0_i32, %c0_i32_0 : i32, i32
  }
  func.func @transform_19(%arg0: i32, %arg1: i32) -> (i32, i32, i32) {
    %c0_i32 = arith.constant 0 : i32
    %c0_i32_0 = arith.constant 0 : i32
    return %arg0, %arg1, %c0_i32 : i32, i32, i32
  }
}

module attributes {stable_mosaic.version = 11 : i64} {
  func.func @block_kernel(%arg0: i32, %arg1: i32, %arg2: memref<1x8x32xf32, #tpu.memory_space<vmem>>, %arg3: memref<1x16x32xf32, #tpu.memory_space<vmem>>, %arg4: memref<8x16xf32, #tpu.memory_space<vmem>>, %arg5: memref<32x32xf32, #tpu.memory_space<vmem>>, %arg6: memref<1x32xf32, #tpu.memory_space<vmem>>, %arg7: memref<32x64xf32, #tpu.memory_space<vmem>>, %arg8: memref<1x64xf32, #tpu.memory_space<vmem>>, %arg9: memref<32x32xf32, #tpu.memory_space<vmem>>, %arg10: memref<1x32xf32, #tpu.memory_space<vmem>>, %arg11: memref<32x32xf32, #tpu.memory_space<vmem>>, %arg12: memref<1x32xf32, #tpu.memory_space<vmem>>, %arg13: memref<1x32xf32, #tpu.memory_space<vmem>>, %arg14: memref<1x32xf32, #tpu.memory_space<vmem>>, %arg15: memref<32x32xf32, #tpu.memory_space<vmem>>, %arg16: memref<1x32xf32, #tpu.memory_space<vmem>>, %arg17: memref<32x32xf32, #tpu.memory_space<vmem>>, %arg18: memref<1x32xf32, #tpu.memory_space<vmem>>, %arg19: memref<1x32xf32, #tpu.memory_space<vmem>>, %arg20: memref<1x32xf32, #tpu.memory_space<vmem>>, %arg21: memref<1x8x32xf32, #tpu.memory_space<vmem>>, %arg22: memref<8x32xf32, #tpu.memory_space<vmem>>) attributes {dimension_semantics = [#tpu.dimension_semantics<parallel>, #tpu.dimension_semantics<parallel>], iteration_bounds = array<i64: 2, 2>, scalar_prefetch = 0 : i64, scratch_operands = 1 : i64, tpu.core_type = #tpu.core_type<tc>, window_params = [{transform_indices = @transform_0, window_bounds = array<i64: 1, 8, 32>}, {transform_indices = @transform_1, window_bounds = array<i64: 1, 16, 32>}, {transform_indices = @transform_2, window_bounds = array<i64: 8, 16>}, {pipeline_mode = #tpu.pipeline_mode<synchronous>, transform_indices = @transform_3, window_bounds = array<i64: 32, 32>}, {pipeline_mode = #tpu.pipeline_mode<synchronous>, transform_indices = @transform_4, window_bounds = array<i64: 1, 32>}, {pipeline_mode = #tpu.pipeline_mode<synchronous>, transform_indices = @transform_5, window_bounds = array<i64: 32, 64>}, {pipeline_mode = #tpu.pipeline_mode<synchronous>, transform_indices = @transform_6, window_bounds = array<i64: 1, 64>}, {pipeline_mode = #tpu.pipeline_mode<synchronous>, transform_indices = @transform_7, window_bounds = array<i64: 32, 32>}, {pipeline_mode = #tpu.pipeline_mode<synchronous>, transform_indices = @transform_8, window_bounds = array<i64: 1, 32>}, {pipeline_mode = #tpu.pipeline_mode<synchronous>, transform_indices = @transform_9, window_bounds = array<i64: 32, 32>}, {pipeline_mode = #tpu.pipeline_mode<synchronous>, transform_indices = @transform_10, window_bounds = array<i64: 1, 32>}, {pipeline_mode = #tpu.pipeline_mode<synchronous>, transform_indices = @transform_11, window_bounds = array<i64: 1, 32>}, {pipeline_mode = #tpu.pipeline_mode<synchronous>, transform_indices = @transform_12, window_bounds = array<i64: 1, 32>}, {pipeline_mode = #tpu.pipeline_mode<synchronous>, transform_indices = @transform_13, window_bounds = array<i64: 32, 32>}, {pipeline_mode = #tpu.pipeline_mode<synchronous>, transform_indices = @transform_14, window_bounds = array<i64: 1, 32>}, {pipeline_mode = #tpu.pipeline_mode<synchronous>, transform_indices = @transform_15, window_bounds = array<i64: 32, 32>}, {pipeline_mode = #tpu.pipeline_mode<synchronous>, transform_indices = @transform_16, window_bounds = array<i64: 1, 32>}, {pipeline_mode = #tpu.pipeline_mode<synchronous>, transform_indices = @transform_17, window_bounds = array<i64: 1, 32>}, {pipeline_mode = #tpu.pipeline_mode<synchronous>, transform_indices = @transform_18, window_bounds = array<i64: 1, 32>}, {transform_indices = @transform_19, window_bounds = array<i64: 1, 8, 32>}]} {
    %c0 = arith.constant 0 : index
    %c0_0 = arith.constant 0 : index
    %c0_1 = arith.constant 0 : index
    %0 = vector.load %arg2[%c0, %c0_0, %c0_1] : memref<1x8x32xf32, #tpu.memory_space<vmem>>, vector<1x8x32xf32>
    %1 = vector.shape_cast %0 : vector<1x8x32xf32> to vector<8x32xf32>
    %c0_2 = arith.constant 0 : index
    %c0_3 = arith.constant 0 : index
    %2 = vector.load %arg5[%c0_2, %c0_3] : memref<32x32xf32, #tpu.memory_space<vmem>>, vector<32x32xf32>
    %cst = arith.constant dense<0.000000e+00> : vector<8x32xf32>
    %3 = tpu.matmul %1, %2, %cst {dimension_numbers = #tpu.dot_dimension_numbers<[1], [0], [0], [1], [0, 0, 1, 1], [], []>} : vector<8x32xf32>, vector<32x32xf32>, vector<8x32xf32> -> vector<8x32xf32>
    %c0_4 = arith.constant 0 : index
    %c0_5 = arith.constant 0 : index
    %4 = vector.load %arg6[%c0_4, %c0_5] : memref<1x32xf32, #tpu.memory_space<vmem>>, vector<1x32xf32>
    %5 = vector.broadcast %4 : vector<1x32xf32> to vector<8x32xf32>
    %6 = arith.addf %3, %5 : vector<8x32xf32>
    %cst_6 = arith.constant 0.353553385 : f32
    %7 = vector.broadcast %cst_6 : f32 to vector<8x32xf32>
    %8 = arith.mulf %6, %7 : vector<8x32xf32>
    %c0_7 = arith.constant 0 : index
    %c0_8 = arith.constant 0 : index
    %c0_9 = arith.constant 0 : index
    %9 = vector.load %arg3[%c0_7, %c0_8, %c0_9] : memref<1x16x32xf32, #tpu.memory_space<vmem>>, vector<1x16x32xf32>
    %10 = vector.shape_cast %9 : vector<1x16x32xf32> to vector<16x32xf32>
    %c0_10 = arith.constant 0 : index
    %c0_11 = arith.constant 0 : index
    %11 = vector.load %arg7[%c0_10, %c0_11] : memref<32x64xf32, #tpu.memory_space<vmem>>, vector<32x64xf32>
    %cst_12 = arith.constant dense<0.000000e+00> : vector<16x64xf32>
    %12 = tpu.matmul %10, %11, %cst_12 {dimension_numbers = #tpu.dot_dimension_numbers<[1], [0], [0], [1], [0, 0, 1, 1], [], []>} : vector<16x32xf32>, vector<32x64xf32>, vector<16x64xf32> -> vector<16x64xf32>
    %c0_13 = arith.constant 0 : index
    %c0_14 = arith.constant 0 : index
    %13 = vector.load %arg8[%c0_13, %c0_14] : memref<1x64xf32, #tpu.memory_space<vmem>>, vector<1x64xf32>
    %14 = vector.broadcast %13 : vector<1x64xf32> to vector<16x64xf32>
    %15 = arith.addf %12, %14 : vector<16x64xf32>
    %c0_15 = arith.constant 0 : index
    %c0_16 = arith.constant 0 : index
    %16 = vector.load %arg4[%c0_15, %c0_16] : memref<8x16xf32, #tpu.memory_space<vmem>>, vector<8x16xf32>
    %17 = vector.extract_strided_slice %8 {offsets = [0, 0], sizes = [8, 8], strides = [1, 1]} : vector<8x32xf32> to vector<8x8xf32>
    %18 = vector.extract_strided_slice %15 {offsets = [0, 0], sizes = [16, 8], strides = [1, 1]} : vector<16x64xf32> to vector<16x8xf32>
    %19 = vector.extract_strided_slice %15 {offsets = [0, 32], sizes = [16, 8], strides = [1, 1]} : vector<16x64xf32> to vector<16x8xf32>
    %cst_17 = arith.constant dense<0.000000e+00> : vector<8x16xf32>
    %20 = tpu.matmul %17, %18, %cst_17 {dimension_numbers = #tpu.dot_dimension_numbers<[1], [1], [0], [0], [0, 0, 1, 0], [], []>} : vector<8x8xf32>, vector<16x8xf32>, vector<8x16xf32> -> vector<8x16xf32>
    %21 = arith.addf %20, %16 : vector<8x16xf32>
    %cst_18 = arith.constant dense<0xFF800000> : vector<8xf32>
    %22 = vector.multi_reduction <maximumf>, %21, %cst_18 [1] : vector<8x16xf32> to vector<8xf32>
    %23 = vector.shape_cast %22 : vector<8xf32> to vector<8x1xf32>
    %24 = vector.broadcast %23 : vector<8x1xf32> to vector<8x16xf32>
    %25 = arith.subf %21, %24 : vector<8x16xf32>
    %26 = math.exp %25 : vector<8x16xf32>
    %cst_19 = arith.constant dense<0.000000e+00> : vector<8xf32>
    %27 = vector.multi_reduction <add>, %26, %cst_19 [1] : vector<8x16xf32> to vector<8xf32>
    %28 = vector.shape_cast %27 : vector<8xf32> to vector<8x1xf32>
    %29 = tpu.reciprocal %28 {approx = true} : vector<8x1xf32> -> vector<8x1xf32>
    %30 = vector.broadcast %29 : vector<8x1xf32> to vector<8x16xf32>
    %31 = arith.mulf %26, %30 : vector<8x16xf32>
    %cst_20 = arith.constant dense<0.000000e+00> : vector<8x8xf32>
    %32 = tpu.matmul %31, %19, %cst_20 {dimension_numbers = #tpu.dot_dimension_numbers<[1], [0], [0], [1], [0, 0, 1, 1], [], []>} : vector<8x16xf32>, vector<16x8xf32>, vector<8x8xf32> -> vector<8x8xf32>
    %c0_21 = arith.constant 0 : index
    %c0_22 = arith.constant 0 : index
    %33 = vector.load %arg22[%c0_21, %c0_22] : memref<8x32xf32, #tpu.memory_space<vmem>>, vector<8x8xf32>
    tpu.vector_store %arg22[%c0_21, %c0_22], %32 {strides = array<i32>} : memref<8x32xf32, #tpu.memory_space<vmem>>, vector<8x8xf32>,
    %34 = vector.extract_strided_slice %8 {offsets = [0, 8], sizes = [8, 8], strides = [1, 1]} : vector<8x32xf32> to vector<8x8xf32>
    %35 = vector.extract_strided_slice %15 {offsets = [0, 8], sizes = [16, 8], strides = [1, 1]} : vector<16x64xf32> to vector<16x8xf32>
    %36 = vector.extract_strided_slice %15 {offsets = [0, 40], sizes = [16, 8], strides = [1, 1]} : vector<16x64xf32> to vector<16x8xf32>
    %cst_23 = arith.constant dense<0.000000e+00> : vector<8x16xf32>
    %37 = tpu.matmul %34, %35, %cst_23 {dimension_numbers = #tpu.dot_dimension_numbers<[1], [1], [0], [0], [0, 0, 1, 0], [], []>} : vector<8x8xf32>, vector<16x8xf32>, vector<8x16xf32> -> vector<8x16xf32>
    %38 = arith.addf %37, %16 : vector<8x16xf32>
    %cst_24 = arith.constant dense<0xFF800000> : vector<8xf32>
    %39 = vector.multi_reduction <maximumf>, %38, %cst_24 [1] : vector<8x16xf32> to vector<8xf32>
    %40 = vector.shape_cast %39 : vector<8xf32> to vector<8x1xf32>
    %41 = vector.broadcast %40 : vector<8x1xf32> to vector<8x16xf32>
    %42 = arith.subf %38, %41 : vector<8x16xf32>
    %43 = math.exp %42 : vector<8x16xf32>
    %cst_25 = arith.constant dense<0.000000e+00> : vector<8xf32>
    %44 = vector.multi_reduction <add>, %43, %cst_25 [1] : vector<8x16xf32> to vector<8xf32>
    %45 = vector.shape_cast %44 : vector<8xf32> to vector<8x1xf32>
    %46 = tpu.reciprocal %45 {approx = true} : vector<8x1xf32> -> vector<8x1xf32>
    %47 = vector.broadcast %46 : vector<8x1xf32> to vector<8x16xf32>
    %48 = arith.mulf %43, %47 : vector<8x16xf32>
    %cst_26 = arith.constant dense<0.000000e+00> : vector<8x8xf32>
    %49 = tpu.matmul %48, %36, %cst_26 {dimension_numbers = #tpu.dot_dimension_numbers<[1], [0], [0], [1], [0, 0, 1, 1], [], []>} : vector<8x16xf32>, vector<16x8xf32>, vector<8x8xf32> -> vector<8x8xf32>
    %c0_27 = arith.constant 0 : index
    %c8 = arith.constant 8 : index
    %50 = vector.load %arg22[%c0_27, %c8] : memref<8x32xf32, #tpu.memory_space<vmem>>, vector<8x8xf32>
    tpu.vector_store %arg22[%c0_27, %c8], %49 {strides = array<i32>} : memref<8x32xf32, #tpu.memory_space<vmem>>, vector<8x8xf32>,
    %51 = vector.extract_strided_slice %8 {offsets = [0, 16], sizes = [8, 8], strides = [1, 1]} : vector<8x32xf32> to vector<8x8xf32>
    %52 = vector.extract_strided_slice %15 {offsets = [0, 16], sizes = [16, 8], strides = [1, 1]} : vector<16x64xf32> to vector<16x8xf32>
    %53 = vector.extract_strided_slice %15 {offsets = [0, 48], sizes = [16, 8], strides = [1, 1]} : vector<16x64xf32> to vector<16x8xf32>
    %cst_28 = arith.constant dense<0.000000e+00> : vector<8x16xf32>
    %54 = tpu.matmul %51, %52, %cst_28 {dimension_numbers = #tpu.dot_dimension_numbers<[1], [1], [0], [0], [0, 0, 1, 0], [], []>} : vector<8x8xf32>, vector<16x8xf32>, vector<8x16xf32> -> vector<8x16xf32>
    %55 = arith.addf %54, %16 : vector<8x16xf32>
    %cst_29 = arith.constant dense<0xFF800000> : vector<8xf32>
    %56 = vector.multi_reduction <maximumf>, %55, %cst_29 [1] : vector<8x16xf32> to vector<8xf32>
    %57 = vector.shape_cast %56 : vector<8xf32> to vector<8x1xf32>
    %58 = vector.broadcast %57 : vector<8x1xf32> to vector<8x16xf32>
    %59 = arith.subf %55, %58 : vector<8x16xf32>
    %60 = math.exp %59 : vector<8x16xf32>
    %cst_30 = arith.constant dense<0.000000e+00> : vector<8xf32>
    %61 = vector.multi_reduction <add>, %60, %cst_30 [1] : vector<8x16xf32> to vector<8xf32>
    %62 = vector.shape_cast %61 : vector<8xf32> to vector<8x1xf32>
    %63 = tpu.reciprocal %62 {approx = true} : vector<8x1xf32> -> vector<8x1xf32>
    %64 = vector.broadcast %63 : vector<8x1xf32> to vector<8x16xf32>
    %65 = arith.mulf %60, %64 : vector<8x16xf32>
    %cst_31 = arith.constant dense<0.000000e+00> : vector<8x8xf32>
    %66 = tpu.matmul %65, %53, %cst_31 {dimension_numbers = #tpu.dot_dimension_numbers<[1], [0], [0], [1], [0, 0, 1, 1], [], []>} : vector<8x16xf32>, vector<16x8xf32>, vector<8x8xf32> -> vector<8x8xf32>
    %c0_32 = arith.constant 0 : index
    %c16 = arith.constant 16 : index
    %67 = vector.load %arg22[%c0_32, %c16] : memref<8x32xf32, #tpu.memory_space<vmem>>, vector<8x8xf32>
    tpu.vector_store %arg22[%c0_32, %c16], %66 {strides = array<i32>} : memref<8x32xf32, #tpu.memory_space<vmem>>, vector<8x8xf32>,
    %68 = vector.extract_strided_slice %8 {offsets = [0, 24], sizes = [8, 8], strides = [1, 1]} : vector<8x32xf32> to vector<8x8xf32>
    %69 = vector.extract_strided_slice %15 {offsets = [0, 24], sizes = [16, 8], strides = [1, 1]} : vector<16x64xf32> to vector<16x8xf32>
    %70 = vector.extract_strided_slice %15 {offsets = [0, 56], sizes = [16, 8], strides = [1, 1]} : vector<16x64xf32> to vector<16x8xf32>
    %cst_33 = arith.constant dense<0.000000e+00> : vector<8x16xf32>
    %71 = tpu.matmul %68, %69, %cst_33 {dimension_numbers = #tpu.dot_dimension_numbers<[1], [1], [0], [0], [0, 0, 1, 0], [], []>} : vector<8x8xf32>, vector<16x8xf32>, vector<8x16xf32> -> vector<8x16xf32>
    %72 = arith.addf %71, %16 : vector<8x16xf32>
    %cst_34 = arith.constant dense<0xFF800000> : vector<8xf32>
    %73 = vector.multi_reduction <maximumf>, %72, %cst_34 [1] : vector<8x16xf32> to vector<8xf32>
    %74 = vector.shape_cast %73 : vector<8xf32> to vector<8x1xf32>
    %75 = vector.broadcast %74 : vector<8x1xf32> to vector<8x16xf32>
    %76 = arith.subf %72, %75 : vector<8x16xf32>
    %77 = math.exp %76 : vector<8x16xf32>
    %cst_35 = arith.constant dense<0.000000e+00> : vector<8xf32>
    %78 = vector.multi_reduction <add>, %77, %cst_35 [1] : vector<8x16xf32> to vector<8xf32>
    %79 = vector.shape_cast %78 : vector<8xf32> to vector<8x1xf32>
    %80 = tpu.reciprocal %79 {approx = true} : vector<8x1xf32> -> vector<8x1xf32>
    %81 = vector.broadcast %80 : vector<8x1xf32> to vector<8x16xf32>
    %82 = arith.mulf %77, %81 : vector<8x16xf32>
    %cst_36 = arith.constant dense<0.000000e+00> : vector<8x8xf32>
    %83 = tpu.matmul %82, %70, %cst_36 {dimension_numbers = #tpu.dot_dimension_numbers<[1], [0], [0], [1], [0, 0, 1, 1], [], []>} : vector<8x16xf32>, vector<16x8xf32>, vector<8x8xf32> -> vector<8x8xf32>
    %c0_37 = arith.constant 0 : index
    %c24 = arith.constant 24 : index
    %84 = vector.load %arg22[%c0_37, %c24] : memref<8x32xf32, #tpu.memory_space<vmem>>, vector<8x8xf32>
    tpu.vector_store %arg22[%c0_37, %c24], %83 {strides = array<i32>} : memref<8x32xf32, #tpu.memory_space<vmem>>, vector<8x8xf32>,
    %c0_38 = arith.constant 0 : index
    %c0_39 = arith.constant 0 : index
    %85 = vector.load %arg22[%c0_38, %c0_39] : memref<8x32xf32, #tpu.memory_space<vmem>>, vector<8x32xf32>
    %c0_40 = arith.constant 0 : index
    %c0_41 = arith.constant 0 : index
    %86 = vector.load %arg9[%c0_40, %c0_41] : memref<32x32xf32, #tpu.memory_space<vmem>>, vector<32x32xf32>
    %cst_42 = arith.constant dense<0.000000e+00> : vector<8x32xf32>
    %87 = tpu.matmul %85, %86, %cst_42 {dimension_numbers = #tpu.dot_dimension_numbers<[1], [0], [0], [1], [0, 0, 1, 1], [], []>} : vector<8x32xf32>, vector<32x32xf32>, vector<8x32xf32> -> vector<8x32xf32>
    %c0_43 = arith.constant 0 : index
    %c0_44 = arith.constant 0 : index
    %88 = vector.load %arg10[%c0_43, %c0_44] : memref<1x32xf32, #tpu.memory_space<vmem>>, vector<1x32xf32>
    %89 = vector.broadcast %88 : vector<1x32xf32> to vector<8x32xf32>
    %90 = arith.addf %87, %89 : vector<8x32xf32>
    %cst_45 = arith.constant 0.000000e+00 : f32
    %91 = vector.broadcast %cst_45 : f32 to vector<8x32xf32>
    %92 = arith.maximumf %90, %91 : vector<8x32xf32>
    %c0_46 = arith.constant 0 : index
    %c0_47 = arith.constant 0 : index
    %93 = vector.load %arg11[%c0_46, %c0_47] : memref<32x32xf32, #tpu.memory_space<vmem>>, vector<32x32xf32>
    %cst_48 = arith.constant dense<0.000000e+00> : vector<8x32xf32>
    %94 = tpu.matmul %92, %93, %cst_48 {dimension_numbers = #tpu.dot_dimension_numbers<[1], [0], [0], [1], [0, 0, 1, 1], [], []>} : vector<8x32xf32>, vector<32x32xf32>, vector<8x32xf32> -> vector<8x32xf32>
    %c0_49 = arith.constant 0 : index
    %c0_50 = arith.constant 0 : index
    %95 = vector.load %arg12[%c0_49, %c0_50] : memref<1x32xf32, #tpu.memory_space<vmem>>, vector<1x32xf32>
    %96 = vector.broadcast %95 : vector<1x32xf32> to vector<8x32xf32>
    %97 = arith.addf %94, %96 : vector<8x32xf32>
    %98 = arith.addf %97, %1 : vector<8x32xf32>
    %c0_51 = arith.constant 0 : index
    %c0_52 = arith.constant 0 : index
    %99 = vector.load %arg13[%c0_51, %c0_52] : memref<1x32xf32, #tpu.memory_space<vmem>>, vector<1x32xf32>
    %c0_53 = arith.constant 0 : index
    %c0_54 = arith.constant 0 : index
    %100 = vector.load %arg14[%c0_53, %c0_54] : memref<1x32xf32, #tpu.memory_space<vmem>>, vector<1x32xf32>
    %cst_55 = arith.constant dense<0.000000e+00> : vector<8xf32>
    %101 = vector.multi_reduction <add>, %98, %cst_55 [1] : vector<8x32xf32> to vector<8xf32>
    %102 = vector.shape_cast %101 : vector<8xf32> to vector<8x1xf32>
    %cst_56 = arith.constant 3.200000e+01 : f32
    %103 = vector.broadcast %cst_56 : f32 to vector<8x1xf32>
    %104 = arith.divf %102, %103 : vector<8x1xf32>
    %105 = vector.broadcast %104 : vector<8x1xf32> to vector<8x32xf32>
    %106 = arith.subf %98, %105 : vector<8x32xf32>
    %107 = arith.mulf %106, %106 : vector<8x32xf32>
    %cst_57 = arith.constant dense<0.000000e+00> : vector<8xf32>
    %108 = vector.multi_reduction <add>, %107, %cst_57 [1] : vector<8x32xf32> to vector<8xf32>
    %109 = vector.shape_cast %108 : vector<8xf32> to vector<8x1xf32>
    %cst_58 = arith.constant 3.200000e+01 : f32
    %110 = vector.broadcast %cst_58 : f32 to vector<8x1xf32>
    %111 = arith.divf %109, %110 : vector<8x1xf32>
    %112 = vector.broadcast %104 : vector<8x1xf32> to vector<8x32xf32>
    %113 = arith.subf %98, %112 : vector<8x32xf32>
    %cst_59 = arith.constant 9.99999974E-6 : f32
    %114 = vector.broadcast %cst_59 : f32 to vector<8x1xf32>
    %115 = arith.addf %111, %114 : vector<8x1xf32>
    %116 = math.rsqrt %115 : vector<8x1xf32>
    %117 = vector.broadcast %116 : vector<8x1xf32> to vector<8x32xf32>
    %118 = arith.mulf %113, %117 : vector<8x32xf32>
    %119 = vector.broadcast %99 : vector<1x32xf32> to vector<8x32xf32>
    %120 = arith.mulf %118, %119 : vector<8x32xf32>
    %121 = vector.broadcast %100 : vector<1x32xf32> to vector<8x32xf32>
    %122 = arith.addf %120, %121 : vector<8x32xf32>
    %c0_60 = arith.constant 0 : index
    %c0_61 = arith.constant 0 : index
    %123 = vector.load %arg15[%c0_60, %c0_61] : memref<32x32xf32, #tpu.memory_space<vmem>>, vector<32x32xf32>
    %cst_62 = arith.constant dense<0.000000e+00> : vector<8x32xf32>
    %124 = tpu.matmul %122, %123, %cst_62 {dimension_numbers = #tpu.dot_dimension_numbers<[1], [0], [0], [1], [0, 0, 1, 1], [], []>} : vector<8x32xf32>, vector<32x32xf32>, vector<8x32xf32> -> vector<8x32xf32>
    %c0_63 = arith.constant 0 : index
    %c0_64 = arith.constant 0 : index
    %125 = vector.load %arg16[%c0_63, %c0_64] : memref<1x32xf32, #tpu.memory_space<vmem>>, vector<1x32xf32>
    %126 = vector.broadcast %125 : vector<1x32xf32> to vector<8x32xf32>
    %127 = arith.addf %124, %126 : vector<8x32xf32>
    %cst_65 = arith.constant 0.000000e+00 : f32
    %128 = vector.broadcast %cst_65 : f32 to vector<8x32xf32>
    %129 = arith.maximumf %127, %128 : vector<8x32xf32>
    %c0_66 = arith.constant 0 : index
    %c0_67 = arith.constant 0 : index
    %130 = vector.load %arg17[%c0_66, %c0_67] : memref<32x32xf32, #tpu.memory_space<vmem>>, vector<32x32xf32>
    %cst_68 = arith.constant dense<0.000000e+00> : vector<8x32xf32>
    %131 = tpu.matmul %129, %130, %cst_68 {dimension_numbers = #tpu.dot_dimension_numbers<[1], [0], [0], [1], [0, 0, 1, 1], [], []>} : vector<8x32xf32>, vector<32x32xf32>, vector<8x32xf32> -> vector<8x32xf32>
    %c0_69 = arith.constant 0 : index
    %c0_70 = arith.constant 0 : index
    %132 = vector.load %arg18[%c0_69, %c0_70] : memref<1x32xf32, #tpu.memory_space<vmem>>, vector<1x32xf32>
    %133 = vector.broadcast %132 : vector<1x32xf32> to vector<8x32xf32>
    %134 = arith.addf %131, %133 : vector<8x32xf32>
    %135 = arith.addf %122, %134 : vector<8x32xf32>
    %c0_71 = arith.constant 0 : index
    %c0_72 = arith.constant 0 : index
    %136 = vector.load %arg19[%c0_71, %c0_72] : memref<1x32xf32, #tpu.memory_space<vmem>>, vector<1x32xf32>
    %c0_73 = arith.constant 0 : index
    %c0_74 = arith.constant 0 : index
    %137 = vector.load %arg20[%c0_73, %c0_74] : memref<1x32xf32, #tpu.memory_space<vmem>>, vector<1x32xf32>
    %cst_75 = arith.constant dense<0.000000e+00> : vector<8xf32>
    %138 = vector.multi_reduction <add>, %135, %cst_75 [1] : vector<8x32xf32> to vector<8xf32>
    %139 = vector.shape_cast %138 : vector<8xf32> to vector<8x1xf32>
    %cst_76 = arith.constant 3.200000e+01 : f32
    %140 = vector.broadcast %cst_76 : f32 to vector<8x1xf32>
    %141 = arith.divf %139, %140 : vector<8x1xf32>
    %142 = vector.broadcast %141 : vector<8x1xf32> to vector<8x32xf32>
    %143 = arith.subf %135, %142 : vector<8x32xf32>
    %144 = arith.mulf %143, %143 : vector<8x32xf32>
    %cst_77 = arith.constant dense<0.000000e+00> : vector<8xf32>
    %145 = vector.multi_reduction <add>, %144, %cst_77 [1] : vector<8x32xf32> to vector<8xf32>
    %146 = vector.shape_cast %145 : vector<8xf32> to vector<8x1xf32>
    %cst_78 = arith.constant 3.200000e+01 : f32
    %147 = vector.broadcast %cst_78 : f32 to vector<8x1xf32>
    %148 = arith.divf %146, %147 : vector<8x1xf32>
    %149 = vector.broadcast %141 : vector<8x1xf32> to vector<8x32xf32>
    %150 = arith.subf %135, %149 : vector<8x32xf32>
    %cst_79 = arith.constant 9.99999974E-6 : f32
    %151 = vector.broadcast %cst_79 : f32 to vector<8x1xf32>
    %152 = arith.addf %148, %151 : vector<8x1xf32>
    %153 = math.rsqrt %152 : vector<8x1xf32>
    %154 = vector.broadcast %153 : vector<8x1xf32> to vector<8x32xf32>
    %155 = arith.mulf %150, %154 : vector<8x32xf32>
    %156 = vector.broadcast %136 : vector<1x32xf32> to vector<8x32xf32>
    %157 = arith.mulf %155, %156 : vector<8x32xf32>
    %158 = vector.broadcast %137 : vector<1x32xf32> to vector<8x32xf32>
    %159 = arith.addf %157, %158 : vector<8x32xf32>
    %c0_80 = arith.constant 0 : index
    %c0_81 = arith.constant 0 : index
    %c0_82 = arith.constant 0 : index
    %160 = vector.load %arg21[%c0_80, %c0_81, %c0_82] : memref<1x8x32xf32, #tpu.memory_space<vmem>>, vector<1x8x32xf32>
    %161 = vector.shape_cast %160 : vector<1x8x32xf32> to vector<8x32xf32>
    %162 = vector.shape_cast %159 : vector<8x32xf32> to vector<1x8x32xf32>
    tpu.vector_store %arg21[%c0_80, %c0_81, %c0_82], %162 {strides = array<i32>} : memref<1x8x32xf32, #tpu.memory_space<vmem>>, vector<1x8x32xf32>,
    return
  }
  func.func @transform_0(%arg0: i32, %arg1: i32) -> (i32, i32, i32) {
    %c0_i32 = arith.constant 0 : i32
    %c0_i32_0 = arith.constant 0 : i32
    return %arg0, %arg1, %c0_i32 : i32, i32, i32
  }
  func.func @transform_1(%arg0: i32, %arg1: i32) -> (i32, i32, i32) {
    %c0_i32 = arith.constant 0 : i32
    %c0_i32_0 = arith.constant 0 : i32
    %c0_i32_1 = arith.constant 0 : i32
    return %arg0, %c0_i32, %c0_i32_0 : i32, i32, i32
  }
  func.func @transform_2(%arg0: i32, %arg1: i32) -> (i32, i32) {
    %c0_i32 = arith.constant 0 : i32
    %c0_i32_0 = arith.constant 0 : i32
    return %arg1, %c0_i32 : i32, i32
  }
  func.func @transform_3(%arg0: i32, %arg1: i32) -> (i32, i32) {
    %c0_i32 = arith.constant 0 : i32
    %c0_i32_0 = arith.constant 0 : i32
    %c0_i32_1 = arith.constant 0 : i32
    return %c0_i32, %c0_i32_0 : i32, i32
  }
  func.func @transform_4(%arg0: i32, %arg1: i32) -> (i32, i32) {
    %c0_i32 = arith.constant 0 : i32
    %c0_i32_0 = arith.constant 0 : i32
    %c0_i32_1 = arith.constant 0 : i32
    return %c0_i32, %c0_i32_0 : i32, i32
  }
  func.func @transform_5(%arg0: i32, %arg1: i32) -> (i32, i32) {
    %c0_i32 = arith.constant 0 : i32
    %c0_i32_0 = arith.constant 0 : i32
    %c0_i32_1 = arith.constant 0 : i32
    return %c0_i32, %c0_i32_0 : i32, i32
  }
  func.func @transform_6(%arg0: i32, %arg1: i32) -> (i32, i32) {
    %c0_i32 = arith.constant 0 : i32
    %c0_i32_0 = arith.constant 0 : i32
    %c0_i32_1 = arith.constant 0 : i32
    return %c0_i32, %c0_i32_0 : i32, i32
  }
  func.func @transform_7(%arg0: i32, %arg1: i32) -> (i32, i32) {
    %c0_i32 = arith.constant 0 : i32
    %c0_i32_0 = arith.constant 0 : i32
    %c0_i32_1 = arith.constant 0 : i32
    return %c0_i32, %c0_i32_0 : i32, i32
  }
  func.func @transform_8(%arg0: i32, %arg1: i32) -> (i32, i32) {
    %c0_i32 = arith.constant 0 : i32
    %c0_i32_0 = arith.constant 0 : i32
    %c0_i32_1 = arith.constant 0 : i32
    return %c0_i32, %c0_i32_0 : i32, i32
  }
  func.func @transform_9(%arg0: i32, %arg1: i32) -> (i32, i32) {
    %c0_i32 = arith.constant 0 : i32
    %c0_i32_0 = arith.constant 0 : i32
    %c0_i32_1 = arith.constant 0 : i32
    return %c0_i32, %c0_i32_0 : i32, i32
  }
  func.func @transform_10(%arg0: i32, %arg1: i32) -> (i32, i32) {
    %c0_i32 = arith.constant 0 : i32
    %c0_i32_0 = arith.constant 0 : i32
    %c0_i32_1 = arith.constant 0 : i32
    return %c0_i32, %c0_i32_0 : i32, i32
  }
  func.func @transform_11(%arg0: i32, %arg1: i32) -> (i32, i32) {
    %c0_i32 = arith.constant 0 : i32
    %c0_i32_0 = arith.constant 0 : i32
    %c0_i32_1 = arith.constant 0 : i32
    return %c0_i32, %c0_i32_0 : i32, i32
  }
  func.func @transform_12(%arg0: i32, %arg1: i32) -> (i32, i32) {
    %c0_i32 = arith.constant 0 : i32
    %c0_i32_0 = arith.constant 0 : i32
    %c0_i32_1 = arith.constant 0 : i32
    return %c0_i32, %c0_i32_0 : i32, i32
  }
  func.func @transform_13(%arg0: i32, %arg1: i32) -> (i32, i32) {
    %c0_i32 = arith.constant 0 : i32
    %c0_i32_0 = arith.constant 0 : i32
    %c0_i32_1 = arith.constant 0 : i32
    return %c0_i32, %c0_i32_0 : i32, i32
  }
  func.func @transform_14(%arg0: i32, %arg1: i32) -> (i32, i32) {
    %c0_i32 = arith.constant 0 : i32
    %c0_i32_0 = arith.constant 0 : i32
    %c0_i32_1 = arith.constant 0 : i32
    return %c0_i32, %c0_i32_0 : i32, i32
  }
  func.func @transform_15(%arg0: i32, %arg1: i32) -> (i32, i32) {
    %c0_i32 = arith.constant 0 : i32
    %c0_i32_0 = arith.constant 0 : i32
    %c0_i32_1 = arith.constant 0 : i32
    return %c0_i32, %c0_i32_0 : i32, i32
  }
  func.func @transform_16(%arg0: i32, %arg1: i32) -> (i32, i32) {
    %c0_i32 = arith.constant 0 : i32
    %c0_i32_0 = arith.constant 0 : i32
    %c0_i32_1 = arith.constant 0 : i32
    return %c0_i32, %c0_i32_0 : i32, i32
  }
  func.func @transform_17(%arg0: i32, %arg1: i32) -> (i32, i32) {
    %c0_i32 = arith.constant 0 : i32
    %c0_i32_0 = arith.constant 0 : i32
    %c0_i32_1 = arith.constant 0 : i32
    return %c0_i32, %c0_i32_0 : i32, i32
  }
  func.func @transform_18(%arg0: i32, %arg1: i32) -> (i32, i32) {
    %c0_i32 = arith.constant 0 : i32
    %c0_i32_0 = arith.constant 0 : i32
    %c0_i32_1 = arith.constant 0 : i32
    return %c0_i32, %c0_i32_0 : i32, i32
  }
  func.func @transform_19(%arg0: i32, %arg1: i32) -> (i32, i32, i32) {
    %c0_i32 = arith.constant 0 : i32
    %c0_i32_0 = arith.constant 0 : i32
    return %arg0, %arg1, %c0_i32 : i32, i32, i32
  }
}

</mosaic_0001>

<bundles_post_ra>
// kernel: tpu_custom_call.1
= control target key start
LH: loop header
LB: loop body
LE: loop exit
PB: predicated region body
PF: predicated region fallthrough
CT: control target
= control target key end

     0   :  { %s3874_s0 = inlined_call_operand.hbm [shape: f32[2,16,32], index: 0, kind: input, shape index: {}]   ;;  %s3875_s1 = inlined_call_operand.hbm [shape: f32[2,16,32], index: 1, kind: input, shape index: {}]   ;;  %s3876_s2 = inlined_call_operand.hbm [shape: f32[16,16], index: 2, kind: input, shape index: {}]   ;;  %s3877_s3 = inlined_call_operand.hbm [shape: f32[32,32], index: 3, kind: input, shape index: {}]   ;;  %s3878_s4 = inlined_call_operand.vmem [shape: f32[1,32], index: 4, kind: input, shape index: {}]   ;;  %s3879_s5 = inlined_call_operand.hbm [shape: f32[32,64], index: 5, kind: input, shape index: {}]   ;;  %s3880_s6 = inlined_call_operand.vmem [shape: f32[1,64], index: 6, kind: input, shape index: {}]   ;;  %s3881_s7 = inlined_call_operand.hbm [shape: f32[32,32], index: 7, kind: input, shape index: {}]   ;;  %s3882_s8 = inlined_call_operand.vmem [shape: f32[1,32], index: 8, kind: input, shape index: {}]   ;;  %s3883_s9 = inlined_call_operand.hbm [shape: f32[32,32], index: 9, kind: input, shape index: {}]   ;;  %s3884_s10 = inlined_call_operand.vmem [shape: f32[1,32], index: 10, kind: input, shape index: {}]   ;;  %s3885_s11 = inlined_call_operand.vmem [shape: f32[1,32], index: 11, kind: input, shape index: {}]   ;;  %s3886_s12 = inlined_call_operand.vmem [shape: f32[1,32], index: 12, kind: input, shape index: {}]   ;;  %s3887_s13 = inlined_call_operand.hbm [shape: f32[32,32], index: 13, kind: input, shape index: {}]   ;;  %s3888_s14 = inlined_call_operand.vmem [shape: f32[1,32], index: 14, kind: input, shape index: {}]   ;;  %s3889_s15 = inlined_call_operand.hbm [shape: f32[32,32], index: 15, kind: input, shape index: {}]   ;;  %s3890_s16 = inlined_call_operand.vmem [shape: f32[1,32], index: 16, kind: input, shape index: {}]   ;;  %s3891_s17 = inlined_call_operand.vmem [shape: f32[1,32], index: 17, kind: input, shape index: {}]   ;;  %s3892_s18 = inlined_call_operand.vmem [shape: f32[1,32], index: 18, kind: input, shape index: {}]   ;;  %s3893_s19 = inlined_call_operand.hbm [shape: f32[2,16,32], index: 19, kind: output, shape index: {}]  }
   0x1   :  { %3913 = sst [smem:[#allocation35_spill]] %s3874_s0 }
   0x2   :  { %3914 = sst [smem:[#allocation36_spill]] %s3875_s1 }
   0x3   :  { %3915 = sst [smem:[#allocation37_spill]] %s3876_s2 }
   0x4   :  { %3916 = sst [smem:[#allocation38_spill]] %s3877_s3 }
   0x5   :  { %3917 = sst [smem:[#allocation39_spill]] %s3878_s4 }
   0x6   :  { %3918 = sst [smem:[#allocation40_spill]] %s3879_s5 }
   0x7   :  { %3919 = sst [smem:[#allocation41_spill]] %s3880_s6 }
   0x8   :  { %3920 = sst [smem:[#allocation42_spill]] %s3881_s7 }
   0x9   :  { %3921 = sst [smem:[#allocation43_spill]] %s3882_s8 }
   0xa   :  { %3922 = sst [smem:[#allocation44_spill]] %s3883_s9 }
   0xb   :  { %3923 = sst [smem:[#allocation45_spill]] %s3884_s10 }
   0xc   :  { %3924 = sst [smem:[#allocation46_spill]] %s3885_s11 }
   0xd   :  { %3925 = sst [smem:[#allocation47_spill]] %s3886_s12 }
   0xe   :  { %3926 = sst [smem:[#allocation48_spill]] %s3887_s13 }
   0xf   :  { %3927 = sst [smem:[#allocation49_spill]] %s3888_s14 }
  0x10   :  { %3928 = sst [smem:[#allocation50_spill]] %s3889_s15 }
  0x11   :  { %3929 = sst [smem:[#allocation51_spill]] %s3890_s16 }
  0x12   :  { %3930 = sst [smem:[#allocation52_spill]] %s3891_s17 }
  0x13   :  { %3931 = sst [smem:[#allocation53_spill]] %s3892_s18 }
  0x14   :  { %3932 = sst [smem:[#allocation54_spill]] %s3893_s19 }
  0x15   :  { %24 = vsyncpa [#allocation4], 0 }
  0x16   :  { %26 = vsyncpa [#allocation4 + $0x1], 0 }
  0x17   :  { %27 = vsyncpa [#allocation7], 0 }
  0x18   :  { %29 = vsyncpa [#allocation7 + $0x1], 0 }
  0x19   :  { %30 = vsyncpa [#allocation10], 0 }
  0x1a   :  { %31 = vsyncpa [#allocation13], 0 }
  0x1b   :  { %32 = vsyncpa [#allocation16], 0 }
  0x1c   :  { %33 = vsyncpa [#allocation5], 0 }
  0x1d   :  { %35 = vsyncpa [#allocation5 + $0x1], 0  ;;  %s3293_s0 = smov 0   ;;  %s3295_s30 = smov 0  }
  0x1e   :  { %s3297_s20 = smov 0   ;;  %s3299_s21 = smov 0  }
  0x1f   :  { %s3301_s1 = smov 0   ;;  %s3303_s22 = smov 0  }
  0x20   :  { %s3305_s2 = smov 0   ;;  %s3307_s23 = smov 0  }
  0x21   :  { %s3309_s24 = smov 0   ;;  %s3311_s25 = smov 0  }
  0x22   :  { %s3313_s3 = smov 0   ;;  %s3315_s26 = smov 0  }
  0x23   :  { %s3317_s27 = smov 0   ;;  %s3319_s28 = smov 0  }
  0x24 LB: > { %3933 = sst [smem:[#allocation26_spill]] %s3139_s2  ;;  %s3364_s29 = sadd.s32 4294967295, %s3167_s28   ;;  %s3167_s28 = sphi %s3319_s28, %s41_s28   ;;  %s3163_s27 = sphi %s3317_s27, %s4016_s27   ;;  %s3159_s26 = sphi %s3315_s26, %s4015_s26   ;;  %s3155_s3 = sphi %s3313_s3, %s4014_s3   ;;  %s3151_s25 = sphi %s3311_s25, %s4013_s25   ;;  %s3147_s24 = sphi %s3309_s24, %s4012_s24   ;;  %s3143_s23 = sphi %s3307_s23, %s4011_s23   ;;  %s3139_s2 = sphi %s3305_s2, %s4010_s2   ;;  %s3135_s22 = sphi %s3303_s22, %s4009_s22   ;;  %s3131_s1 = sphi %s3301_s1, %s4008_s1   ;;  %s3127_s21 = sphi %s3299_s21, %s4007_s21   ;;  %s3123_s20 = sphi %s3297_s20, %s4006_s20   ;;  %s3119_s30 = sphi %s3295_s30, %s4005_s30   ;;  %s3115_s0 = sphi %s3293_s0, %s4004_s0  }
  0x25   : > { %3934 = sst [smem:[#allocation27_spill]] %s3151_s25  ;;  %p2289_p0 = scmp.ge.s32.totalorder %s3167_s28, 1 }
  0x26   : > { %3935 = sst [smem:[#allocation28_spill]] %s3155_s3  ;;  %p3901_p1 = scmp.eq.s32.totalorder %s3364_s29, 0 }
  0x27   : > { %p502_p2 = scmp.lt.s32.totalorder %s3167_s28, 5  ;;  %s3169_s18 = smov [#allocation9]  }
  0x28   : > { %s514_s17 = sshll.u32 %s3169_s18, 4  ;;  %s3170_s3 = smov [#allocation12]   ;;  %s515_s17 = int_to_ptr.vmem [resolvable:$true] %s514_s17 }
  0x29   : > { %p3369_p3 = pnand %p2289_p0, %p502_p2  ;;  %s546_s16 = sshll.u32 %s3170_s3, 4  ;;  %s547_s16 = int_to_ptr.vmem [resolvable:$true] %s546_s16 }
  0x2a   : > { %s3171_s14 = smov [#allocation15]   ;;  %s2774_s18 = scalar_lea.vmem %s515_s17, 512 }
  0x2b   : > { %s3936_s19 = scalar_select %p3369_p3, 1, 0 }
  0x2c   : > { %p2564_p4 = pneg %p3369_p3  ;;  %s584_s12 = sshll.u32 %s3171_s14, 4  ;;  %s585_s12 = int_to_ptr.vmem [resolvable:$true] %s584_s12 }
  0x2d   : > { %3937 = sst [smem:[#allocation29_spill]] %s3936_s19  ;;  %p2775_p7 = scmp.ne.s32.totalorder %s515_s17, %s2774_s18 }
  0x2e   : > { %p3377_p5 = pnand %p2564_p4, %p3901_p1  ;;  %p2782_p10 = scmp.lt.s32.totalorder %s515_s17, %s515_s17 }
  0x2f   : > { %p2783_p11 = scmp.lt.s32.totalorder %s2774_s18, %s2774_s18 }
  0x30   : > { %p3383_p6 = pneg %p3377_p5 }
  0x31   : > { %p2784_p12 = por %p2783_p11, %p2782_p10 }
  0x32   : > { %p2777_p8 = pnand %p2775_p7, %p3383_p6 }
  0x34   : > { %p2778_p9 = pneg %p2777_p8 }
  0x36   : > { %p2785_p13 = pnand %p2784_p12, %p2778_p9 }
  0x38   : > { %2788 = shalt.err (!%p2785_p13)
}
  0x39   : > { %s3896_s3 = smov 128   ;;  %s3898_s14 = smov 8  }
  0x3a   : > { %s3940_s4 = sld [smem:[#allocation38_spill]]  ;;  %s2800_s6 = scalar_lea.vmem %s547_s16, 512 }
  0x3b   : > { %p2801_p0 = scmp.ne.s32.totalorder %s547_s16, %s2800_s6  ;;  %p2808_p7 = scmp.lt.s32.totalorder %s547_s16, %s547_s16 }
  0x3c   : > { %p2809_p8 = scmp.lt.s32.totalorder %s2800_s6, %s2800_s6 }
  0x3d   : > { %p2803_p2 = pnand %p2801_p0, %p3383_p6 }
  0x3e   : > { %p2810_p9 = por %p2809_p8, %p2808_p7 }
  0x3f   : > { %p2804_p4 = pneg %p2803_p2 }
  0x40   : > { %2567 = dma.hbm_to_vmem [thread:$0]  (!%p3377_p5), %s3940_s4, 512, %s515_s17, [#allocation10], %s3896_s3, %s3896_s3, %s3898_s14  }
  0x41   : > { %p2811_p10 = pnand %p2810_p9, %p2804_p4 }
  0x43   : > { %2814 = shalt.err (!%p2811_p10)
}
  0x44   : > { %s3941_s7 = sld [smem:[#allocation42_spill]]  ;;  %s2826_s4 = scalar_lea.vmem %s585_s12, 512 }
  0x45   : > { %p2827_p11 = scmp.ne.s32.totalorder %s585_s12, %s2826_s4  ;;  %p2834_p0 = scmp.lt.s32.totalorder %s585_s12, %s585_s12 }
  0x46   : > { %p2835_p2 = scmp.lt.s32.totalorder %s2826_s4, %s2826_s4 }
  0x47   : > { %p2829_p12 = pnand %p2827_p11, %p3383_p6 }
  0x48   : > { %p2836_p4 = por %p2835_p2, %p2834_p0 }
  0x49   : > { %p2830_p13 = pneg %p2829_p12 }
  0x4a   : > { %2573 = dma.hbm_to_vmem [thread:$0]  (!%p3377_p5), %s3941_s7, 512, %s547_s16, [#allocation13], %s3896_s3, %s3896_s3, %s3898_s14  }
  0x4b   : > { %p2837_p7 = pnand %p2836_p4, %p2830_p13 }
  0x4d   : > { %2840 = shalt.err (!%p2837_p7)
}
  0x4e   : > { %s3942_s13 = sld [smem:[#allocation48_spill]]  ;;  %p3904_p8 = scmp.eq.s32.totalorder %s3167_s28, 0 }
  0x4f   : > { %p95_p9 = scmp.ne.s32.totalorder %s3135_s22, %s3131_s1  ;;  %p101_p10 = scmp.ne.s32.totalorder %s3131_s1, %s3127_s21 }
  0x50   : > { %p3900_p11 = scmp.lt.s32.totalorder %s3167_s28, 4  ;;  %s643_s16 = sand.u32 1, %s3167_s28  }
  0x51   : > { %p97_p12 = por %p95_p9, %p3904_p8  ;;  %p3429_p13 = por %p101_p10, %p3901_p1 }
  0x52   : > { %s645_s19 = sand.u32 1, %s3135_s22   ;;  %s2354_s18 = sshll.u32 %s3163_s27, 8 }
  0x53   : > { %s3943_s17 = scalar_select %p3429_p13, 1, 0 }
  0x54   : > { %2579 = dma.hbm_to_vmem [thread:$0]  (!%p3377_p5), %s3942_s13, 512, %s585_s12, [#allocation16], %s3896_s3, %s3896_s3, %s3898_s14  }
  0x55   : > { %3944 = sst [smem:[#allocation30_spill]] %s3943_s17  ;;  %s2300_s4 = sshll.u32 %s645_s19, 4 }
  0x56   : > { %s3945_s7 = sld [smem:[#allocation36_spill]]  ;;  %p3440_p0 = pnand %p3900_p11, %p97_p12 }
  0x57   : > { %s647_s21 = scalar_lea.vmem [#allocation6], %s2300_s4  ;;  %s3444_s14 = scalar_lea.sflag [#allocation7], %s643_s16 }
  0x58   : > { %s654_s3 = sshll.u32 %s647_s21, 4  ;;  %p2843_p2 = pneg %p3440_p0  ;;  %s655_s3 = int_to_ptr.vmem [resolvable:$true] %s654_s3 }
  0x59   : > { %s2854_s13 = scalar_lea.vmem %s655_s3, 256  ;;  %s3174_s19 = smov [#allocation6]  }
  0x5a   : > { %p2855_p4 = scmp.ne.s32.totalorder %s655_s3, %s2854_s13  ;;  %s2859_s6 = sshll.u32 %s3174_s19, 4  ;;  %s2860_s6 = int_to_ptr.vmem [resolvable:$false] %s2859_s6 }
  0x5b   : > { %p2862_p10 = scmp.lt.s32.totalorder %s655_s3, %s2860_s6 }
  0x5c   : > { %s653_s12 = scalar_lea.hbm %s3945_s7, %s2354_s18  ;;  %p2857_p7 = pnand %p2855_p4, %p2843_p2 }
  0x5d   : > { %s2861_s7 = scalar_lea.vmem %s2860_s6, 512 }
  0x5e   : > { %p2858_p9 = pneg %p2857_p7  ;;  %p2863_p12 = scmp.lt.s32.totalorder %s2861_s7, %s2854_s13 }
  0x60   : > { %p2864_p11 = por %p2863_p12, %p2862_p10 }
  0x62   : > { %p2865_p1 = pnand %p2864_p11, %p2858_p9 }
  0x64   : > { %2868 = shalt.err (!%p2865_p1)
}
  0x65   : > { %s3947_s18 = smov 8   ;;  %s3948_s16 = smov 128  }
  0x66   : > { %2589 = dma.hbm_to_vmem [thread:$0]  (!%p3440_p0), %s653_s12, 256, %s655_s3, %s3444_s14, %s3948_s16, %s3948_s16, %s3947_s18  }
  0x67   : > { %s3175_s4 = smov [#allocation11]   ;;  %s3176_s21 = smov [#allocation14]  }
  0x68   : > { %s530_s8 = sshll.u32 %s3175_s4, 4  ;;  %s562_s19 = sshll.u32 %s3176_s21, 4  ;;  %s531_s8 = int_to_ptr.vmem [resolvable:$true] %s530_s8  ;;  %s563_s19 = int_to_ptr.vmem [resolvable:$true] %s562_s19 }
  0x69   : > { %s2880_s17 = scalar_lea.vmem %s531_s8, 512  ;;  %p2888_p11 = scmp.lt.s32.totalorder %s531_s8, %s531_s8 }
  0x6a   : > { %p2881_p2 = scmp.ne.s32.totalorder %s531_s8, %s2880_s17  ;;  %p2889_p1 = scmp.lt.s32.totalorder %s2880_s17, %s2880_s17 }
  0x6c   : > { %p2883_p4 = pnand %p2881_p2, %p3383_p6  ;;  %p2890_p9 = por %p2889_p1, %p2888_p11 }
  0x6e   : > { %p2884_p7 = pneg %p2883_p4 }
  0x70   : > { %p2891_p10 = pnand %p2890_p9, %p2884_p7 }
  0x72   : > { %2894 = shalt.err (!%p2891_p10)
}
  0x73   : > { %s3949_s5 = sld [smem:[#allocation40_spill]]  ;;  %s2906_s10 = scalar_lea.vmem %s563_s19, 512 }
  0x74   : > { %p2907_p0 = scmp.ne.s32.totalorder %s563_s19, %s2906_s10  ;;  %p2914_p4 = scmp.lt.s32.totalorder %s563_s19, %s563_s19 }
  0x75   : > { %p2915_p11 = scmp.lt.s32.totalorder %s2906_s10, %s2906_s10 }
  0x76   : > { %p2909_p12 = pnand %p2907_p0, %p3383_p6 }
  0x77   : > { %p2916_p7 = por %p2915_p11, %p2914_p4 }
  0x78   : > { %p2910_p2 = pneg %p2909_p12 }
  0x79   : > { %2570 = dma.hbm_to_vmem [thread:$0]  (!%p3377_p5), %s3949_s5, 512, %s531_s8, [#allocation10], %s3948_s16, %s3948_s16, %s3947_s18  }
  0x7a   : > { %p2917_p1 = pnand %p2916_p7, %p2910_p2 }
  0x7c   : > { %2920 = shalt.err (!%p2917_p1)
}
  0x7d   : > { %s3950_s9 = sld [smem:[#allocation44_spill]]  ;;  %s3177_s6 = smov [#allocation17]  }
  0x7e   : > { %s600_s7 = sshll.u32 %s3177_s6, 4  ;;  %s601_s7 = int_to_ptr.vmem [resolvable:$true] %s600_s7 }
  0x7f   : > { %s2932_s4 = scalar_lea.vmem %s601_s7, 512  ;;  %p2940_p12 = scmp.lt.s32.totalorder %s601_s7, %s601_s7 }
  0x80   : > { %p2933_p9 = scmp.ne.s32.totalorder %s601_s7, %s2932_s4  ;;  %p2941_p2 = scmp.lt.s32.totalorder %s2932_s4, %s2932_s4 }
  0x82   : > { %p2935_p10 = pnand %p2933_p9, %p3383_p6  ;;  %p2942_p4 = por %p2941_p2, %p2940_p12 }
  0x83   : > { %2576 = dma.hbm_to_vmem [thread:$0]  (!%p3377_p5), %s3950_s9, 512, %s563_s19, [#allocation13], %s3948_s16, %s3948_s16, %s3947_s18  }
  0x84   : > { %p2936_p0 = pneg %p2935_p10 }
  0x86   : > { %p2943_p11 = pnand %p2942_p4, %p2936_p0 }
  0x88   : > { %2946 = shalt.err (!%p2943_p11)
}
  0x89   : > { %s3951_s15 = sld [smem:[#allocation50_spill]]  ;;  %s2288_s11 = sadd.s32 4294967294, %s3167_s28  }
  0x8a   : > { %s50_s25 = sadd.s32 1, %s3159_s26  ;;  %s53_s19 = sadd.s32 1, %s3163_s27 }
  0x8b   : > { %p51_p6 = scmp.ge.s32.totalorder %s50_s25, 2  ;;  %s62_s13 = sadd.s32 1, %s3147_s24 }
  0x8c   : > { %p69_p7 = scmp.ne.s32.totalorder %s3147_s24, %s3143_s23  ;;  %p75_p9 = scmp.ne.s32.totalorder %s3143_s23, %s3139_s2 }
  0x8d   : > { %s4018_s25 = smov (%p51_p6, %s50_s25), 0  ;;  %s4020_s19 = smov (!%p51_p6, %s53_s19), %s3163_s27 }
  0x8e   : > { %3952 = sst [smem:[#allocation31_spill]] %s4018_s25  ;;  %s3495_s3 = ssub.s32 %s3159_s26, %s4018_s25 }
  0x8f   : > { %2582 = dma.hbm_to_vmem [thread:$0]  (!%p3377_p5), %s3951_s15, 512, %s601_s7, [#allocation16], %s3948_s16, %s3948_s16, %s3947_s18  }
  0x90   : > { %p3499_p5 = por %p3904_p8, %p69_p7  ;;  %p55_p1 = scmp.ge.s32.totalorder %s4020_s19, 2 }
  0x91   : > { %p489_p0 = scmp.eq.s32.totalorder %s3364_s29, 3  ;;  %p3955_p12 = scmp.eq.s32.totalorder %s3364_s29, 0 }
  0x92   : > { %s4022_s19 = smov (%p55_p1, %s4020_s19), 0  ;;  %p495_p11 = scmp.eq.s32.totalorder %s2288_s11, 3 }
  0x93   : > { %3954 = sst [smem:[#allocation32_spill]] %s4022_s19  ;;  %p3511_p2 = por %p3955_p12, %p75_p9 }
  0x94   : > { %p3515_p4 = por %p489_p0, %p69_p7  ;;  %s57_s17 = ssub.s32 %s3163_s27, %s4022_s19 }
  0x95   : > { %s59_s12 = sor.u32 %s3495_s3, %s57_s17  ;;  %p86_p6 = scmp.eq.s32.totalorder %s57_s17, 0 }
  0x96   : > { %s3957_s10 = scalar_select %p3515_p4, 1, 0 }
  0x97   : > { %p60_p8 = scmp.eq.s32.totalorder %s59_s12, 0  ;;  %p3522_p10 = por %p495_p11, %p75_p9 }
  0x98   : > { %3958 = sst [smem:[#allocation33_spill]] %s3957_s10  ;;  %s3961_s7 = sadd.s32 1, %s3135_s22 }
  0x99   : > { %s3959_s6 = scalar_select %p3522_p10, 1, 0 }
  0x9a   : > { %s3529_s4 = scalar_select %p86_p6, %s3135_s22, %s3961_s7  }
  0x9b   : > { %3960 = sst [smem:[#allocation34_spill]] %s3959_s6  ;;  %s623_s21 = sand.u32 1, %s3147_s24  }
  0x9c   : > { %s3532_s8 = scalar_select %p60_p8, %s3147_s24, %s62_s13  }
  0x9d   : > { %s2298_s5 = sshll.u32 %s3163_s27, 1  ;;  %s2297_s9 = sshll.u32 %s623_s21, 3 }
  0x9e   : > { %s632_s15 = sadd.s32 %s3159_s26, %s2298_s5  ;;  %s627_s11 = scalar_lea.vmem [#allocation3], %s2297_s9 }
  0x9f   : > { %s2299_s19 = sshll.u32 %s632_s15, 7  ;;  %s636_s25 = sshll.u32 %s627_s11, 4  ;;  %s637_s25 = int_to_ptr.vmem [resolvable:$true] %s636_s25 }
  0xa0   : > { %s3962_s17 = sld [smem:[#allocation35_spill]]  ;;  %p3963_p7 = scmp.lt.s32.totalorder %s3167_s28, 4 }
  0xa1   : > { %s624_s13 = scalar_lea.sflag [#allocation4], %s623_s21  ;;  %s2960_s7 = scalar_lea.vmem %s637_s25, 128 }
  0xa2   : > { %p3544_p1 = pnand %p3963_p7, %p3499_p5  ;;  %p2961_p9 = scmp.ne.s32.totalorder %s637_s25, %s2960_s7 }
  0xa3   : > { %s3178_s5 = smov [#allocation3]  }
  0xa4   : > { %p2949_p8 = pneg %p3544_p1  ;;  %s2965_s9 = sshll.u32 %s3178_s5, 4  ;;  %s2966_s9 = int_to_ptr.vmem [resolvable:$false] %s2965_s9 }
  0xa5   : > { %s2967_s15 = scalar_lea.vmem %s2966_s9, 256  ;;  %p2968_p11 = scmp.lt.s32.totalorder %s637_s25, %s2966_s9 }
  0xa6   : > { %s634_s12 = scalar_lea.hbm %s3962_s17, %s2299_s19  ;;  %p2963_p0 = pnand %p2961_p9, %p2949_p8 }
  0xa7   : > { %p2969_p6 = scmp.lt.s32.totalorder %s2967_s15, %s2960_s7 }
  0xa8   : > { %p2964_p12 = pneg %p2963_p0 }
  0xa9   : > { %p2970_p10 = por %p2969_p6, %p2968_p11 }
  0xab   : > { %p2971_p4 = pnand %p2970_p10, %p2964_p12 }
  0xad   : > { %2974 = shalt.err (!%p2971_p4)
}
  0xae   : > { %2586 = dma.hbm_to_vmem [thread:$0]  (!%p3544_p1), %s634_s12, 128, %s637_s25, %s624_s13  }
  0xaf   : > { %s114_s2 = sadd.s32 1, %s3123_s20  ;;  %p121_p5 = scmp.ne.s32.totalorder %s3123_s20, %s3119_s30 }
  0xb0   : > { %p3965_p7 = scmp.eq.s32.totalorder %s3495_s3, 0  ;;  %p3966_p10 = scmp.eq.s32.totalorder %s3167_s28, 0 }
  0xb1   : > { %p127_p8 = scmp.ne.s32.totalorder %s3119_s30, %s3115_s0  ;;  %s666_s18 = sand.u32 1, %s3123_s20  }
  0xb2   : > { %s3558_s19 = scalar_select %p3965_p7, %s3123_s20, %s114_s2  }
  0xb3   : > { %p123_p4 = por %p121_p5, %p3966_p10  ;;  %s2304_s10 = sshll.u32 %s3159_s26, 7 }
  0xb4   : > { %p3967_p9 = scmp.eq.s32.totalorder %s3364_s29, 0  ;;  %s2303_s21 = sshll.u32 %s666_s18, 3 }
  0xb5   : > { %s3969_s7 = sld [smem:[#allocation37_spill]]  ;;  %s668_s12 = scalar_lea.vmem [#allocation8], %s2303_s21 }
  0xb6   : > { %p3568_p0 = por %p127_p8, %p3967_p9  ;;  %s675_s13 = sshll.u32 %s668_s12, 4  ;;  %s676_s13 = int_to_ptr.vmem [resolvable:$true] %s675_s13 }
  0xb7   : > { %p3970_p1 = scmp.lt.s32.totalorder %s3167_s28, 4  ;;  %s2988_s0 = scalar_lea.vmem %s676_s13, 128 }
  0xb8   : > { %s3968_s6 = scalar_select %p3568_p0, 1, 0 }
  0xb9   : > { %p3577_p12 = pnand %p3970_p1, %p123_p4  ;;  %p2989_p6 = scmp.ne.s32.totalorder %s676_s13, %s2988_s0 }
  0xba   : > { %s3179_s5 = smov [#allocation8]  }
  0xbb   : > { %s673_s25 = scalar_lea.hbm %s3969_s7, %s2304_s10  ;;  %p2977_p11 = pneg %p3577_p12 }
  0xbc   : > { %s2993_s9 = sshll.u32 %s3179_s5, 4  ;;  %s2994_s9 = int_to_ptr.vmem [resolvable:$false] %s2993_s9 }
  0xbd   : > { %p2991_p5 = pnand %p2989_p6, %p2977_p11  ;;  %s2995_s15 = scalar_lea.vmem %s2994_s9, 256 }
  0xbe   : > { %p2996_p10 = scmp.lt.s32.totalorder %s676_s13, %s2994_s9  ;;  %p2997_p8 = scmp.lt.s32.totalorder %s2995_s15, %s2988_s0 }
  0xbf   : > { %p2992_p7 = pneg %p2991_p5 }
  0xc0   : > { %p2998_p9 = por %p2997_p8, %p2996_p10 }
  0xc2   : > { %p2999_p0 = pnand %p2998_p9, %p2992_p7 }
  0xc4   : > { %3002 = shalt.err (!%p2999_p0)
}
  0xc5   : > { %2592 = dma.hbm_to_vmem [thread:$0]  (!%p3577_p12), %s673_s25, 128, %s676_s13, %s3444_s14  }
  0xc6   : > { %684 = sbr.rel (%p3369_p3) target bundleno = 4219 (0x107b), region = 96  ;;  %s3589_s18 = sand.u32 (!%p3369_p3), 1, %s3143_s23  }
  0xc7   : > { %s2306_s10 = sshll.u32 (!%p3369_p3), %s3589_s18, 3  ;;  %s687_s21 = scalar_lea.sflag (!%p3369_p3), [#allocation4], %s3589_s18 }
  0xc8   : > { %s3595_s11 = scalar_lea.vmem (!%p3369_p3), [#allocation3], %s2306_s10 }
  0xcb   : > { %3086 = dma.done.wait (%p3511_p2), %s687_s21, 128  }
  0xcc   : > { %3088 = vsyncadd (%p3511_p2), %s687_s21, 4294967168  ;;  %s695_s17 = sand.u32 1, %s3364_s29   ;;  %s697_s7 = sand.u32 1, %s3131_s1  }
  0xcd   : > { %s3603_s25 = sshll.u32 %s697_s7, 4  ;;  %s696_s12 = scalar_lea.sflag [#allocation7], %s695_s17 }
  0xce   : > { %s699_s13 = scalar_lea.vmem [#allocation6], %s3603_s25 }
  0xcf   : > { %3090 = dma.done.wait (%p3429_p13), %s696_s12, 256  }
  0xd0   : > { %3092 = vsyncadd (%p3429_p13), %s696_s12, 4294967040  ;;  %s706_s3 = sand.u32 1, %s3119_s30   ;;  %p3974_p3 = scmp.ne.s32.totalorder %s3968_s6, 0 }
  0xd1   : > { %s3611_s16 = sshll.u32 %s706_s3, 3 }
  0xd2   : > { %s708_s0 = scalar_lea.vmem [#allocation8], %s3611_s16 }
  0xd3   : > { %3094 = dma.done.wait (%p3974_p3), %s696_s12, 128  }
  0xd4   : > { %3096 = vsyncadd (%p3974_p3), %s696_s12, 4294967168  ;;  %p3975_p2 = scmp.eq.s32.totalorder %s3364_s29, 0 }
  0xd6   : > { %3098 = dma.done.wait (%p3975_p2), [#allocation10], 1024   ;;  %p3976_p4 = pmov %p3975_p2 }
  0xd7   : > { %p3977_p13 = pmov %p3975_p2 }
  0xd8   : > { %3100 = vsyncadd (%p3976_p4), [#allocation10], 4294966272 }
  0xd9   : > { %3102 = dma.done.wait (%p3977_p13), [#allocation13], 1024   ;;  %p3978_p0 = pmov %p3975_p2 }
  0xdb   : > { %3104 = vsyncadd (%p3978_p0), [#allocation13], 4294966272  ;;  %p3979_p1 = pmov %p3978_p0 }
  0xdc   : > { %p3980_p12 = pmov %p3978_p0 }
  0xdd   : > { %3106 = dma.done.wait (%p3979_p1), [#allocation16], 1024  }
  0xde   : > { %3108 = vsyncadd (%p3980_p12), [#allocation16], 4294966272  ;;  %v3180_v0 = vmov 0.0   ;;  %vm3181_vm0 = vmmov 0   ;;  %v889_v1 = vld [vmem:[#allocation11 + $0x18] sm:$0xff]  ;;  %v888_v2 = vld [vmem:[#allocation11 + $0x10] sm:$0xff] }
  0xdf   : > { %2410 = vmatprep.subr.mxu0 %v3180_v0  ;;  %2418 = vmatprep.mubr.msk.f32.mxu0 %vm3181_vm0, %v3180_v0  ;;  %v801_v3 = vld [vmem:[#allocation9 + $0x18] sm:$0xff]  ;;  %v800_v4 = vld [vmem:[#allocation9 + $0x10] sm:$0xff]  ;;  %v887_v5 = vld [vmem:[#allocation11 + $0x8] sm:$0xff]  ;;  %vm809_vm1 = vcmask 261120   ;;  %s3981_s5 = sld [smem:[#allocation41_spill]]  ;;  %vm979_vm2 = vcmask 64512  }
  0xe0   : > { %2421 = vmatprep.subr.mxu1 %v889_v1  ;;  %2411 = vmatpush3.msra.mxu0 %v801_v3  ;;  %v884_v6 = vld [vmem:[%s699_s13] sm:$0xff]  ;;  %v799_v7 = vld [vmem:[#allocation9 + $0x8] sm:$0xff]  ;;  %s3982_s2 = sld [smem:[#allocation39_spill]]  ;;  %s3182_s21 = smov 96   ;;  %vm1059_vm3 = vcmask 130048   ;;  %vm1327_vm4 = vcmask 130112  }
  0xe1   : > { %2422 = vmatpush3.msra.mxu1 %v889_v1  ;;  %2412 = vmatprep.subr.mxu0 %v3180_v0  ;;  %v886_v8 = vld [vmem:[#allocation11] sm:$0xff]  ;;  %v885_v10 = vld [vmem:[%s699_s13 + $0x8] sm:$0xff]  ;;  %v3683_v24 = vld [vmem:[%s708_s0] sm:$0xff]  ;;  %s3184_s14 = smov 88   ;;  %s3185_s17 = smov 112   ;;  %vm1505_vm5 = vcmask 195712  }
  0xe2   : > { %2423 = vmatprep.subr.mxu1 %v888_v2  ;;  %2413 = vmatpush3.msra.mxu0 %v800_v4  ;;  %v798_v9 = vld [vmem:[#allocation9] sm:$0xff]  ;;  %s3186_s7 = smov 80   ;;  %s3187_s25 = smov 104   ;;  %vm1683_vm6 = vcmask 261312  }
  0xe3   : > { %2424 = vmatpush3.msra.mxu1 %v888_v2  ;;  %2414 = vmatprep.subr.mxu0 %v3180_v0  ;;  %v3641_v11 = vld [vmem:[%s3595_s11] sm:$0xff]  ;;  %s3183_s11 = smov 120   ;;  %s3188_s12 = smov 72  }
  0xe4   : > { %2425 = vmatprep.subr.mxu1 %v887_v5  ;;  %2429 = vmatprep.mubr.msk.f32.mxu1 %vm809_vm1, %v884_v6  ;;  %s3189_s13 = smov 8   ;;  %s3190_s3 = smov 16  }
  0xe5   : > { %2426 = vmatpush3.msra.mxu1 %v887_v5  ;;  %2415 = vmatpush3.msra.mxu0 %v799_v7  ;;  %v2318_v12 = vld [vmem:[%s3981_s5] ss:$0 sm:$0xff]  ;;  %s3191_s16 = smov 24   ;;  %s3983_s6 = sld [smem:[#allocation43_spill]] }
  0xe6   : > { %2427 = vmatprep.subr.mxu1 %v886_v8  ;;  %2416 = vmatprep.subr.mxu0 %v3180_v0  ;;  %v2316_v13 = vld [vmem:[%s3982_s2] ss:$0 sm:$0xff]  ;;  %s3984_s15 = sld [smem:[#allocation45_spill]] }
  0xe7   : > { %2428 = vmatpush3.msra.mxu1 %v886_v8  ;;  %2417 = vmatpush3.msra.mxu0 %v798_v9  ;;  %s3988_s0 = sld [smem:[#allocation51_spill]] }
  0xe8   : > { %2430 = vmatmul.mubr.msk.f32.vlgmr.msra.gmra.mxu1 %vm809_vm1, %v885_v10  ;;  %2419 = vmatmul.mubr.msk.f32.vlgmr.msra.gmra.mxu0 %vm809_vm1, %v3641_v11  ;;  %s3989_s29 = sld [smem:[#allocation28_spill]] }
  0xe9   : > { %2432 = vmatprep.subr.mxu0 %v3180_v0  ;;  %2436 = vmatprep.mubr.msk.f32.mxu0 %vm3181_vm0, %v3180_v0 }
  0xea   : > { %2439 = vmatprep.subr.mxu1 %v3180_v0  ;;  %2443 = vmatprep.mubr.msk.f32.mxu1 %vm3181_vm0, %v3180_v0 }
  0xee   : > { %s2350_s5 = sshll.u32 %s3989_s29, 1 }
 0x1a8   : > { %v2431_v14 = vpop.f32.mrf.mxu1  ;;  %v879_v15 = vpop.f32.mrf.mxu0 }
 0x1a9   : > { %v3659_v16 = vadd.f32 %v2431_v14, %v2318_v12  ;;  %v880_v18 = vadd.f32 %v2316_v13, %v879_v15 }
 0x1aa   : > { %v969_v17 = vpop.f32.mrf.mxu1  ;;  %v2420_v19 = vpop.f32.mrf.mxu0 }
 0x1ab   : > { %1073 = vrot.lane.b32.xlu1 %v3659_v16, %s3182_s21  ;;  %2433 = vmatpush3.xpose.msk.msra.mxu0 %vm979_vm2, %v3659_v16  ;;  %v3665_v20 = vadd.f32 %v2318_v12, %v969_v17  ;;  %v3667_v21 = vmul.f32 0.35355338, %v880_v18 }
 0x1ac   : > { %2434 = vmatprep.subr.mxu0 %v3180_v0 }
 0x1af   : > { %1071 = vrot.lane.b32.xlu1 %v3665_v20, %s3182_s21  ;;  %2435 = vmatpush3.xpose.msk.msra.mxu0 %vm979_vm2, %v3665_v20  ;;  %s3192_s21 = smov [#allocation18]  }
 0x1b0   : > { %2453 = vmatprep.subr.mxu0 %v3180_v0 }
 0x1b2   : > { %2437 = vmatmul.mubr.msk.f32.vlgmr.msra.gmra.mxu0 %vm979_vm2, %v3667_v21 }
 0x1b3   : > { %1153 = vrot.lane.b32.xlu1 %v3665_v20, %s3183_s11  ;;  %2457 = vmatprep.mubr.msk.f32.mxu0 %vm3181_vm0, %v3180_v0 }
 0x1b7   : > { %1151 = vrot.lane.b32.xlu1 %v3667_v21, %s3183_s11 }
 0x21d   : > { %v1074_v22 = vpop.permute.xlu1 %1073 }
 0x21e   : > { %2440 = vmatpush3.msra.mxu1 %v1074_v22 }
 0x21f   : > { %2441 = vmatprep.subr.mxu1 %v3180_v0 }
 0x221   : > { %v1072_v23 = vpop.permute.xlu1 %1071 }
 0x222   : > { %2442 = vmatpush3.msra.mxu1 %v1072_v23 }
 0x223   : > { %2446 = vmatprep.subr.mxu1 %v3180_v0 }
 0x225   : > { %v1154_v38 = vpop.permute.xlu1 %1153 }
 0x229   : > { %v1152_v39 = vpop.permute.xlu1 %1151 }
 0x272   : > { %v1055_v25 = vpop.f32.mrf.mxu0 }
 0x273   : > { %v1056_v26 = vadd.f32 %v1055_v25, %v3683_v24 }
 0x274   : > { %v2438_v27 = vpop.f32.mrf.mxu0 }
 0x275   : > { %v1060_v28 = vsel %vm1059_vm3, %v1056_v26, -inf }
 0x276   : > { %1061 = vmax.xlane.f32.xlu0 %v1060_v28 }
 0x2ff   : > { %v1062_v29 = vpop.xlane.xlu0 %1061 }
 0x300   : > { %v1063_v30 = vsub.f32 %v1056_v26, %v1062_v29 }
 0x302   : > { %v1064_v31 = vmul.f32 1.442695, %v1063_v30 }
 0x304   : > { %2743 = vpow2.f32 %v1064_v31 }
 0x311   : > { %v2744_v32 = vpop.eup %2743 }
 0x312   : > { %v1066_v33 = vsel %vm1059_vm3, %v2744_v32, 0.0 }
 0x313   : > { %1067 = vadd.xlane.f32.xlu0 %v1066_v33 }
 0x329   : > { %1155 = vrot.lane.b32.xlu0 %v3659_v16, %s3183_s11  ;;  %s3985_s11 = sld [smem:[#allocation46_spill]] }
 0x39c   : > { %v1068_v34 = vpop.xlane.xlu0 %1067 }
 0x39d   : > { %2745 = vrcp.f32 %v1068_v34 }
 0x3a0   : > { %v1156_v37 = vpop.permute.xlu0 %1155 }
 0x3aa   : > { %v2746_v35 = vpop.eup %2745 }
 0x3ab   : > { %v1070_v36 = vmul.f32 %v2746_v35, %v2744_v32  ;;  %v1689_v35 = vld [vmem:[#allocation12 + $0x18] sm:$0xff] }
 0x3ad   : > { %2444 = vmatmul.mubr.msk.f32.vlgmr.msra.gmra.mxu1 %vm1059_vm3, %v1070_v36  ;;  %v1687_v36 = vld [vmem:[#allocation12 + $0x8] sm:$0xff] }
 0x3ae   : > { %2447 = vmatpush3.xpose.msk.msra.mxu1 %vm979_vm2, %v1156_v37  ;;  %2450 = vmatprep.mubr.msk.f32.mxu1 %vm3181_vm0, %v3180_v0  ;;  %v1686_v37 = vld [vmem:[#allocation12] sm:$0xff] }
 0x3af   : > { %2448 = vmatprep.subr.mxu1 %v3180_v0 }
 0x3b2   : > { %2449 = vmatpush3.xpose.msk.msra.mxu1 %vm979_vm2, %v1154_v38  ;;  %v1774_v38 = vld [vmem:[#allocation14 + $0x18] sm:$0xff] }
 0x3b3   : > { %2467 = vmatprep.subr.mxu1 %v3180_v0 }
 0x3b5   : > { %2451 = vmatmul.mubr.msk.f32.vlgmr.msra.gmra.mxu1 %vm979_vm2, %v1152_v39 }
 0x3b6   : > { %2471 = vmatprep.mubr.msk.f32.mxu1 %vm3181_vm0, %v3180_v0 }
 0x46d   : > { %v1146_v40 = vpop.f32.mrf.mxu1 }
 0x46e   : > { %1150 = vst.msk [vmem:[#allocation2] sm:$0xff] %vm979_vm2, %v1146_v40 }
 0x46f   : > { %v2445_v41 = vpop.f32.mrf.mxu1 }
 0x475   : > { %v1229_v42 = vpop.f32.mrf.mxu1 }
 0x476   : > { %v1230_v43 = vadd.f32 %v1229_v42, %v3683_v24 }
 0x477   : > { %v2452_v44 = vpop.f32.mrf.mxu1 }
 0x478   : > { %v1233_v45 = vsel %vm1059_vm3, %v1230_v43, -inf  ;;  %v1772_v44 = vld [vmem:[#allocation14 + $0x8] sm:$0xff] }
 0x479   : > { %1234 = vmax.xlane.f32.xlu1 %v1233_v45  ;;  %v1771_v45 = vld [vmem:[#allocation14] sm:$0xff] }
 0x48a   : > { %1246 = vrot.lane.b32.xlu1 %v3659_v16, %s3184_s14 }
 0x48e   : > { %1333 = vrot.lane.b32.xlu1 %v3659_v16, %s3185_s17 }
 0x492   : > { %1331 = vrot.lane.b32.xlu1 %v3665_v20, %s3185_s17 }
 0x496   : > { %1329 = vrot.lane.b32.xlu1 %v3667_v21, %s3185_s17 }
 0x502   : > { %v1235_v46 = vpop.xlane.xlu1 %1234 }
 0x503   : > { %v1236_v47 = vsub.f32 %v1230_v43, %v1235_v46  ;;  %v1773_v43 = vld [vmem:[#allocation14 + $0x10] sm:$0xff]  ;;  %v2337_v46 = vld [vmem:[%s3983_s6] ss:$0 sm:$0xff]  ;;  %s3990_s6 = sld [smem:[#allocation27_spill]] }
 0x505   : > { %v1237_v48 = vmul.f32 1.442695, %v1236_v47 }
 0x506   : > { %v1247_v49 = vpop.permute.xlu1 %1246 }
 0x507   : > { %2747 = vpow2.f32 %v1237_v48  ;;  %2454 = vmatpush3.msra.mxu0 %v1247_v49 }
 0x508   : > { %2455 = vmatprep.subr.mxu0 %v3180_v0 }
 0x509   : > { %s2098_s9 = sadd.s32 %s3990_s6, %s2350_s5  ;;  %s2087_s5 = scalar_lea.sflag [#allocation5], %s3589_s18 }
 0x50a   : > { %v1334_v54 = vpop.permute.xlu1 %1333 }
 0x50e   : > { %v1332_v57 = vpop.permute.xlu1 %1331 }
 0x512   : > { %v1330_v58 = vpop.permute.xlu1 %1329 }
 0x514   : > { %v2748_v50 = vpop.eup %2747 }
 0x515   : > { %v1239_v51 = vsel %vm1059_vm3, %v2748_v50, 0.0 }
 0x516   : > { %1240 = vadd.xlane.f32.xlu0 %v1239_v51  ;;  %v2339_v51 = vld [vmem:[%s3984_s15] ss:$0 sm:$0xff]  ;;  %s3991_s15 = sld [smem:[#allocation33_spill]] }
 0x51c   : > { %p3996_p6 = scmp.ne.s32.totalorder %s3991_s15, 0 }
 0x52c   : > { %1244 = vrot.lane.b32.xlu0 %v3665_v20, %s3184_s14 }
 0x59f   : > { %v1241_v52 = vpop.xlane.xlu0 %1240 }
 0x5a0   : > { %2749 = vrcp.f32 %v1241_v52 }
 0x5a3   : > { %v1245_v53 = vpop.permute.xlu0 %1244 }
 0x5a4   : > { %2456 = vmatpush3.msra.mxu0 %v1245_v53 }
 0x5a5   : > { %2460 = vmatprep.subr.mxu0 %v3180_v0 }
 0x5ad   : > { %v2750_v55 = vpop.eup %2749 }
 0x5ae   : > { %v1243_v56 = vmul.f32 %v2750_v55, %v2748_v50 }
 0x5b0   : > { %2458 = vmatmul.mubr.msk.f32.vlgmr.msra.gmra.mxu0 %vm1059_vm3, %v1243_v56 }
 0x5b1   : > { %2461 = vmatpush3.xpose.msk.msra.mxu0 %vm979_vm2, %v1334_v54  ;;  %2464 = vmatprep.mubr.msk.f32.mxu0 %vm3181_vm0, %v3180_v0 }
 0x5b2   : > { %2462 = vmatprep.subr.mxu0 %v3180_v0 }
 0x5b5   : > { %2463 = vmatpush3.xpose.msk.msra.mxu0 %vm979_vm2, %v1332_v57 }
 0x5b6   : > { %2481 = vmatprep.subr.mxu0 %v3180_v0 }
 0x5b8   : > { %2465 = vmatmul.mubr.msk.f32.vlgmr.msra.gmra.mxu0 %vm979_vm2, %v1330_v58 }
 0x5b9   : > { %2485 = vmatprep.mubr.msk.f32.mxu0 %vm3181_vm0, %v3180_v0 }
 0x670   : > { %v1319_v59 = vpop.f32.mrf.mxu0 }
 0x672   : > { %v2459_v60 = vpop.f32.mrf.mxu0 }
 0x678   : > { %v1407_v61 = vpop.f32.mrf.mxu0 }
 0x679   : > { %v1408_v62 = vadd.f32 %v1407_v61, %v3683_v24 }
 0x67a   : > { %v2466_v63 = vpop.f32.mrf.mxu0 }
 0x67b   : > { %v1411_v1 = vsel %vm1059_vm3, %v1408_v62, -inf  ;;  %v1888_v63 = vld [vmem:[#allocation15 + $0x10] sm:$0xff] }
 0x67c   : > { %1412 = vmax.xlane.f32.xlu1 %v1411_v1  ;;  %v1887_v1 = vld [vmem:[#allocation15 + $0x8] sm:$0xff] }
 0x68d   : > { %1422 = vrot.lane.b32.xlu1 %v3665_v20, %s3186_s7 }
 0x691   : > { %1511 = vrot.lane.b32.xlu1 %v3659_v16, %s3187_s25 }
 0x695   : > { %1507 = vrot.lane.b32.xlu1 %v3667_v21, %s3187_s25 }
 0x705   : > { %v1413_v2 = vpop.xlane.xlu1 %1412 }
 0x706   : > { %v1414_v3 = vsub.f32 %v1408_v62, %v1413_v2  ;;  %v1889_v62 = vld [vmem:[#allocation15 + $0x18] sm:$0xff] }
 0x707   : > { %v1974_v2 = vld [vmem:[#allocation17 + $0x18] sm:$0xff] }
 0x708   : > { %v1415_v4 = vmul.f32 1.442695, %v1414_v3 }
 0x709   : > { %v1423_v9 = vpop.permute.xlu1 %1422 }
 0x70a   : > { %2751 = vpow2.f32 %v1415_v4 }
 0x70d   : > { %v1512_v13 = vpop.permute.xlu1 %1511 }
 0x711   : > { %v1508_v15 = vpop.permute.xlu1 %1507 }
 0x717   : > { %v2752_v5 = vpop.eup %2751 }
 0x718   : > { %v1417_v6 = vsel %vm1059_vm3, %v2752_v5, 0.0 }
 0x719   : > { %1418 = vadd.xlane.f32.xlu0 %v1417_v6 }
 0x72f   : > { %1424 = vrot.lane.b32.xlu0 %v3659_v16, %s3186_s7  ;;  %s3986_s7 = sld [smem:[#allocation47_spill]] }
 0x733   : > { %1509 = vrot.lane.b32.xlu0 %v3665_v20, %s3187_s25  ;;  %s2351_s25 = sshll.u32 %s2098_s9, 7  ;;  %s3007_s9 = sshll.u32 %s3192_s21, 4  ;;  %s3008_s9 = int_to_ptr.vmem [resolvable:$false] %s3007_s9 }
 0x7a2   : > { %v1419_v7 = vpop.xlane.xlu0 %1418 }
 0x7a3   : > { %2753 = vrcp.f32 %v1419_v7  ;;  %v2341_v7 = vld [vmem:[%s3985_s11] ss:$0 sm:$0xff]  ;;  %s3992_s11 = sld [smem:[#allocation52_spill]] }
 0x7a6   : > { %v1425_v8 = vpop.permute.xlu0 %1424 }
 0x7a7   : > { %2468 = vmatpush3.msra.mxu1 %v1425_v8 }
 0x7a8   : > { %2469 = vmatprep.subr.mxu1 %v3180_v0 }
 0x7a9   : > { %2470 = vmatpush3.msra.mxu1 %v1423_v9  ;;  %v2342_v9 = vld [vmem:[%s3986_s7] ss:$0 sm:$0xff]  ;;  %s3993_s7 = sld [smem:[#allocation53_spill]] }
 0x7aa   : > { %2474 = vmatprep.subr.mxu1 %v3180_v0  ;;  %v1510_v14 = vpop.permute.xlu0 %1509 }
 0x7b0   : > { %v2754_v10 = vpop.eup %2753 }
 0x7b1   : > { %v1421_v12 = vmul.f32 %v2754_v10, %v2752_v5 }
 0x7b3   : > { %2472 = vmatmul.mubr.msk.f32.vlgmr.msra.gmra.mxu1 %vm1059_vm3, %v1421_v12 }
 0x7b4   : > { %2475 = vmatpush3.xpose.msk.msra.mxu1 %vm979_vm2, %v1512_v13  ;;  %2478 = vmatprep.mubr.msk.f32.mxu1 %vm3181_vm0, %v3180_v0  ;;  %v1973_v13 = vld [vmem:[#allocation17 + $0x10] sm:$0xff] }
 0x7b5   : > { %2476 = vmatprep.subr.mxu1 %v3180_v0 }
 0x7b8   : > { %2477 = vmatpush3.xpose.msk.msra.mxu1 %vm979_vm2, %v1510_v14  ;;  %v1972_v14 = vld [vmem:[#allocation17 + $0x8] sm:$0xff] }
 0x7b9   : > { %2499 = vmatprep.subr.mxu1 %v3180_v0 }
 0x7bb   : > { %2479 = vmatmul.mubr.msk.f32.vlgmr.msra.gmra.mxu1 %vm979_vm2, %v1508_v15  ;;  %v1971_v15 = vld [vmem:[#allocation17] sm:$0xff] }
 0x7bc   : > { %2507 = vmatprep.mubr.msk.f32.mxu1 %vm3181_vm0, %v3180_v0  ;;  %2500 = vmatpush3.msra.mxu1 %v1774_v38 }
 0x7bd   : > { %2501 = vmatprep.subr.mxu1 %v3180_v0 }
 0x7be   : > { %2502 = vmatpush3.msra.mxu1 %v1773_v43 }
 0x7bf   : > { %2503 = vmatprep.subr.mxu1 %v3180_v0 }
 0x7c0   : > { %2504 = vmatpush3.msra.mxu1 %v1772_v44 }
 0x7c1   : > { %2505 = vmatprep.subr.mxu1 %v3180_v0 }
 0x7c2   : > { %2506 = vmatpush3.msra.mxu1 %v1771_v45 }
 0x7c3   : > { %2521 = vmatprep.subr.mxu1 %v3180_v0 }
 0x873   : > { %v1497_v17 = vpop.f32.mrf.mxu1 }
 0x875   : > { %v2473_v18 = vpop.f32.mrf.mxu1 }
 0x87b   : > { %v1585_v19 = vpop.f32.mrf.mxu1 }
 0x87c   : > { %v1586_v21 = vadd.f32 %v1585_v19, %v3683_v24 }
 0x87d   : > { %v2480_v22 = vpop.f32.mrf.mxu1 }
 0x87e   : > { %v1589_v23 = vsel %vm1059_vm3, %v1586_v21, -inf }
 0x87f   : > { %1590 = vmax.xlane.f32.xlu0 %v1589_v23  ;;  %v2345_v23 = vld [vmem:[%s3988_s0] ss:$0 sm:$0xff]  ;;  %s3994_s0 = sld [smem:[#allocation54_spill]] }
 0x885   : > { %s3995_s29 = smov %s3994_s0  ;;  %s2100_s6 = scalar_lea.hbm %s3994_s0, %s2351_s25 }
 0x895   : > { %1602 = vrot.lane.b32.xlu0 %v3659_v16, %s3188_s12 }
 0x899   : > { %1324 = vrot.lane.b32.xlu0 %v1319_v59, %s3189_s13  ;;  %s3987_s13 = sld [smem:[#allocation49_spill]] }
 0x908   : > { %v1591_v25 = vpop.xlane.xlu0 %1590 }
 0x909   : > { %v1592_v26 = vsub.f32 %v1586_v21, %v1591_v25 }
 0x90b   : > { %v1593_v27 = vmul.f32 1.442695, %v1592_v26 }
 0x90c   : > { %v1603_v28 = vpop.permute.xlu0 %1602 }
 0x90d   : > { %2755 = vpow2.f32 %v1593_v27  ;;  %2482 = vmatpush3.msra.mxu0 %v1603_v28 }
 0x90e   : > { %2483 = vmatprep.subr.mxu0 %v3180_v0 }
 0x910   : > { %v1325_v29 = vpop.permute.xlu0 %1324 }
 0x911   : > { %1328 = vst.msk [vmem:[#allocation2] sm:$0xff] %vm1327_vm4, %v1325_v29 }
 0x91a   : > { %v2756_v24 = vpop.eup %2755 }
 0x91b   : > { %v1595_v30 = vsel %vm1059_vm3, %v2756_v24, 0.0 }
 0x91c   : > { %1596 = vadd.xlane.f32.xlu1 %v1595_v30 }
 0x92d   : > { %1600 = vrot.lane.b32.xlu1 %v3665_v20, %s3188_s12  ;;  %v1688_v20 = vld [vmem:[#allocation12 + $0x10] sm:$0xff]  ;;  %s796_s12 = scalar_lea.vmem [#allocation18], %s2306_s10  ;;  %s3009_s10 = scalar_lea.vmem %s3008_s9, 256 }
 0x931   : > { %1502 = vrot.lane.b32.xlu1 %v1497_v17, %s3190_s3  ;;  %v2343_v17 = vld [vmem:[%s3987_s13] ss:$0 sm:$0xff]  ;;  %s2102_s13 = sshll.u32 %s796_s12, 4  ;;  %s2103_s13 = int_to_ptr.vmem [resolvable:$true] %s2102_s13 }
 0x932   : > { %s3003_s2 = scalar_lea.vmem %s2103_s13, 128  ;;  %p3010_p10 = scmp.lt.s32.totalorder %s2103_s13, %s3008_s9 }
 0x933   : > { %p3004_p11 = scmp.ne.s32.totalorder %s2103_s13, %s3003_s2  ;;  %p3011_p8 = scmp.lt.s32.totalorder %s3009_s10, %s3003_s2 }
 0x935   : > { %p3005_p5 = pnand %p3004_p11, %p3996_p6  ;;  %p3012_p9 = por %p3011_p8, %p3010_p10 }
 0x937   : > { %p3006_p7 = pneg %p3005_p5 }
 0x939   : > { %p3013_p3 = pnand %p3012_p9, %p3006_p7 }
 0x9a5   : > { %v1597_v16 = vpop.xlane.xlu1 %1596 }
 0x9a6   : > { %2757 = vrcp.f32 %v1597_v16 }
 0x9a9   : > { %v1601_v31 = vpop.permute.xlu1 %1600 }
 0x9aa   : > { %2484 = vmatpush3.msra.mxu0 %v1601_v31 }
 0x9ab   : > { %2488 = vmatprep.subr.mxu0 %v3180_v0 }
 0x9ad   : > { %v1503_v32 = vpop.permute.xlu1 %1502 }
 0x9ae   : > { %1506 = vst.msk [vmem:[#allocation2] sm:$0xff] %vm1505_vm5, %v1503_v32 }
 0x9b3   : > { %v2758_v33 = vpop.eup %2757 }
 0x9b4   : > { %v1599_v34 = vmul.f32 %v2758_v33, %v2756_v24 }
 0x9b6   : > { %2486 = vmatmul.mubr.msk.f32.vlgmr.msra.gmra.mxu0 %vm1059_vm3, %v1599_v34 }
 0x9b7   : > { %2496 = vmatprep.mubr.msk.f32.mxu0 %vm3181_vm0, %v3180_v0  ;;  %2489 = vmatpush3.msra.mxu0 %v1689_v35 }
 0x9b8   : > { %2490 = vmatprep.subr.mxu0 %v3180_v0 }
 0x9b9   : > { %2491 = vmatpush3.msra.mxu0 %v1688_v20  ;;  %v2347_v20 = vld [vmem:[%s3992_s11] ss:$0 sm:$0xff] }
 0x9ba   : > { %2492 = vmatprep.subr.mxu0 %v3180_v0 }
 0x9bb   : > { %2493 = vmatpush3.msra.mxu0 %v1687_v36 }
 0x9bc   : > { %2494 = vmatprep.subr.mxu0 %v3180_v0 }
 0x9bd   : > { %2495 = vmatpush3.msra.mxu0 %v1686_v37  ;;  %v2348_v37 = vld [vmem:[%s3993_s7] ss:$0 sm:$0xff] }
 0x9be   : > { %2510 = vmatprep.subr.mxu0 %v3180_v0 }
 0xa76   : > { %v1675_v39 = vpop.f32.mrf.mxu0 }
 0xa77   : > { %1680 = vrot.lane.b32.xlu0 %v1675_v39, %s3191_s16 }
 0xa78   : > { %v2487_v40 = vpop.f32.mrf.mxu0 }
 0xae9   : > { %v1681_v41 = vpop.permute.xlu0 %1680 }
 0xaea   : > { %1684 = vst.msk [vmem:[#allocation2] sm:$0xff] %vm1683_vm6, %v1681_v41 }
 0xaf1   : > { %v1685_v42 = vld [vmem:[#allocation2] sm:$0xff] }
 0xaf2   : > { %2497 = vmatmul.mubr.msk.f32.vlgmr.msra.gmra.mxu0 %vm809_vm1, %v1685_v42 }
 0xaf3   : > { %2518 = vmatprep.mubr.msk.f32.mxu0 %vm3181_vm0, %v3180_v0  ;;  %2511 = vmatpush3.msra.mxu0 %v1889_v62 }
 0xaf4   : > { %2512 = vmatprep.subr.mxu0 %v3180_v0 }
 0xaf5   : > { %2513 = vmatpush3.msra.mxu0 %v1888_v63 }
 0xaf6   : > { %2514 = vmatprep.subr.mxu0 %v3180_v0 }
 0xaf7   : > { %2515 = vmatpush3.msra.mxu0 %v1887_v1 }
 0xaf8   : > { %2516 = vmatprep.subr.mxu0 %v3180_v0 }
 0xbb2   : > { %v1766_v47 = vpop.f32.mrf.mxu0 }
 0xbb3   : > { %v1767_v48 = vadd.f32 %v2337_v46, %v1766_v47 }
 0xbb4   : > { %v2498_v49 = vpop.f32.mrf.mxu0 }
 0xbb5   : > { %v1770_v50 = vmax.f32 %v1767_v48, 0.0 }
 0xbb7   : > { %2508 = vmatmul.mubr.msk.f32.vlgmr.msra.gmra.mxu1 %vm809_vm1, %v1770_v50 }
 0xbb8   : > { %2529 = vmatprep.mubr.msk.f32.mxu1 %vm3181_vm0, %v3180_v0  ;;  %2522 = vmatpush3.msra.mxu1 %v1974_v2 }
 0xbb9   : > { %2523 = vmatprep.subr.mxu1 %v3180_v0 }
 0xbba   : > { %2524 = vmatpush3.msra.mxu1 %v1973_v13 }
 0xbbb   : > { %2525 = vmatprep.subr.mxu1 %v3180_v0 }
 0xbbc   : > { %2526 = vmatpush3.msra.mxu1 %v1972_v14 }
 0xbbd   : > { %2527 = vmatprep.subr.mxu1 %v3180_v0 }
 0xbbe   : > { %2528 = vmatpush3.msra.mxu1 %v1971_v15 }
 0xc77   : > { %v1851_v52 = vpop.f32.mrf.mxu1 }
 0xc78   : > { %v1852_v53 = vadd.f32 %v2339_v51, %v1851_v52 }
 0xc79   : > { %v2509_v54 = vpop.f32.mrf.mxu1 }
 0xc7a   : > { %v1855_v55 = vadd.f32 %v1852_v53, %v3641_v11  ;;  %v1886_v11 = vld [vmem:[#allocation15] sm:$0xff] }
 0xc7b   : > { %2517 = vmatpush3.msra.mxu0 %v1886_v11 }
 0xc7c   : > { %v1858_v56 = vsel %vm809_vm1, %v1855_v55, 0.0 }
 0xc7d   : > { %1859 = vadd.xlane.f32.xlu1 %v1858_v56 }
 0xd06   : > { %v1860_v57 = vpop.xlane.xlu1 %1859 }
 0xd07   : > { %v1862_v58 = vmul.f32 0.03125, %v1860_v57 }
 0xd09   : > { %v1863_v59 = vsub.f32 %v1855_v55, %v1862_v58 }
 0xd0b   : > { %v1864_v60 = vmul.f32 %v1863_v59, %v1863_v59 }
 0xd0d   : > { %v1865_v61 = vsel %vm809_vm1, %v1864_v60, 0.0 }
 0xd0e   : > { %1866 = vadd.xlane.f32.xlu0 %v1865_v61 }
 0xd97   : > { %v1867_v3 = vpop.xlane.xlu0 %1866 }
 0xd98   : > { %v1868_v4 = vmul.f32 0.03125, %v1867_v3 }
 0xd9a   : > { %v1869_v5 = vadd.f32 1e-05, %v1868_v4 }
 0xd9c   : > { %2759 = vrsqrt.f32 %v1869_v5 }
 0xda9   : > { %v2760_v6 = vpop.eup %2759 }
 0xdaa   : > { %v1871_v8 = vmul.f32 %v2760_v6, %v1863_v59 }
 0xdac   : > { %v1878_v10 = vmul.f32 %v2341_v7, %v1871_v8 }
 0xdae   : > { %v1885_v12 = vadd.f32 %v2342_v9, %v1878_v10 }
 0xdb0   : > { %2519 = vmatmul.mubr.msk.f32.vlgmr.msra.gmra.mxu0 %vm809_vm1, %v1885_v12 }
 0xe70   : > { %v1966_v18 = vpop.f32.mrf.mxu0 }
 0xe71   : > { %v1967_v19 = vadd.f32 %v2343_v17, %v1966_v18 }
 0xe72   : > { %v2520_v21 = vpop.f32.mrf.mxu0 }
 0xe73   : > { %v1970_v22 = vmax.f32 %v1967_v19, 0.0 }
 0xe75   : > { %2530 = vmatmul.mubr.msk.f32.vlgmr.msra.gmra.mxu1 %vm809_vm1, %v1970_v22 }
 0xf35   : > { %v2051_v25 = vpop.f32.mrf.mxu1 }
 0xf36   : > { %v2052_v26 = vadd.f32 %v2345_v23, %v2051_v25 }
 0xf37   : > { %v2531_v0 = vpop.f32.mrf.mxu1 }
 0xf38   : > { %v2055_v27 = vadd.f32 %v2052_v26, %v1885_v12 }
 0xf3a   : > { %v2058_v28 = vsel %vm809_vm1, %v2055_v27, 0.0 }
 0xf3b   : > { %2059 = vadd.xlane.f32.xlu0 %v2058_v28 }
 0xfc4   : > { %v2060_v29 = vpop.xlane.xlu0 %2059 }
 0xfc5   : > { %v2061_v24 = vmul.f32 0.03125, %v2060_v29 }
 0xfc7   : > { %v2062_v30 = vsub.f32 %v2055_v27, %v2061_v24 }
 0xfc9   : > { %v2063_v16 = vmul.f32 %v2062_v30, %v2062_v30 }
 0xfcb   : > { %v2064_v31 = vsel %vm809_vm1, %v2063_v16, 0.0 }
 0xfcc   : > { %2065 = vadd.xlane.f32.xlu1 %v2064_v31 }
0x1055   : > { %v2066_v32 = vpop.xlane.xlu1 %2065 }
0x1056   : > { %v2067_v33 = vmul.f32 0.03125, %v2066_v32 }
0x1058   : > { %v2068_v34 = vadd.f32 1e-05, %v2067_v33 }
0x105a   : > { %2761 = vrsqrt.f32 %v2068_v34 }
0x1067   : > { %v2762_v35 = vpop.eup %2761 }
0x1068   : > { %v2070_v36 = vmul.f32 %v2762_v35, %v2062_v30 }
0x106a   : > { %v2077_v38 = vmul.f32 %v2347_v20, %v2070_v36 }
0x106c   : > { %v2084_v39 = vadd.f32 %v2348_v37, %v2077_v38 }
0x106e   : > { %2085 = vst.msk [vmem:[%s796_s12] sm:$0xff] %vm809_vm1, %v2084_v39 }
0x106f   : > { %3016 = shalt.err (!%p3013_p3)
}
0x1070   : > { %s3017_s11 = scalar_lea.hbm %s2100_s6, 128  ;;  %s3021_s17 = scalar_lea.hbm %s3995_s29, 512 }
0x1071   : > { %p3018_p2 = scmp.ne.s32.totalorder %s2100_s6, %s3017_s11  ;;  %p3022_p0 = scmp.lt.s32.totalorder %s2100_s6, %s3995_s29 }
0x1072   : > { %p3023_p1 = scmp.lt.s32.totalorder %s3021_s17, %s3017_s11 }
0x1073   : > { %p3019_p4 = pnand %p3018_p2, %p3996_p6 }
0x1074   : > { %p3024_p12 = por %p3023_p1, %p3022_p0 }
0x1075   : > { %p3020_p13 = pneg %p3019_p4 }
0x1077   : > { %p3025_p11 = pnand %p3024_p12, %p3020_p13 }
0x1079   : > { %3028 = shalt.err (!%p3025_p11)
}
0x107a   : > { %2562 = dma.vmem_to_hbm [thread:$0]  (%p3996_p6), %s2103_s13, 128, %s2100_s6, %s2087_s5  }
0x107b PF: > { %s3997_s12 = sld [smem:[#allocation26_spill]]  ;;  %p2610_p5 = scmp.ge.s32.totalorder %s3167_s28, 2 }
0x107c   : > { %s3998_s3 = sld [smem:[#allocation34_spill]] }
0x1081   : > { %s2114_s16 = sand.u32 1, %s3997_s12  }
0x1082   : > { %p3999_p7 = scmp.ne.s32.totalorder %s3998_s3, 0  ;;  %s2115_s0 = scalar_lea.sflag [#allocation5], %s2114_s16 }
0x1084   : > { %p2594_p10 = pnand %p2610_p5, %p3999_p7 }
0x1086   : > { %p2595_p8 = pneg %p2594_p10 }
0x1088   : > { %3110 = dma.done.wait (%p2595_p8), %s2115_s0, 128  }
0x1089   : > { %3112 = vsyncadd (%p2595_p8), %s2115_s0, 4294967168  ;;  %s41_s28 = sadd.s32 1, %s3167_s28   ;;  %s4001_s15 = sld [smem:[#allocation31_spill]] }
0x108a   : > { %p3827_p9 = scmp.ge.s32.totalorder %s41_s28, 6   ;;  %s4002_s13 = sld [smem:[#allocation32_spill]] }
0x108b   : > { %s4004_s0 = smov %s3119_s30  ;;  %s4005_s30 = smov %s3123_s20 }
0x108c   : > { %s4006_s20 = smov %s3558_s19  ;;  %s4007_s21 = smov %s3131_s1 }
0x108d   : > { %s4008_s1 = smov %s3135_s22  ;;  %s4009_s22 = smov %s3529_s4 }
0x108e   : > { %s4010_s2 = smov %s3143_s23  ;;  %s4011_s23 = smov %s3147_s24 }
0x108f   : > { %s4012_s24 = smov %s3532_s8  ;;  %s4013_s25 = smov %s3159_s26 }
0x1090   : > { %s4014_s3 = smov %s3163_s27  ;;  %s4015_s26 = smov %s4001_s15 }
0x1091   : > { %s4016_s27 = smov %s4002_s13  ;;  %40 = sbr.rel (!%p3827_p9) target bundleno = 36 (0x24), region = 189 }
0x1096   :  { %2120 = vsyncpa [#allocation4], 1 }
0x1097   :  { %2122 = vsyncpa [#allocation4 + $0x1], 1 }
0x1098   :  { %2123 = vsyncpa [#allocation7], 1 }
0x1099   :  { %2125 = vsyncpa [#allocation7 + $0x1], 1 }
0x109a   :  { %2126 = vsyncpa [#allocation10], 1 }
0x109b   :  { %2127 = vsyncpa [#allocation13], 1 }
0x109c   :  { %2128 = vsyncpa [#allocation16], 1 }
0x109d   :  { %2129 = vsyncpa [#allocation5], 1 }
0x109e   :  { %2131 = vsyncpa [#allocation5 + $0x1], 1 }

// kernel: tpu_custom_call.1
= control target key start
LH: loop header
LB: loop body
LE: loop exit
PB: predicated region body
PF: predicated region fallthrough
CT: control target
= control target key end

     0   :  { %s3874_s0 = inlined_call_operand.hbm [shape: f32[2,16,32], index: 0, kind: input, shape index: {}]   ;;  %s3875_s1 = inlined_call_operand.hbm [shape: f32[2,16,32], index: 1, kind: input, shape index: {}]   ;;  %s3876_s2 = inlined_call_operand.hbm [shape: f32[16,16], index: 2, kind: input, shape index: {}]   ;;  %s3877_s3 = inlined_call_operand.hbm [shape: f32[32,32], index: 3, kind: input, shape index: {}]   ;;  %s3878_s4 = inlined_call_operand.vmem [shape: f32[1,32], index: 4, kind: input, shape index: {}]   ;;  %s3879_s5 = inlined_call_operand.hbm [shape: f32[32,64], index: 5, kind: input, shape index: {}]   ;;  %s3880_s6 = inlined_call_operand.vmem [shape: f32[1,64], index: 6, kind: input, shape index: {}]   ;;  %s3881_s7 = inlined_call_operand.hbm [shape: f32[32,32], index: 7, kind: input, shape index: {}]   ;;  %s3882_s8 = inlined_call_operand.vmem [shape: f32[1,32], index: 8, kind: input, shape index: {}]   ;;  %s3883_s9 = inlined_call_operand.hbm [shape: f32[32,32], index: 9, kind: input, shape index: {}]   ;;  %s3884_s10 = inlined_call_operand.vmem [shape: f32[1,32], index: 10, kind: input, shape index: {}]   ;;  %s3885_s11 = inlined_call_operand.vmem [shape: f32[1,32], index: 11, kind: input, shape index: {}]   ;;  %s3886_s12 = inlined_call_operand.vmem [shape: f32[1,32], index: 12, kind: input, shape index: {}]   ;;  %s3887_s13 = inlined_call_operand.hbm [shape: f32[32,32], index: 13, kind: input, shape index: {}]   ;;  %s3888_s14 = inlined_call_operand.vmem [shape: f32[1,32], index: 14, kind: input, shape index: {}]   ;;  %s3889_s15 = inlined_call_operand.hbm [shape: f32[32,32], index: 15, kind: input, shape index: {}]   ;;  %s3890_s16 = inlined_call_operand.vmem [shape: f32[1,32], index: 16, kind: input, shape index: {}]   ;;  %s3891_s17 = inlined_call_operand.vmem [shape: f32[1,32], index: 17, kind: input, shape index: {}]   ;;  %s3892_s18 = inlined_call_operand.vmem [shape: f32[1,32], index: 18, kind: input, shape index: {}]   ;;  %s3893_s19 = inlined_call_operand.hbm [shape: f32[2,16,32], index: 19, kind: output, shape index: {}]  }
   0x1   :  { %3913 = sst [smem:[#allocation35_spill]] %s3874_s0 }
   0x2   :  { %3914 = sst [smem:[#allocation36_spill]] %s3875_s1 }
   0x3   :  { %3915 = sst [smem:[#allocation37_spill]] %s3876_s2 }
   0x4   :  { %3916 = sst [smem:[#allocation38_spill]] %s3877_s3 }
   0x5   :  { %3917 = sst [smem:[#allocation39_spill]] %s3878_s4 }
   0x6   :  { %3918 = sst [smem:[#allocation40_spill]] %s3879_s5 }
   0x7   :  { %3919 = sst [smem:[#allocation41_spill]] %s3880_s6 }
   0x8   :  { %3920 = sst [smem:[#allocation42_spill]] %s3881_s7 }
   0x9   :  { %3921 = sst [smem:[#allocation43_spill]] %s3882_s8 }
   0xa   :  { %3922 = sst [smem:[#allocation44_spill]] %s3883_s9 }
   0xb   :  { %3923 = sst [smem:[#allocation45_spill]] %s3884_s10 }
   0xc   :  { %3924 = sst [smem:[#allocation46_spill]] %s3885_s11 }
   0xd   :  { %3925 = sst [smem:[#allocation47_spill]] %s3886_s12 }
   0xe   :  { %3926 = sst [smem:[#allocation48_spill]] %s3887_s13 }
   0xf   :  { %3927 = sst [smem:[#allocation49_spill]] %s3888_s14 }
  0x10   :  { %3928 = sst [smem:[#allocation50_spill]] %s3889_s15 }
  0x11   :  { %3929 = sst [smem:[#allocation51_spill]] %s3890_s16 }
  0x12   :  { %3930 = sst [smem:[#allocation52_spill]] %s3891_s17 }
  0x13   :  { %3931 = sst [smem:[#allocation53_spill]] %s3892_s18 }
  0x14   :  { %3932 = sst [smem:[#allocation54_spill]] %s3893_s19 }
  0x15   :  { %24 = vsyncpa [#allocation4], 0 }
  0x16   :  { %26 = vsyncpa [#allocation4 + $0x1], 0 }
  0x17   :  { %27 = vsyncpa [#allocation7], 0 }
  0x18   :  { %29 = vsyncpa [#allocation7 + $0x1], 0 }
  0x19   :  { %30 = vsyncpa [#allocation10], 0 }
  0x1a   :  { %31 = vsyncpa [#allocation13], 0 }
  0x1b   :  { %32 = vsyncpa [#allocation16], 0 }
  0x1c   :  { %33 = vsyncpa [#allocation5], 0 }
  0x1d   :  { %35 = vsyncpa [#allocation5 + $0x1], 0  ;;  %s3293_s0 = smov 0   ;;  %s3295_s30 = smov 0  }
  0x1e   :  { %s3297_s20 = smov 0   ;;  %s3299_s21 = smov 0  }
  0x1f   :  { %s3301_s1 = smov 0   ;;  %s3303_s22 = smov 0  }
  0x20   :  { %s3305_s2 = smov 0   ;;  %s3307_s23 = smov 0  }
  0x21   :  { %s3309_s24 = smov 0   ;;  %s3311_s25 = smov 0  }
  0x22   :  { %s3313_s3 = smov 0   ;;  %s3315_s26 = smov 0  }
  0x23   :  { %s3317_s27 = smov 0   ;;  %s3319_s28 = smov 0  }
  0x24 LB: > { %3933 = sst [smem:[#allocation26_spill]] %s3139_s2  ;;  %s3364_s29 = sadd.s32 4294967295, %s3167_s28   ;;  %s3167_s28 = sphi %s3319_s28, %s41_s28   ;;  %s3163_s27 = sphi %s3317_s27, %s4016_s27   ;;  %s3159_s26 = sphi %s3315_s26, %s4015_s26   ;;  %s3155_s3 = sphi %s3313_s3, %s4014_s3   ;;  %s3151_s25 = sphi %s3311_s25, %s4013_s25   ;;  %s3147_s24 = sphi %s3309_s24, %s4012_s24   ;;  %s3143_s23 = sphi %s3307_s23, %s4011_s23   ;;  %s3139_s2 = sphi %s3305_s2, %s4010_s2   ;;  %s3135_s22 = sphi %s3303_s22, %s4009_s22   ;;  %s3131_s1 = sphi %s3301_s1, %s4008_s1   ;;  %s3127_s21 = sphi %s3299_s21, %s4007_s21   ;;  %s3123_s20 = sphi %s3297_s20, %s4006_s20   ;;  %s3119_s30 = sphi %s3295_s30, %s4005_s30   ;;  %s3115_s0 = sphi %s3293_s0, %s4004_s0  }
  0x25   : > { %3934 = sst [smem:[#allocation27_spill]] %s3151_s25  ;;  %p2289_p0 = scmp.ge.s32.totalorder %s3167_s28, 1 }
  0x26   : > { %3935 = sst [smem:[#allocation28_spill]] %s3155_s3  ;;  %p3901_p1 = scmp.eq.s32.totalorder %s3364_s29, 0 }
  0x27   : > { %p502_p2 = scmp.lt.s32.totalorder %s3167_s28, 5  ;;  %s3169_s18 = smov [#allocation9]  }
  0x28   : > { %s514_s17 = sshll.u32 %s3169_s18, 4  ;;  %s3170_s3 = smov [#allocation12]   ;;  %s515_s17 = int_to_ptr.vmem [resolvable:$true] %s514_s17 }
  0x29   : > { %p3369_p3 = pnand %p2289_p0, %p502_p2  ;;  %s546_s16 = sshll.u32 %s3170_s3, 4  ;;  %s547_s16 = int_to_ptr.vmem [resolvable:$true] %s546_s16 }
  0x2a   : > { %s3171_s14 = smov [#allocation15]   ;;  %s2774_s18 = scalar_lea.vmem %s515_s17, 512 }
  0x2b   : > { %s3936_s19 = scalar_select %p3369_p3, 1, 0 }
  0x2c   : > { %p2564_p4 = pneg %p3369_p3  ;;  %s584_s12 = sshll.u32 %s3171_s14, 4  ;;  %s585_s12 = int_to_ptr.vmem [resolvable:$true] %s584_s12 }
  0x2d   : > { %3937 = sst [smem:[#allocation29_spill]] %s3936_s19  ;;  %p2775_p7 = scmp.ne.s32.totalorder %s515_s17, %s2774_s18 }
  0x2e   : > { %p3377_p5 = pnand %p2564_p4, %p3901_p1  ;;  %p2782_p10 = scmp.lt.s32.totalorder %s515_s17, %s515_s17 }
  0x2f   : > { %p2783_p11 = scmp.lt.s32.totalorder %s2774_s18, %s2774_s18 }
  0x30   : > { %p3383_p6 = pneg %p3377_p5 }
  0x31   : > { %p2784_p12 = por %p2783_p11, %p2782_p10 }
  0x32   : > { %p2777_p8 = pnand %p2775_p7, %p3383_p6 }
  0x34   : > { %p2778_p9 = pneg %p2777_p8 }
  0x36   : > { %p2785_p13 = pnand %p2784_p12, %p2778_p9 }
  0x38   : > { %2788 = shalt.err (!%p2785_p13)
}
  0x39   : > { %s3896_s3 = smov 128   ;;  %s3898_s14 = smov 8  }
  0x3a   : > { %s3940_s4 = sld [smem:[#allocation38_spill]]  ;;  %s2800_s6 = scalar_lea.vmem %s547_s16, 512 }
  0x3b   : > { %p2801_p0 = scmp.ne.s32.totalorder %s547_s16, %s2800_s6  ;;  %p2808_p7 = scmp.lt.s32.totalorder %s547_s16, %s547_s16 }
  0x3c   : > { %p2809_p8 = scmp.lt.s32.totalorder %s2800_s6, %s2800_s6 }
  0x3d   : > { %p2803_p2 = pnand %p2801_p0, %p3383_p6 }
  0x3e   : > { %p2810_p9 = por %p2809_p8, %p2808_p7 }
  0x3f   : > { %p2804_p4 = pneg %p2803_p2 }
  0x40   : > { %2567 = dma.hbm_to_vmem [thread:$0]  (!%p3377_p5), %s3940_s4, 512, %s515_s17, [#allocation10], %s3896_s3, %s3896_s3, %s3898_s14  }
  0x41   : > { %p2811_p10 = pnand %p2810_p9, %p2804_p4 }
  0x43   : > { %2814 = shalt.err (!%p2811_p10)
}
  0x44   : > { %s3941_s7 = sld [smem:[#allocation42_spill]]  ;;  %s2826_s4 = scalar_lea.vmem %s585_s12, 512 }
  0x45   : > { %p2827_p11 = scmp.ne.s32.totalorder %s585_s12, %s2826_s4  ;;  %p2834_p0 = scmp.lt.s32.totalorder %s585_s12, %s585_s12 }
  0x46   : > { %p2835_p2 = scmp.lt.s32.totalorder %s2826_s4, %s2826_s4 }
  0x47   : > { %p2829_p12 = pnand %p2827_p11, %p3383_p6 }
  0x48   : > { %p2836_p4 = por %p2835_p2, %p2834_p0 }
  0x49   : > { %p2830_p13 = pneg %p2829_p12 }
  0x4a   : > { %2573 = dma.hbm_to_vmem [thread:$0]  (!%p3377_p5), %s3941_s7, 512, %s547_s16, [#allocation13], %s3896_s3, %s3896_s3, %s3898_s14  }
  0x4b   : > { %p2837_p7 = pnand %p2836_p4, %p2830_p13 }
  0x4d   : > { %2840 = shalt.err (!%p2837_p7)
}
  0x4e   : > { %s3942_s13 = sld [smem:[#allocation48_spill]]  ;;  %p3904_p8 = scmp.eq.s32.totalorder %s3167_s28, 0 }
  0x4f   : > { %p95_p9 = scmp.ne.s32.totalorder %s3135_s22, %s3131_s1  ;;  %p101_p10 = scmp.ne.s32.totalorder %s3131_s1, %s3127_s21 }
  0x50   : > { %p3900_p11 = scmp.lt.s32.totalorder %s3167_s28, 4  ;;  %s643_s16 = sand.u32 1, %s3167_s28  }
  0x51   : > { %p97_p12 = por %p95_p9, %p3904_p8  ;;  %p3429_p13 = por %p101_p10, %p3901_p1 }
  0x52   : > { %s645_s19 = sand.u32 1, %s3135_s22   ;;  %s2354_s18 = sshll.u32 %s3163_s27, 8 }
  0x53   : > { %s3943_s17 = scalar_select %p3429_p13, 1, 0 }
  0x54   : > { %2579 = dma.hbm_to_vmem [thread:$0]  (!%p3377_p5), %s3942_s13, 512, %s585_s12, [#allocation16], %s3896_s3, %s3896_s3, %s3898_s14  }
  0x55   : > { %3944 = sst [smem:[#allocation30_spill]] %s3943_s17  ;;  %s2300_s4 = sshll.u32 %s645_s19, 4 }
  0x56   : > { %s3945_s7 = sld [smem:[#allocation36_spill]]  ;;  %p3440_p0 = pnand %p3900_p11, %p97_p12 }
  0x57   : > { %s647_s21 = scalar_lea.vmem [#allocation6], %s2300_s4  ;;  %s3444_s14 = scalar_lea.sflag [#allocation7], %s643_s16 }
  0x58   : > { %s654_s3 = sshll.u32 %s647_s21, 4  ;;  %p2843_p2 = pneg %p3440_p0  ;;  %s655_s3 = int_to_ptr.vmem [resolvable:$true] %s654_s3 }
  0x59   : > { %s2854_s13 = scalar_lea.vmem %s655_s3, 256  ;;  %s3174_s19 = smov [#allocation6]  }
  0x5a   : > { %p2855_p4 = scmp.ne.s32.totalorder %s655_s3, %s2854_s13  ;;  %s2859_s6 = sshll.u32 %s3174_s19, 4  ;;  %s2860_s6 = int_to_ptr.vmem [resolvable:$false] %s2859_s6 }
  0x5b   : > { %p2862_p10 = scmp.lt.s32.totalorder %s655_s3, %s2860_s6 }
  0x5c   : > { %s653_s12 = scalar_lea.hbm %s3945_s7, %s2354_s18  ;;  %p2857_p7 = pnand %p2855_p4, %p2843_p2 }
  0x5d   : > { %s2861_s7 = scalar_lea.vmem %s2860_s6, 512 }
  0x5e   : > { %p2858_p9 = pneg %p2857_p7  ;;  %p2863_p12 = scmp.lt.s32.totalorder %s2861_s7, %s2854_s13 }
  0x60   : > { %p2864_p11 = por %p2863_p12, %p2862_p10 }
  0x62   : > { %p2865_p1 = pnand %p2864_p11, %p2858_p9 }
  0x64   : > { %2868 = shalt.err (!%p2865_p1)
}
  0x65   : > { %s3947_s18 = smov 8   ;;  %s3948_s16 = smov 128  }
  0x66   : > { %2589 = dma.hbm_to_vmem [thread:$0]  (!%p3440_p0), %s653_s12, 256, %s655_s3, %s3444_s14, %s3948_s16, %s3948_s16, %s3947_s18  }
  0x67   : > { %s3175_s4 = smov [#allocation11]   ;;  %s3176_s21 = smov [#allocation14]  }
  0x68   : > { %s530_s8 = sshll.u32 %s3175_s4, 4  ;;  %s562_s19 = sshll.u32 %s3176_s21, 4  ;;  %s531_s8 = int_to_ptr.vmem [resolvable:$true] %s530_s8  ;;  %s563_s19 = int_to_ptr.vmem [resolvable:$true] %s562_s19 }
  0x69   : > { %s2880_s17 = scalar_lea.vmem %s531_s8, 512  ;;  %p2888_p11 = scmp.lt.s32.totalorder %s531_s8, %s531_s8 }
  0x6a   : > { %p2881_p2 = scmp.ne.s32.totalorder %s531_s8, %s2880_s17  ;;  %p2889_p1 = scmp.lt.s32.totalorder %s2880_s17, %s2880_s17 }
  0x6c   : > { %p2883_p4 = pnand %p2881_p2, %p3383_p6  ;;  %p2890_p9 = por %p2889_p1, %p2888_p11 }
  0x6e   : > { %p2884_p7 = pneg %p2883_p4 }
  0x70   : > { %p2891_p10 = pnand %p2890_p9, %p2884_p7 }
  0x72   : > { %2894 = shalt.err (!%p2891_p10)
}
  0x73   : > { %s3949_s5 = sld [smem:[#allocation40_spill]]  ;;  %s2906_s10 = scalar_lea.vmem %s563_s19, 512 }
  0x74   : > { %p2907_p0 = scmp.ne.s32.totalorder %s563_s19, %s2906_s10  ;;  %p2914_p4 = scmp.lt.s32.totalorder %s563_s19, %s563_s19 }
  0x75   : > { %p2915_p11 = scmp.lt.s32.totalorder %s2906_s10, %s2906_s10 }
  0x76   : > { %p2909_p12 = pnand %p2907_p0, %p3383_p6 }
  0x77   : > { %p2916_p7 = por %p2915_p11, %p2914_p4 }
  0x78   : > { %p2910_p2 = pneg %p2909_p12 }
  0x79   : > { %2570 = dma.hbm_to_vmem [thread:$0]  (!%p3377_p5), %s3949_s5, 512, %s531_s8, [#allocation10], %s3948_s16, %s3948_s16, %s3947_s18  }
  0x7a   : > { %p2917_p1 = pnand %p2916_p7, %p2910_p2 }
  0x7c   : > { %2920 = shalt.err (!%p2917_p1)
}
  0x7d   : > { %s3950_s9 = sld [smem:[#allocation44_spill]]  ;;  %s3177_s6 = smov [#allocation17]  }
  0x7e   : > { %s600_s7 = sshll.u32 %s3177_s6, 4  ;;  %s601_s7 = int_to_ptr.vmem [resolvable:$true] %s600_s7 }
  0x7f   : > { %s2932_s4 = scalar_lea.vmem %s601_s7, 512  ;;  %p2940_p12 = scmp.lt.s32.totalorder %s601_s7, %s601_s7 }
  0x80   : > { %p2933_p9 = scmp.ne.s32.totalorder %s601_s7, %s2932_s4  ;;  %p2941_p2 = scmp.lt.s32.totalorder %s2932_s4, %s2932_s4 }
  0x82   : > { %p2935_p10 = pnand %p2933_p9, %p3383_p6  ;;  %p2942_p4 = por %p2941_p2, %p2940_p12 }
  0x83   : > { %2576 = dma.hbm_to_vmem [thread:$0]  (!%p3377_p5), %s3950_s9, 512, %s563_s19, [#allocation13], %s3948_s16, %s3948_s16, %s3947_s18  }
  0x84   : > { %p2936_p0 = pneg %p2935_p10 }
  0x86   : > { %p2943_p11 = pnand %p2942_p4, %p2936_p0 }
  0x88   : > { %2946 = shalt.err (!%p2943_p11)
}
  0x89   : > { %s3951_s15 = sld [smem:[#allocation50_spill]]  ;;  %s2288_s11 = sadd.s32 4294967294, %s3167_s28  }
  0x8a   : > { %s50_s25 = sadd.s32 1, %s3159_s26  ;;  %s53_s19 = sadd.s32 1, %s3163_s27 }
  0x8b   : > { %p51_p6 = scmp.ge.s32.totalorder %s50_s25, 2  ;;  %s62_s13 = sadd.s32 1, %s3147_s24 }
  0x8c   : > { %p69_p7 = scmp.ne.s32.totalorder %s3147_s24, %s3143_s23  ;;  %p75_p9 = scmp.ne.s32.totalorder %s3143_s23, %s3139_s2 }
  0x8d   : > { %s4018_s25 = smov (%p51_p6, %s50_s25), 0  ;;  %s4020_s19 = smov (!%p51_p6, %s53_s19), %s3163_s27 }
  0x8e   : > { %3952 = sst [smem:[#allocation31_spill]] %s4018_s25  ;;  %s3495_s3 = ssub.s32 %s3159_s26, %s4018_s25 }
  0x8f   : > { %2582 = dma.hbm_to_vmem [thread:$0]  (!%p3377_p5), %s3951_s15, 512, %s601_s7, [#allocation16], %s3948_s16, %s3948_s16, %s3947_s18  }
  0x90   : > { %p3499_p5 = por %p3904_p8, %p69_p7  ;;  %p55_p1 = scmp.ge.s32.totalorder %s4020_s19, 2 }
  0x91   : > { %p489_p0 = scmp.eq.s32.totalorder %s3364_s29, 3  ;;  %p3955_p12 = scmp.eq.s32.totalorder %s3364_s29, 0 }
  0x92   : > { %s4022_s19 = smov (%p55_p1, %s4020_s19), 0  ;;  %p495_p11 = scmp.eq.s32.totalorder %s2288_s11, 3 }
  0x93   : > { %3954 = sst [smem:[#allocation32_spill]] %s4022_s19  ;;  %p3511_p2 = por %p3955_p12, %p75_p9 }
  0x94   : > { %p3515_p4 = por %p489_p0, %p69_p7  ;;  %s57_s17 = ssub.s32 %s3163_s27, %s4022_s19 }
  0x95   : > { %s59_s12 = sor.u32 %s3495_s3, %s57_s17  ;;  %p86_p6 = scmp.eq.s32.totalorder %s57_s17, 0 }
  0x96   : > { %s3957_s10 = scalar_select %p3515_p4, 1, 0 }
  0x97   : > { %p60_p8 = scmp.eq.s32.totalorder %s59_s12, 0  ;;  %p3522_p10 = por %p495_p11, %p75_p9 }
  0x98   : > { %3958 = sst [smem:[#allocation33_spill]] %s3957_s10  ;;  %s3961_s7 = sadd.s32 1, %s3135_s22 }
  0x99   : > { %s3959_s6 = scalar_select %p3522_p10, 1, 0 }
  0x9a   : > { %s3529_s4 = scalar_select %p86_p6, %s3135_s22, %s3961_s7  }
  0x9b   : > { %3960 = sst [smem:[#allocation34_spill]] %s3959_s6  ;;  %s623_s21 = sand.u32 1, %s3147_s24  }
  0x9c   : > { %s3532_s8 = scalar_select %p60_p8, %s3147_s24, %s62_s13  }
  0x9d   : > { %s2298_s5 = sshll.u32 %s3163_s27, 1  ;;  %s2297_s9 = sshll.u32 %s623_s21, 3 }
  0x9e   : > { %s632_s15 = sadd.s32 %s3159_s26, %s2298_s5  ;;  %s627_s11 = scalar_lea.vmem [#allocation3], %s2297_s9 }
  0x9f   : > { %s2299_s19 = sshll.u32 %s632_s15, 7  ;;  %s636_s25 = sshll.u32 %s627_s11, 4  ;;  %s637_s25 = int_to_ptr.vmem [resolvable:$true] %s636_s25 }
  0xa0   : > { %s3962_s17 = sld [smem:[#allocation35_spill]]  ;;  %p3963_p7 = scmp.lt.s32.totalorder %s3167_s28, 4 }
  0xa1   : > { %s624_s13 = scalar_lea.sflag [#allocation4], %s623_s21  ;;  %s2960_s7 = scalar_lea.vmem %s637_s25, 128 }
  0xa2   : > { %p3544_p1 = pnand %p3963_p7, %p3499_p5  ;;  %p2961_p9 = scmp.ne.s32.totalorder %s637_s25, %s2960_s7 }
  0xa3   : > { %s3178_s5 = smov [#allocation3]  }
  0xa4   : > { %p2949_p8 = pneg %p3544_p1  ;;  %s2965_s9 = sshll.u32 %s3178_s5, 4  ;;  %s2966_s9 = int_to_ptr.vmem [resolvable:$false] %s2965_s9 }
  0xa5   : > { %s2967_s15 = scalar_lea.vmem %s2966_s9, 256  ;;  %p2968_p11 = scmp.lt.s32.totalorder %s637_s25, %s2966_s9 }
  0xa6   : > { %s634_s12 = scalar_lea.hbm %s3962_s17, %s2299_s19  ;;  %p2963_p0 = pnand %p2961_p9, %p2949_p8 }
  0xa7   : > { %p2969_p6 = scmp.lt.s32.totalorder %s2967_s15, %s2960_s7 }
  0xa8   : > { %p2964_p12 = pneg %p2963_p0 }
  0xa9   : > { %p2970_p10 = por %p2969_p6, %p2968_p11 }
  0xab   : > { %p2971_p4 = pnand %p2970_p10, %p2964_p12 }
  0xad   : > { %2974 = shalt.err (!%p2971_p4)
}
  0xae   : > { %2586 = dma.hbm_to_vmem [thread:$0]  (!%p3544_p1), %s634_s12, 128, %s637_s25, %s624_s13  }
  0xaf   : > { %s114_s2 = sadd.s32 1, %s3123_s20  ;;  %p121_p5 = scmp.ne.s32.totalorder %s3123_s20, %s3119_s30 }
  0xb0   : > { %p3965_p7 = scmp.eq.s32.totalorder %s3495_s3, 0  ;;  %p3966_p10 = scmp.eq.s32.totalorder %s3167_s28, 0 }
  0xb1   : > { %p127_p8 = scmp.ne.s32.totalorder %s3119_s30, %s3115_s0  ;;  %s666_s18 = sand.u32 1, %s3123_s20  }
  0xb2   : > { %s3558_s19 = scalar_select %p3965_p7, %s3123_s20, %s114_s2  }
  0xb3   : > { %p123_p4 = por %p121_p5, %p3966_p10  ;;  %s2304_s10 = sshll.u32 %s3159_s26, 7 }
  0xb4   : > { %p3967_p9 = scmp.eq.s32.totalorder %s3364_s29, 0  ;;  %s2303_s21 = sshll.u32 %s666_s18, 3 }
  0xb5   : > { %s3969_s7 = sld [smem:[#allocation37_spill]]  ;;  %s668_s12 = scalar_lea.vmem [#allocation8], %s2303_s21 }
  0xb6   : > { %p3568_p0 = por %p127_p8, %p3967_p9  ;;  %s675_s13 = sshll.u32 %s668_s12, 4  ;;  %s676_s13 = int_to_ptr.vmem [resolvable:$true] %s675_s13 }
  0xb7   : > { %p3970_p1 = scmp.lt.s32.totalorder %s3167_s28, 4  ;;  %s2988_s0 = scalar_lea.vmem %s676_s13, 128 }
  0xb8   : > { %s3968_s6 = scalar_select %p3568_p0, 1, 0 }
  0xb9   : > { %p3577_p12 = pnand %p3970_p1, %p123_p4  ;;  %p2989_p6 = scmp.ne.s32.totalorder %s676_s13, %s2988_s0 }
  0xba   : > { %s3179_s5 = smov [#allocation8]  }
  0xbb   : > { %s673_s25 = scalar_lea.hbm %s3969_s7, %s2304_s10  ;;  %p2977_p11 = pneg %p3577_p12 }
  0xbc   : > { %s2993_s9 = sshll.u32 %s3179_s5, 4  ;;  %s2994_s9 = int_to_ptr.vmem [resolvable:$false] %s2993_s9 }
  0xbd   : > { %p2991_p5 = pnand %p2989_p6, %p2977_p11  ;;  %s2995_s15 = scalar_lea.vmem %s2994_s9, 256 }
  0xbe   : > { %p2996_p10 = scmp.lt.s32.totalorder %s676_s13, %s2994_s9  ;;  %p2997_p8 = scmp.lt.s32.totalorder %s2995_s15, %s2988_s0 }
  0xbf   : > { %p2992_p7 = pneg %p2991_p5 }
  0xc0   : > { %p2998_p9 = por %p2997_p8, %p2996_p10 }
  0xc2   : > { %p2999_p0 = pnand %p2998_p9, %p2992_p7 }
  0xc4   : > { %3002 = shalt.err (!%p2999_p0)
}
  0xc5   : > { %2592 = dma.hbm_to_vmem [thread:$0]  (!%p3577_p12), %s673_s25, 128, %s676_s13, %s3444_s14  }
  0xc6   : > { %684 = sbr.rel (%p3369_p3) target bundleno = 4219 (0x107b), region = 96  ;;  %s3589_s18 = sand.u32 (!%p3369_p3), 1, %s3143_s23  }
  0xc7   : > { %s2306_s10 = sshll.u32 (!%p3369_p3), %s3589_s18, 3  ;;  %s687_s21 = scalar_lea.sflag (!%p3369_p3), [#allocation4], %s3589_s18 }
  0xc8   : > { %s3595_s11 = scalar_lea.vmem (!%p3369_p3), [#allocation3], %s2306_s10 }
  0xcb   : > { %3086 = dma.done.wait (%p3511_p2), %s687_s21, 128  }
  0xcc   : > { %3088 = vsyncadd (%p3511_p2), %s687_s21, 4294967168  ;;  %s695_s17 = sand.u32 1, %s3364_s29   ;;  %s697_s7 = sand.u32 1, %s3131_s1  }
  0xcd   : > { %s3603_s25 = sshll.u32 %s697_s7, 4  ;;  %s696_s12 = scalar_lea.sflag [#allocation7], %s695_s17 }
  0xce   : > { %s699_s13 = scalar_lea.vmem [#allocation6], %s3603_s25 }
  0xcf   : > { %3090 = dma.done.wait (%p3429_p13), %s696_s12, 256  }
  0xd0   : > { %3092 = vsyncadd (%p3429_p13), %s696_s12, 4294967040  ;;  %s706_s3 = sand.u32 1, %s3119_s30   ;;  %p3974_p3 = scmp.ne.s32.totalorder %s3968_s6, 0 }
  0xd1   : > { %s3611_s16 = sshll.u32 %s706_s3, 3 }
  0xd2   : > { %s708_s0 = scalar_lea.vmem [#allocation8], %s3611_s16 }
  0xd3   : > { %3094 = dma.done.wait (%p3974_p3), %s696_s12, 128  }
  0xd4   : > { %3096 = vsyncadd (%p3974_p3), %s696_s12, 4294967168  ;;  %p3975_p2 = scmp.eq.s32.totalorder %s3364_s29, 0 }
  0xd6   : > { %3098 = dma.done.wait (%p3975_p2), [#allocation10], 1024   ;;  %p3976_p4 = pmov %p3975_p2 }
  0xd7   : > { %p3977_p13 = pmov %p3975_p2 }
  0xd8   : > { %3100 = vsyncadd (%p3976_p4), [#allocation10], 4294966272 }
  0xd9   : > { %3102 = dma.done.wait (%p3977_p13), [#allocation13], 1024   ;;  %p3978_p0 = pmov %p3975_p2 }
  0xdb   : > { %3104 = vsyncadd (%p3978_p0), [#allocation13], 4294966272  ;;  %p3979_p1 = pmov %p3978_p0 }
  0xdc   : > { %p3980_p12 = pmov %p3978_p0 }
  0xdd   : > { %3106 = dma.done.wait (%p3979_p1), [#allocation16], 1024  }
  0xde   : > { %3108 = vsyncadd (%p3980_p12), [#allocation16], 4294966272  ;;  %v3180_v0 = vmov 0.0   ;;  %vm3181_vm0 = vmmov 0   ;;  %v889_v1 = vld [vmem:[#allocation11 + $0x18] sm:$0xff]  ;;  %v888_v2 = vld [vmem:[#allocation11 + $0x10] sm:$0xff] }
  0xdf   : > { %2410 = vmatprep.subr.mxu0 %v3180_v0  ;;  %2418 = vmatprep.mubr.msk.f32.mxu0 %vm3181_vm0, %v3180_v0  ;;  %v801_v3 = vld [vmem:[#allocation9 + $0x18] sm:$0xff]  ;;  %v800_v4 = vld [vmem:[#allocation9 + $0x10] sm:$0xff]  ;;  %v887_v5 = vld [vmem:[#allocation11 + $0x8] sm:$0xff]  ;;  %vm809_vm1 = vcmask 261120   ;;  %s3981_s5 = sld [smem:[#allocation41_spill]]  ;;  %vm979_vm2 = vcmask 64512  }
  0xe0   : > { %2421 = vmatprep.subr.mxu1 %v889_v1  ;;  %2411 = vmatpush3.msra.mxu0 %v801_v3  ;;  %v884_v6 = vld [vmem:[%s699_s13] sm:$0xff]  ;;  %v799_v7 = vld [vmem:[#allocation9 + $0x8] sm:$0xff]  ;;  %s3982_s2 = sld [smem:[#allocation39_spill]]  ;;  %s3182_s21 = smov 96   ;;  %vm1059_vm3 = vcmask 130048   ;;  %vm1327_vm4 = vcmask 130112  }
  0xe1   : > { %2422 = vmatpush3.msra.mxu1 %v889_v1  ;;  %2412 = vmatprep.subr.mxu0 %v3180_v0  ;;  %v886_v8 = vld [vmem:[#allocation11] sm:$0xff]  ;;  %v885_v10 = vld [vmem:[%s699_s13 + $0x8] sm:$0xff]  ;;  %v3683_v24 = vld [vmem:[%s708_s0] sm:$0xff]  ;;  %s3184_s14 = smov 88   ;;  %s3185_s17 = smov 112   ;;  %vm1505_vm5 = vcmask 195712  }
  0xe2   : > { %2423 = vmatprep.subr.mxu1 %v888_v2  ;;  %2413 = vmatpush3.msra.mxu0 %v800_v4  ;;  %v798_v9 = vld [vmem:[#allocation9] sm:$0xff]  ;;  %s3186_s7 = smov 80   ;;  %s3187_s25 = smov 104   ;;  %vm1683_vm6 = vcmask 261312  }
  0xe3   : > { %2424 = vmatpush3.msra.mxu1 %v888_v2  ;;  %2414 = vmatprep.subr.mxu0 %v3180_v0  ;;  %v3641_v11 = vld [vmem:[%s3595_s11] sm:$0xff]  ;;  %s3183_s11 = smov 120   ;;  %s3188_s12 = smov 72  }
  0xe4   : > { %2425 = vmatprep.subr.mxu1 %v887_v5  ;;  %2429 = vmatprep.mubr.msk.f32.mxu1 %vm809_vm1, %v884_v6  ;;  %s3189_s13 = smov 8   ;;  %s3190_s3 = smov 16  }
  0xe5   : > { %2426 = vmatpush3.msra.mxu1 %v887_v5  ;;  %2415 = vmatpush3.msra.mxu0 %v799_v7  ;;  %v2318_v12 = vld [vmem:[%s3981_s5] ss:$0 sm:$0xff]  ;;  %s3191_s16 = smov 24   ;;  %s3983_s6 = sld [smem:[#allocation43_spill]] }
  0xe6   : > { %2427 = vmatprep.subr.mxu1 %v886_v8  ;;  %2416 = vmatprep.subr.mxu0 %v3180_v0  ;;  %v2316_v13 = vld [vmem:[%s3982_s2] ss:$0 sm:$0xff]  ;;  %s3984_s15 = sld [smem:[#allocation45_spill]] }
  0xe7   : > { %2428 = vmatpush3.msra.mxu1 %v886_v8  ;;  %2417 = vmatpush3.msra.mxu0 %v798_v9  ;;  %s3988_s0 = sld [smem:[#allocation51_spill]] }
  0xe8   : > { %2430 = vmatmul.mubr.msk.f32.vlgmr.msra.gmra.mxu1 %vm809_vm1, %v885_v10  ;;  %2419 = vmatmul.mubr.msk.f32.vlgmr.msra.gmra.mxu0 %vm809_vm1, %v3641_v11  ;;  %s3989_s29 = sld [smem:[#allocation28_spill]] }
  0xe9   : > { %2432 = vmatprep.subr.mxu0 %v3180_v0  ;;  %2436 = vmatprep.mubr.msk.f32.mxu0 %vm3181_vm0, %v3180_v0 }
  0xea   : > { %2439 = vmatprep.subr.mxu1 %v3180_v0  ;;  %2443 = vmatprep.mubr.msk.f32.mxu1 %vm3181_vm0, %v3180_v0 }
  0xee   : > { %s2350_s5 = sshll.u32 %s3989_s29, 1 }
 0x1a8   : > { %v2431_v14 = vpop.f32.mrf.mxu1  ;;  %v879_v15 = vpop.f32.mrf.mxu0 }
 0x1a9   : > { %v3659_v16 = vadd.f32 %v2431_v14, %v2318_v12  ;;  %v880_v18 = vadd.f32 %v2316_v13, %v879_v15 }
 0x1aa   : > { %v969_v17 = vpop.f32.mrf.mxu1  ;;  %v2420_v19 = vpop.f32.mrf.mxu0 }
 0x1ab   : > { %1073 = vrot.lane.b32.xlu1 %v3659_v16, %s3182_s21  ;;  %2433 = vmatpush3.xpose.msk.msra.mxu0 %vm979_vm2, %v3659_v16  ;;  %v3665_v20 = vadd.f32 %v2318_v12, %v969_v17  ;;  %v3667_v21 = vmul.f32 0.35355338, %v880_v18 }
 0x1ac   : > { %2434 = vmatprep.subr.mxu0 %v3180_v0 }
 0x1af   : > { %1071 = vrot.lane.b32.xlu1 %v3665_v20, %s3182_s21  ;;  %2435 = vmatpush3.xpose.msk.msra.mxu0 %vm979_vm2, %v3665_v20  ;;  %s3192_s21 = smov [#allocation18]  }
 0x1b0   : > { %2453 = vmatprep.subr.mxu0 %v3180_v0 }
 0x1b2   : > { %2437 = vmatmul.mubr.msk.f32.vlgmr.msra.gmra.mxu0 %vm979_vm2, %v3667_v21 }
 0x1b3   : > { %1153 = vrot.lane.b32.xlu1 %v3665_v20, %s3183_s11  ;;  %2457 = vmatprep.mubr.msk.f32.mxu0 %vm3181_vm0, %v3180_v0 }
 0x1b7   : > { %1151 = vrot.lane.b32.xlu1 %v3667_v21, %s3183_s11 }
 0x21d   : > { %v1074_v22 = vpop.permute.xlu1 %1073 }
 0x21e   : > { %2440 = vmatpush3.msra.mxu1 %v1074_v22 }
 0x21f   : > { %2441 = vmatprep.subr.mxu1 %v3180_v0 }
 0x221   : > { %v1072_v23 = vpop.permute.xlu1 %1071 }
 0x222   : > { %2442 = vmatpush3.msra.mxu1 %v1072_v23 }
 0x223   : > { %2446 = vmatprep.subr.mxu1 %v3180_v0 }
 0x225   : > { %v1154_v38 = vpop.permute.xlu1 %1153 }
 0x229   : > { %v1152_v39 = vpop.permute.xlu1 %1151 }
 0x272   : > { %v1055_v25 = vpop.f32.mrf.mxu0 }
 0x273   : > { %v1056_v26 = vadd.f32 %v1055_v25, %v3683_v24 }
 0x274   : > { %v2438_v27 = vpop.f32.mrf.mxu0 }
 0x275   : > { %v1060_v28 = vsel %vm1059_vm3, %v1056_v26, -inf }
 0x276   : > { %1061 = vmax.xlane.f32.xlu0 %v1060_v28 }
 0x2ff   : > { %v1062_v29 = vpop.xlane.xlu0 %1061 }
 0x300   : > { %v1063_v30 = vsub.f32 %v1056_v26, %v1062_v29 }
 0x302   : > { %v1064_v31 = vmul.f32 1.442695, %v1063_v30 }
 0x304   : > { %2743 = vpow2.f32 %v1064_v31 }
 0x311   : > { %v2744_v32 = vpop.eup %2743 }
 0x312   : > { %v1066_v33 = vsel %vm1059_vm3, %v2744_v32, 0.0 }
 0x313   : > { %1067 = vadd.xlane.f32.xlu0 %v1066_v33 }
 0x329   : > { %1155 = vrot.lane.b32.xlu0 %v3659_v16, %s3183_s11  ;;  %s3985_s11 = sld [smem:[#allocation46_spill]] }
 0x39c   : > { %v1068_v34 = vpop.xlane.xlu0 %1067 }
 0x39d   : > { %2745 = vrcp.f32 %v1068_v34 }
 0x3a0   : > { %v1156_v37 = vpop.permute.xlu0 %1155 }
 0x3aa   : > { %v2746_v35 = vpop.eup %2745 }
 0x3ab   : > { %v1070_v36 = vmul.f32 %v2746_v35, %v2744_v32  ;;  %v1689_v35 = vld [vmem:[#allocation12 + $0x18] sm:$0xff] }
 0x3ad   : > { %2444 = vmatmul.mubr.msk.f32.vlgmr.msra.gmra.mxu1 %vm1059_vm3, %v1070_v36  ;;  %v1687_v36 = vld [vmem:[#allocation12 + $0x8] sm:$0xff] }
 0x3ae   : > { %2447 = vmatpush3.xpose.msk.msra.mxu1 %vm979_vm2, %v1156_v37  ;;  %2450 = vmatprep.mubr.msk.f32.mxu1 %vm3181_vm0, %v3180_v0  ;;  %v1686_v37 = vld [vmem:[#allocation12] sm:$0xff] }
 0x3af   : > { %2448 = vmatprep.subr.mxu1 %v3180_v0 }
 0x3b2   : > { %2449 = vmatpush3.xpose.msk.msra.mxu1 %vm979_vm2, %v1154_v38  ;;  %v1774_v38 = vld [vmem:[#allocation14 + $0x18] sm:$0xff] }
 0x3b3   : > { %2467 = vmatprep.subr.mxu1 %v3180_v0 }
 0x3b5   : > { %2451 = vmatmul.mubr.msk.f32.vlgmr.msra.gmra.mxu1 %vm979_vm2, %v1152_v39 }
 0x3b6   : > { %2471 = vmatprep.mubr.msk.f32.mxu1 %vm3181_vm0, %v3180_v0 }
 0x46d   : > { %v1146_v40 = vpop.f32.mrf.mxu1 }
 0x46e   : > { %1150 = vst.msk [vmem:[#allocation2] sm:$0xff] %vm979_vm2, %v1146_v40 }
 0x46f   : > { %v2445_v41 = vpop.f32.mrf.mxu1 }
 0x475   : > { %v1229_v42 = vpop.f32.mrf.mxu1 }
 0x476   : > { %v1230_v43 = vadd.f32 %v1229_v42, %v3683_v24 }
 0x477   : > { %v2452_v44 = vpop.f32.mrf.mxu1 }
 0x478   : > { %v1233_v45 = vsel %vm1059_vm3, %v1230_v43, -inf  ;;  %v1772_v44 = vld [vmem:[#allocation14 + $0x8] sm:$0xff] }
 0x479   : > { %1234 = vmax.xlane.f32.xlu1 %v1233_v45  ;;  %v1771_v45 = vld [vmem:[#allocation14] sm:$0xff] }
 0x48a   : > { %1246 = vrot.lane.b32.xlu1 %v3659_v16, %s3184_s14 }
 0x48e   : > { %1333 = vrot.lane.b32.xlu1 %v3659_v16, %s3185_s17 }
 0x492   : > { %1331 = vrot.lane.b32.xlu1 %v3665_v20, %s3185_s17 }
 0x496   : > { %1329 = vrot.lane.b32.xlu1 %v3667_v21, %s3185_s17 }
 0x502   : > { %v1235_v46 = vpop.xlane.xlu1 %1234 }
 0x503   : > { %v1236_v47 = vsub.f32 %v1230_v43, %v1235_v46  ;;  %v1773_v43 = vld [vmem:[#allocation14 + $0x10] sm:$0xff]  ;;  %v2337_v46 = vld [vmem:[%s3983_s6] ss:$0 sm:$0xff]  ;;  %s3990_s6 = sld [smem:[#allocation27_spill]] }
 0x505   : > { %v1237_v48 = vmul.f32 1.442695, %v1236_v47 }
 0x506   : > { %v1247_v49 = vpop.permute.xlu1 %1246 }
 0x507   : > { %2747 = vpow2.f32 %v1237_v48  ;;  %2454 = vmatpush3.msra.mxu0 %v1247_v49 }
 0x508   : > { %2455 = vmatprep.subr.mxu0 %v3180_v0 }
 0x509   : > { %s2098_s9 = sadd.s32 %s3990_s6, %s2350_s5  ;;  %s2087_s5 = scalar_lea.sflag [#allocation5], %s3589_s18 }
 0x50a   : > { %v1334_v54 = vpop.permute.xlu1 %1333 }
 0x50e   : > { %v1332_v57 = vpop.permute.xlu1 %1331 }
 0x512   : > { %v1330_v58 = vpop.permute.xlu1 %1329 }
 0x514   : > { %v2748_v50 = vpop.eup %2747 }
 0x515   : > { %v1239_v51 = vsel %vm1059_vm3, %v2748_v50, 0.0 }
 0x516   : > { %1240 = vadd.xlane.f32.xlu0 %v1239_v51  ;;  %v2339_v51 = vld [vmem:[%s3984_s15] ss:$0 sm:$0xff]  ;;  %s3991_s15 = sld [smem:[#allocation33_spill]] }
 0x51c   : > { %p3996_p6 = scmp.ne.s32.totalorder %s3991_s15, 0 }
 0x52c   : > { %1244 = vrot.lane.b32.xlu0 %v3665_v20, %s3184_s14 }
 0x59f   : > { %v1241_v52 = vpop.xlane.xlu0 %1240 }
 0x5a0   : > { %2749 = vrcp.f32 %v1241_v52 }
 0x5a3   : > { %v1245_v53 = vpop.permute.xlu0 %1244 }
 0x5a4   : > { %2456 = vmatpush3.msra.mxu0 %v1245_v53 }
 0x5a5   : > { %2460 = vmatprep.subr.mxu0 %v3180_v0 }
 0x5ad   : > { %v2750_v55 = vpop.eup %2749 }
 0x5ae   : > { %v1243_v56 = vmul.f32 %v2750_v55, %v2748_v50 }
 0x5b0   : > { %2458 = vmatmul.mubr.msk.f32.vlgmr.msra.gmra.mxu0 %vm1059_vm3, %v1243_v56 }
 0x5b1   : > { %2461 = vmatpush3.xpose.msk.msra.mxu0 %vm979_vm2, %v1334_v54  ;;  %2464 = vmatprep.mubr.msk.f32.mxu0 %vm3181_vm0, %v3180_v0 }
 0x5b2   : > { %2462 = vmatprep.subr.mxu0 %v3180_v0 }
 0x5b5   : > { %2463 = vmatpush3.xpose.msk.msra.mxu0 %vm979_vm2, %v1332_v57 }
 0x5b6   : > { %2481 = vmatprep.subr.mxu0 %v3180_v0 }
 0x5b8   : > { %2465 = vmatmul.mubr.msk.f32.vlgmr.msra.gmra.mxu0 %vm979_vm2, %v1330_v58 }
 0x5b9   : > { %2485 = vmatprep.mubr.msk.f32.mxu0 %vm3181_vm0, %v3180_v0 }
 0x670   : > { %v1319_v59 = vpop.f32.mrf.mxu0 }
 0x672   : > { %v2459_v60 = vpop.f32.mrf.mxu0 }
 0x678   : > { %v1407_v61 = vpop.f32.mrf.mxu0 }
 0x679   : > { %v1408_v62 = vadd.f32 %v1407_v61, %v3683_v24 }
 0x67a   : > { %v2466_v63 = vpop.f32.mrf.mxu0 }
 0x67b   : > { %v1411_v1 = vsel %vm1059_vm3, %v1408_v62, -inf  ;;  %v1888_v63 = vld [vmem:[#allocation15 + $0x10] sm:$0xff] }
 0x67c   : > { %1412 = vmax.xlane.f32.xlu1 %v1411_v1  ;;  %v1887_v1 = vld [vmem:[#allocation15 + $0x8] sm:$0xff] }
 0x68d   : > { %1422 = vrot.lane.b32.xlu1 %v3665_v20, %s3186_s7 }
 0x691   : > { %1511 = vrot.lane.b32.xlu1 %v3659_v16, %s3187_s25 }
 0x695   : > { %1507 = vrot.lane.b32.xlu1 %v3667_v21, %s3187_s25 }
 0x705   : > { %v1413_v2 = vpop.xlane.xlu1 %1412 }
 0x706   : > { %v1414_v3 = vsub.f32 %v1408_v62, %v1413_v2  ;;  %v1889_v62 = vld [vmem:[#allocation15 + $0x18] sm:$0xff] }
 0x707   : > { %v1974_v2 = vld [vmem:[#allocation17 + $0x18] sm:$0xff] }
 0x708   : > { %v1415_v4 = vmul.f32 1.442695, %v1414_v3 }
 0x709   : > { %v1423_v9 = vpop.permute.xlu1 %1422 }
 0x70a   : > { %2751 = vpow2.f32 %v1415_v4 }
 0x70d   : > { %v1512_v13 = vpop.permute.xlu1 %1511 }
 0x711   : > { %v1508_v15 = vpop.permute.xlu1 %1507 }
 0x717   : > { %v2752_v5 = vpop.eup %2751 }
 0x718   : > { %v1417_v6 = vsel %vm1059_vm3, %v2752_v5, 0.0 }
 0x719   : > { %1418 = vadd.xlane.f32.xlu0 %v1417_v6 }
 0x72f   : > { %1424 = vrot.lane.b32.xlu0 %v3659_v16, %s3186_s7  ;;  %s3986_s7 = sld [smem:[#allocation47_spill]] }
 0x733   : > { %1509 = vrot.lane.b32.xlu0 %v3665_v20, %s3187_s25  ;;  %s2351_s25 = sshll.u32 %s2098_s9, 7  ;;  %s3007_s9 = sshll.u32 %s3192_s21, 4  ;;  %s3008_s9 = int_to_ptr.vmem [resolvable:$false] %s3007_s9 }
 0x7a2   : > { %v1419_v7 = vpop.xlane.xlu0 %1418 }
 0x7a3   : > { %2753 = vrcp.f32 %v1419_v7  ;;  %v2341_v7 = vld [vmem:[%s3985_s11] ss:$0 sm:$0xff]  ;;  %s3992_s11 = sld [smem:[#allocation52_spill]] }
 0x7a6   : > { %v1425_v8 = vpop.permute.xlu0 %1424 }
 0x7a7   : > { %2468 = vmatpush3.msra.mxu1 %v1425_v8 }
 0x7a8   : > { %2469 = vmatprep.subr.mxu1 %v3180_v0 }
 0x7a9   : > { %2470 = vmatpush3.msra.mxu1 %v1423_v9  ;;  %v2342_v9 = vld [vmem:[%s3986_s7] ss:$0 sm:$0xff]  ;;  %s3993_s7 = sld [smem:[#allocation53_spill]] }
 0x7aa   : > { %2474 = vmatprep.subr.mxu1 %v3180_v0  ;;  %v1510_v14 = vpop.permute.xlu0 %1509 }
 0x7b0   : > { %v2754_v10 = vpop.eup %2753 }
 0x7b1   : > { %v1421_v12 = vmul.f32 %v2754_v10, %v2752_v5 }
 0x7b3   : > { %2472 = vmatmul.mubr.msk.f32.vlgmr.msra.gmra.mxu1 %vm1059_vm3, %v1421_v12 }
 0x7b4   : > { %2475 = vmatpush3.xpose.msk.msra.mxu1 %vm979_vm2, %v1512_v13  ;;  %2478 = vmatprep.mubr.msk.f32.mxu1 %vm3181_vm0, %v3180_v0  ;;  %v1973_v13 = vld [vmem:[#allocation17 + $0x10] sm:$0xff] }
 0x7b5   : > { %2476 = vmatprep.subr.mxu1 %v3180_v0 }
 0x7b8   : > { %2477 = vmatpush3.xpose.msk.msra.mxu1 %vm979_vm2, %v1510_v14  ;;  %v1972_v14 = vld [vmem:[#allocation17 + $0x8] sm:$0xff] }
 0x7b9   : > { %2499 = vmatprep.subr.mxu1 %v3180_v0 }
 0x7bb   : > { %2479 = vmatmul.mubr.msk.f32.vlgmr.msra.gmra.mxu1 %vm979_vm2, %v1508_v15  ;;  %v1971_v15 = vld [vmem:[#allocation17] sm:$0xff] }
 0x7bc   : > { %2507 = vmatprep.mubr.msk.f32.mxu1 %vm3181_vm0, %v3180_v0  ;;  %2500 = vmatpush3.msra.mxu1 %v1774_v38 }
 0x7bd   : > { %2501 = vmatprep.subr.mxu1 %v3180_v0 }
 0x7be   : > { %2502 = vmatpush3.msra.mxu1 %v1773_v43 }
 0x7bf   : > { %2503 = vmatprep.subr.mxu1 %v3180_v0 }
 0x7c0   : > { %2504 = vmatpush3.msra.mxu1 %v1772_v44 }
 0x7c1   : > { %2505 = vmatprep.subr.mxu1 %v3180_v0 }
 0x7c2   : > { %2506 = vmatpush3.msra.mxu1 %v1771_v45 }
 0x7c3   : > { %2521 = vmatprep.subr.mxu1 %v3180_v0 }
 0x873   : > { %v1497_v17 = vpop.f32.mrf.mxu1 }
 0x875   : > { %v2473_v18 = vpop.f32.mrf.mxu1 }
 0x87b   : > { %v1585_v19 = vpop.f32.mrf.mxu1 }
 0x87c   : > { %v1586_v21 = vadd.f32 %v1585_v19, %v3683_v24 }
 0x87d   : > { %v2480_v22 = vpop.f32.mrf.mxu1 }
 0x87e   : > { %v1589_v23 = vsel %vm1059_vm3, %v1586_v21, -inf }
 0x87f   : > { %1590 = vmax.xlane.f32.xlu0 %v1589_v23  ;;  %v2345_v23 = vld [vmem:[%s3988_s0] ss:$0 sm:$0xff]  ;;  %s3994_s0 = sld [smem:[#allocation54_spill]] }
 0x885   : > { %s3995_s29 = smov %s3994_s0  ;;  %s2100_s6 = scalar_lea.hbm %s3994_s0, %s2351_s25 }
 0x895   : > { %1602 = vrot.lane.b32.xlu0 %v3659_v16, %s3188_s12 }
 0x899   : > { %1324 = vrot.lane.b32.xlu0 %v1319_v59, %s3189_s13  ;;  %s3987_s13 = sld [smem:[#allocation49_spill]] }
 0x908   : > { %v1591_v25 = vpop.xlane.xlu0 %1590 }
 0x909   : > { %v1592_v26 = vsub.f32 %v1586_v21, %v1591_v25 }
 0x90b   : > { %v1593_v27 = vmul.f32 1.442695, %v1592_v26 }
 0x90c   : > { %v1603_v28 = vpop.permute.xlu0 %1602 }
 0x90d   : > { %2755 = vpow2.f32 %v1593_v27  ;;  %2482 = vmatpush3.msra.mxu0 %v1603_v28 }
 0x90e   : > { %2483 = vmatprep.subr.mxu0 %v3180_v0 }
 0x910   : > { %v1325_v29 = vpop.permute.xlu0 %1324 }
 0x911   : > { %1328 = vst.msk [vmem:[#allocation2] sm:$0xff] %vm1327_vm4, %v1325_v29 }
 0x91a   : > { %v2756_v24 = vpop.eup %2755 }
 0x91b   : > { %v1595_v30 = vsel %vm1059_vm3, %v2756_v24, 0.0 }
 0x91c   : > { %1596 = vadd.xlane.f32.xlu1 %v1595_v30 }
 0x92d   : > { %1600 = vrot.lane.b32.xlu1 %v3665_v20, %s3188_s12  ;;  %v1688_v20 = vld [vmem:[#allocation12 + $0x10] sm:$0xff]  ;;  %s796_s12 = scalar_lea.vmem [#allocation18], %s2306_s10  ;;  %s3009_s10 = scalar_lea.vmem %s3008_s9, 256 }
 0x931   : > { %1502 = vrot.lane.b32.xlu1 %v1497_v17, %s3190_s3  ;;  %v2343_v17 = vld [vmem:[%s3987_s13] ss:$0 sm:$0xff]  ;;  %s2102_s13 = sshll.u32 %s796_s12, 4  ;;  %s2103_s13 = int_to_ptr.vmem [resolvable:$true] %s2102_s13 }
 0x932   : > { %s3003_s2 = scalar_lea.vmem %s2103_s13, 128  ;;  %p3010_p10 = scmp.lt.s32.totalorder %s2103_s13, %s3008_s9 }
 0x933   : > { %p3004_p11 = scmp.ne.s32.totalorder %s2103_s13, %s3003_s2  ;;  %p3011_p8 = scmp.lt.s32.totalorder %s3009_s10, %s3003_s2 }
 0x935   : > { %p3005_p5 = pnand %p3004_p11, %p3996_p6  ;;  %p3012_p9 = por %p3011_p8, %p3010_p10 }
 0x937   : > { %p3006_p7 = pneg %p3005_p5 }
 0x939   : > { %p3013_p3 = pnand %p3012_p9, %p3006_p7 }
 0x9a5   : > { %v1597_v16 = vpop.xlane.xlu1 %1596 }
 0x9a6   : > { %2757 = vrcp.f32 %v1597_v16 }
 0x9a9   : > { %v1601_v31 = vpop.permute.xlu1 %1600 }
 0x9aa   : > { %2484 = vmatpush3.msra.mxu0 %v1601_v31 }
 0x9ab   : > { %2488 = vmatprep.subr.mxu0 %v3180_v0 }
 0x9ad   : > { %v1503_v32 = vpop.permute.xlu1 %1502 }
 0x9ae   : > { %1506 = vst.msk [vmem:[#allocation2] sm:$0xff] %vm1505_vm5, %v1503_v32 }
 0x9b3   : > { %v2758_v33 = vpop.eup %2757 }
 0x9b4   : > { %v1599_v34 = vmul.f32 %v2758_v33, %v2756_v24 }
 0x9b6   : > { %2486 = vmatmul.mubr.msk.f32.vlgmr.msra.gmra.mxu0 %vm1059_vm3, %v1599_v34 }
 0x9b7   : > { %2496 = vmatprep.mubr.msk.f32.mxu0 %vm3181_vm0, %v3180_v0  ;;  %2489 = vmatpush3.msra.mxu0 %v1689_v35 }
 0x9b8   : > { %2490 = vmatprep.subr.mxu0 %v3180_v0 }
 0x9b9   : > { %2491 = vmatpush3.msra.mxu0 %v1688_v20  ;;  %v2347_v20 = vld [vmem:[%s3992_s11] ss:$0 sm:$0xff] }
 0x9ba   : > { %2492 = vmatprep.subr.mxu0 %v3180_v0 }
 0x9bb   : > { %2493 = vmatpush3.msra.mxu0 %v1687_v36 }
 0x9bc   : > { %2494 = vmatprep.subr.mxu0 %v3180_v0 }
 0x9bd   : > { %2495 = vmatpush3.msra.mxu0 %v1686_v37  ;;  %v2348_v37 = vld [vmem:[%s3993_s7] ss:$0 sm:$0xff] }
 0x9be   : > { %2510 = vmatprep.subr.mxu0 %v3180_v0 }
 0xa76   : > { %v1675_v39 = vpop.f32.mrf.mxu0 }
 0xa77   : > { %1680 = vrot.lane.b32.xlu0 %v1675_v39, %s3191_s16 }
 0xa78   : > { %v2487_v40 = vpop.f32.mrf.mxu0 }
 0xae9   : > { %v1681_v41 = vpop.permute.xlu0 %1680 }
 0xaea   : > { %1684 = vst.msk [vmem:[#allocation2] sm:$0xff] %vm1683_vm6, %v1681_v41 }
 0xaf1   : > { %v1685_v42 = vld [vmem:[#allocation2] sm:$0xff] }
 0xaf2   : > { %2497 = vmatmul.mubr.msk.f32.vlgmr.msra.gmra.mxu0 %vm809_vm1, %v1685_v42 }
 0xaf3   : > { %2518 = vmatprep.mubr.msk.f32.mxu0 %vm3181_vm0, %v3180_v0  ;;  %2511 = vmatpush3.msra.mxu0 %v1889_v62 }
 0xaf4   : > { %2512 = vmatprep.subr.mxu0 %v3180_v0 }
 0xaf5   : > { %2513 = vmatpush3.msra.mxu0 %v1888_v63 }
 0xaf6   : > { %2514 = vmatprep.subr.mxu0 %v3180_v0 }
 0xaf7   : > { %2515 = vmatpush3.msra.mxu0 %v1887_v1 }
 0xaf8   : > { %2516 = vmatprep.subr.mxu0 %v3180_v0 }
 0xbb2   : > { %v1766_v47 = vpop.f32.mrf.mxu0 }
 0xbb3   : > { %v1767_v48 = vadd.f32 %v2337_v46, %v1766_v47 }
 0xbb4   : > { %v2498_v49 = vpop.f32.mrf.mxu0 }
 0xbb5   : > { %v1770_v50 = vmax.f32 %v1767_v48, 0.0 }
 0xbb7   : > { %2508 = vmatmul.mubr.msk.f32.vlgmr.msra.gmra.mxu1 %vm809_vm1, %v1770_v50 }
 0xbb8   : > { %2529 = vmatprep.mubr.msk.f32.mxu1 %vm3181_vm0, %v3180_v0  ;;  %2522 = vmatpush3.msra.mxu1 %v1974_v2 }
 0xbb9   : > { %2523 = vmatprep.subr.mxu1 %v3180_v0 }
 0xbba   : > { %2524 = vmatpush3.msra.mxu1 %v1973_v13 }
 0xbbb   : > { %2525 = vmatprep.subr.mxu1 %v3180_v0 }
 0xbbc   : > { %2526 = vmatpush3.msra.mxu1 %v1972_v14 }
 0xbbd   : > { %2527 = vmatprep.subr.mxu1 %v3180_v0 }
 0xbbe   : > { %2528 = vmatpush3.msra.mxu1 %v1971_v15 }
 0xc77   : > { %v1851_v52 = vpop.f32.mrf.mxu1 }
 0xc78   : > { %v1852_v53 = vadd.f32 %v2339_v51, %v1851_v52 }
 0xc79   : > { %v2509_v54 = vpop.f32.mrf.mxu1 }
 0xc7a   : > { %v1855_v55 = vadd.f32 %v1852_v53, %v3641_v11  ;;  %v1886_v11 = vld [vmem:[#allocation15] sm:$0xff] }
 0xc7b   : > { %2517 = vmatpush3.msra.mxu0 %v1886_v11 }
 0xc7c   : > { %v1858_v56 = vsel %vm809_vm1, %v1855_v55, 0.0 }
 0xc7d   : > { %1859 = vadd.xlane.f32.xlu1 %v1858_v56 }
 0xd06   : > { %v1860_v57 = vpop.xlane.xlu1 %1859 }
 0xd07   : > { %v1862_v58 = vmul.f32 0.03125, %v1860_v57 }
 0xd09   : > { %v1863_v59 = vsub.f32 %v1855_v55, %v1862_v58 }
 0xd0b   : > { %v1864_v60 = vmul.f32 %v1863_v59, %v1863_v59 }
 0xd0d   : > { %v1865_v61 = vsel %vm809_vm1, %v1864_v60, 0.0 }
 0xd0e   : > { %1866 = vadd.xlane.f32.xlu0 %v1865_v61 }
 0xd97   : > { %v1867_v3 = vpop.xlane.xlu0 %1866 }
 0xd98   : > { %v1868_v4 = vmul.f32 0.03125, %v1867_v3 }
 0xd9a   : > { %v1869_v5 = vadd.f32 1e-05, %v1868_v4 }
 0xd9c   : > { %2759 = vrsqrt.f32 %v1869_v5 }
 0xda9   : > { %v2760_v6 = vpop.eup %2759 }
 0xdaa   : > { %v1871_v8 = vmul.f32 %v2760_v6, %v1863_v59 }
 0xdac   : > { %v1878_v10 = vmul.f32 %v2341_v7, %v1871_v8 }
 0xdae   : > { %v1885_v12 = vadd.f32 %v2342_v9, %v1878_v10 }
 0xdb0   : > { %2519 = vmatmul.mubr.msk.f32.vlgmr.msra.gmra.mxu0 %vm809_vm1, %v1885_v12 }
 0xe70   : > { %v1966_v18 = vpop.f32.mrf.mxu0 }
 0xe71   : > { %v1967_v19 = vadd.f32 %v2343_v17, %v1966_v18 }
 0xe72   : > { %v2520_v21 = vpop.f32.mrf.mxu0 }
 0xe73   : > { %v1970_v22 = vmax.f32 %v1967_v19, 0.0 }
 0xe75   : > { %2530 = vmatmul.mubr.msk.f32.vlgmr.msra.gmra.mxu1 %vm809_vm1, %v1970_v22 }
 0xf35   : > { %v2051_v25 = vpop.f32.mrf.mxu1 }
 0xf36   : > { %v2052_v26 = vadd.f32 %v2345_v23, %v2051_v25 }
 0xf37   : > { %v2531_v0 = vpop.f32.mrf.mxu1 }
 0xf38   : > { %v2055_v27 = vadd.f32 %v2052_v26, %v1885_v12 }
 0xf3a   : > { %v2058_v28 = vsel %vm809_vm1, %v2055_v27, 0.0 }
 0xf3b   : > { %2059 = vadd.xlane.f32.xlu0 %v2058_v28 }
 0xfc4   : > { %v2060_v29 = vpop.xlane.xlu0 %2059 }
 0xfc5   : > { %v2061_v24 = vmul.f32 0.03125, %v2060_v29 }
 0xfc7   : > { %v2062_v30 = vsub.f32 %v2055_v27, %v2061_v24 }
 0xfc9   : > { %v2063_v16 = vmul.f32 %v2062_v30, %v2062_v30 }
 0xfcb   : > { %v2064_v31 = vsel %vm809_vm1, %v2063_v16, 0.0 }
 0xfcc   : > { %2065 = vadd.xlane.f32.xlu1 %v2064_v31 }
0x1055   : > { %v2066_v32 = vpop.xlane.xlu1 %2065 }
0x1056   : > { %v2067_v33 = vmul.f32 0.03125, %v2066_v32 }
0x1058   : > { %v2068_v34 = vadd.f32 1e-05, %v2067_v33 }
0x105a   : > { %2761 = vrsqrt.f32 %v2068_v34 }
0x1067   : > { %v2762_v35 = vpop.eup %2761 }
0x1068   : > { %v2070_v36 = vmul.f32 %v2762_v35, %v2062_v30 }
0x106a   : > { %v2077_v38 = vmul.f32 %v2347_v20, %v2070_v36 }
0x106c   : > { %v2084_v39 = vadd.f32 %v2348_v37, %v2077_v38 }
0x106e   : > { %2085 = vst.msk [vmem:[%s796_s12] sm:$0xff] %vm809_vm1, %v2084_v39 }
0x106f   : > { %3016 = shalt.err (!%p3013_p3)
}
0x1070   : > { %s3017_s11 = scalar_lea.hbm %s2100_s6, 128  ;;  %s3021_s17 = scalar_lea.hbm %s3995_s29, 512 }
0x1071   : > { %p3018_p2 = scmp.ne.s32.totalorder %s2100_s6, %s3017_s11  ;;  %p3022_p0 = scmp.lt.s32.totalorder %s2100_s6, %s3995_s29 }
0x1072   : > { %p3023_p1 = scmp.lt.s32.totalorder %s3021_s17, %s3017_s11 }
0x1073   : > { %p3019_p4 = pnand %p3018_p2, %p3996_p6 }
0x1074   : > { %p3024_p12 = por %p3023_p1, %p3022_p0 }
0x1075   : > { %p3020_p13 = pneg %p3019_p4 }
0x1077   : > { %p3025_p11 = pnand %p3024_p12, %p3020_p13 }
0x1079   : > { %3028 = shalt.err (!%p3025_p11)
}
0x107a   : > { %2562 = dma.vmem_to_hbm [thread:$0]  (%p3996_p6), %s2103_s13, 128, %s2100_s6, %s2087_s5  }
0x107b PF: > { %s3997_s12 = sld [smem:[#allocation26_spill]]  ;;  %p2610_p5 = scmp.ge.s32.totalorder %s3167_s28, 2 }
0x107c   : > { %s3998_s3 = sld [smem:[#allocation34_spill]] }
0x1081   : > { %s2114_s16 = sand.u32 1, %s3997_s12  }
0x1082   : > { %p3999_p7 = scmp.ne.s32.totalorder %s3998_s3, 0  ;;  %s2115_s0 = scalar_lea.sflag [#allocation5], %s2114_s16 }
0x1084   : > { %p2594_p10 = pnand %p2610_p5, %p3999_p7 }
0x1086   : > { %p2595_p8 = pneg %p2594_p10 }
0x1088   : > { %3110 = dma.done.wait (%p2595_p8), %s2115_s0, 128  }
0x1089   : > { %3112 = vsyncadd (%p2595_p8), %s2115_s0, 4294967168  ;;  %s41_s28 = sadd.s32 1, %s3167_s28   ;;  %s4001_s15 = sld [smem:[#allocation31_spill]] }
0x108a   : > { %p3827_p9 = scmp.ge.s32.totalorder %s41_s28, 6   ;;  %s4002_s13 = sld [smem:[#allocation32_spill]] }
0x108b   : > { %s4004_s0 = smov %s3119_s30  ;;  %s4005_s30 = smov %s3123_s20 }
0x108c   : > { %s4006_s20 = smov %s3558_s19  ;;  %s4007_s21 = smov %s3131_s1 }
0x108d   : > { %s4008_s1 = smov %s3135_s22  ;;  %s4009_s22 = smov %s3529_s4 }
0x108e   : > { %s4010_s2 = smov %s3143_s23  ;;  %s4011_s23 = smov %s3147_s24 }
0x108f   : > { %s4012_s24 = smov %s3532_s8  ;;  %s4013_s25 = smov %s3159_s26 }
0x1090   : > { %s4014_s3 = smov %s3163_s27  ;;  %s4015_s26 = smov %s4001_s15 }
0x1091   : > { %s4016_s27 = smov %s4002_s13  ;;  %40 = sbr.rel (!%p3827_p9) target bundleno = 36 (0x24), region = 189 }
0x1096   :  { %2120 = vsyncpa [#allocation4], 1 }
0x1097   :  { %2122 = vsyncpa [#allocation4 + $0x1], 1 }
0x1098   :  { %2123 = vsyncpa [#allocation7], 1 }
0x1099   :  { %2125 = vsyncpa [#allocation7 + $0x1], 1 }
0x109a   :  { %2126 = vsyncpa [#allocation10], 1 }
0x109b   :  { %2127 = vsyncpa [#allocation13], 1 }
0x109c   :  { %2128 = vsyncpa [#allocation16], 1 }
0x109d   :  { %2129 = vsyncpa [#allocation5], 1 }
0x109e   :  { %2131 = vsyncpa [#allocation5 + $0x1], 1 }

</bundles_post_ra>
